<compile_context>
chip_gen: v7x
topology: tpu7x:2x2x1
jax: 0.10.0
libtpu: 0.0.40
codegen_flags: <defaults>
</compile_context>

<pallas_src>
import functools

import jax
import jax.numpy as jnp
import numpy as np
from jax.experimental import pallas as pl
from jax.experimental.pallas import tpu as pltpu

EPS = 1e-5          # InstanceNorm epsilon (nn.InstanceNorm2d default)
LANE = 128          # TPU lane width
VMEM_LIMIT = 40 * 1024 * 1024


def _round_up(x, m):
    return ((x + m - 1) // m) * m


# ---------------------------------------------------------------------------
# Kernels
# ---------------------------------------------------------------------------
def _norm_relu_kernel(x_ref, b_ref, o_ref, *, C):
    """InstanceNorm (per (n,c) over H,W, no affine) + channel bias + ReLU."""
    x = x_ref[0]                                            # (H, W, C) f32
    mean = jnp.mean(x, axis=(0, 1), keepdims=True)
    var = jnp.mean(jnp.square(x - mean), axis=(0, 1), keepdims=True)
    y = (x - mean) * jax.lax.rsqrt(var + EPS) + b_ref[...].reshape(1, 1, C)
    o_ref[0] = jnp.maximum(y, 0.0)


def _block_s1_kernel(*refs, H, W, Ci, Co, equal):
    """Fully fused BasicBlock for stride=1 (one image per grid step)."""
    if equal:
        x_ref, b1_ref, w1_ref, b2_ref, w2_ref, o_ref, p1_ref, p2_ref = refs
        ws_ref = None
    else:
        (x_ref, b1_ref, w1_ref, b2_ref, w2_ref, ws_ref,
         o_ref, p1_ref, p2_ref) = refs

    x = x_ref[0]                                            # (H, W, Ci) f32

    # ---- InstanceNorm1 + bias + ReLU (f32 statistics) ----
    mean = jnp.mean(x, axis=(0, 1), keepdims=True)
    var = jnp.mean(jnp.square(x - mean), axis=(0, 1), keepdims=True)
    y1 = jnp.maximum((x - mean) * jax.lax.rsqrt(var + EPS)
                     + b1_ref[...].reshape(1, 1, Ci), 0.0)

    # ---- skip path ----
    if equal:
        skip = x.reshape(H * W, Co)                         # identity (Ci == Co)
    else:
        skip = jnp.dot(y1.reshape(H * W, Ci).astype(jnp.bfloat16), ws_ref[...],
                       preferred_element_type=jnp.float32)  # 1x1 shortcut conv

    # ---- conv1: 3x3 / stride 1 / pad 1 as 9 shifted matmuls ----
    p1_ref[...] = jnp.zeros((H + 2, W + 2, Ci), jnp.float32)
    p1_ref[1:H + 1, 1:W + 1, :] = y1
    acc = jnp.zeros((H * W, Co), jnp.float32)
    for k in range(9):
        di, dj = divmod(k, 3)
        patch = p1_ref[di:di + H, dj:dj + W, :].reshape(H * W, Ci)
        acc = acc + jnp.dot(patch.astype(jnp.bfloat16), w1_ref[k],
                            preferred_element_type=jnp.float32)

    # ---- InstanceNorm2 + bias + ReLU ----
    mean2 = jnp.mean(acc, axis=0, keepdims=True)
    var2 = jnp.mean(jnp.square(acc - mean2), axis=0, keepdims=True)
    y2 = jnp.maximum((acc - mean2) * jax.lax.rsqrt(var2 + EPS) + b2_ref[...], 0.0)

    # ---- conv2: 3x3 / stride 1 / pad 1, residual folded into accumulator ----
    p2_ref[...] = jnp.zeros((H + 2, W + 2, Co), jnp.float32)
    p2_ref[1:H + 1, 1:W + 1, :] = y2.reshape(H, W, Co)
    acc2 = skip
    for k in range(9):
        di, dj = divmod(k, 3)
        patch = p2_ref[di:di + H, dj:dj + W, :].reshape(H * W, Co)
        acc2 = acc2 + jnp.dot(patch.astype(jnp.bfloat16), w2_ref[k],
                              preferred_element_type=jnp.float32)

    o_ref[0] = acc2.reshape(H, W, Co)


def _block_s2_kernel(xs_ref, w1_ref, b2_ref, w2_ref, ws_ref, o_ref,
                     p1_ref, p2_ref, *, Hh, Wh, C4, Co):
    """Fused conv part of a stride-2 BasicBlock on a space-to-depth input.

    xs holds the already-normalized activation in space-to-depth layout
    (Hh, Wh, 4*Cip); the 3x3/stride-2 conv becomes a 2x2/stride-1 conv with
    one zero block row/col of padding at the top/left.
    """
    xs = xs_ref[0]                                          # (Hh, Wh, 4*Cip) f32

    # 1x1 / stride-2 shortcut == matmul with a weight that only reads the
    # (row,col)-parity (0,0) channel group.
    skip = jnp.dot(xs.reshape(Hh * Wh, C4).astype(jnp.bfloat16), ws_ref[...],
                   preferred_element_type=jnp.float32)

    # ---- conv1 (3x3, stride 2, pad 1) == 4-tap 2x2 conv on s2d input ----
    p1_ref[...] = jnp.zeros((Hh + 1, Wh + 1, C4), jnp.float32)
    p1_ref[1:Hh + 1, 1:Wh + 1, :] = xs
    acc = jnp.zeros((Hh * Wh, Co), jnp.float32)
    for t in range(4):
        ti, tj = divmod(t, 2)
        patch = p1_ref[ti:ti + Hh, tj:tj + Wh, :].reshape(Hh * Wh, C4)
        acc = acc + jnp.dot(patch.astype(jnp.bfloat16), w1_ref[t],
                            preferred_element_type=jnp.float32)

    # ---- InstanceNorm2 + bias + ReLU ----
    mean2 = jnp.mean(acc, axis=0, keepdims=True)
    var2 = jnp.mean(jnp.square(acc - mean2), axis=0, keepdims=True)
    y2 = jnp.maximum((acc - mean2) * jax.lax.rsqrt(var2 + EPS) + b2_ref[...], 0.0)

    # ---- conv2 (3x3, stride 1, pad 1) + residual ----
    p2_ref[...] = jnp.zeros((Hh + 2, Wh + 2, Co), jnp.float32)
    p2_ref[1:Hh + 1, 1:Wh + 1, :] = y2.reshape(Hh, Wh, Co)
    acc2 = skip
    for k in range(9):
        di, dj = divmod(k, 3)
        patch = p2_ref[di:di + Hh, dj:dj + Wh, :].reshape(Hh * Wh, Co)
        acc2 = acc2 + jnp.dot(patch.astype(jnp.bfloat16), w2_ref[k],
                              preferred_element_type=jnp.float32)

    o_ref[0] = acc2.reshape(Hh, Wh, Co)


# ---------------------------------------------------------------------------
# pallas_call wrappers
# ---------------------------------------------------------------------------
def _compiler_params():
    return pltpu.CompilerParams(dimension_semantics=("parallel",),
                                vmem_limit_bytes=VMEM_LIMIT)


def _norm_bias_relu(xp, b1, *, cip):
    n, h, w, _ = xp.shape
    return pl.pallas_call(
        functools.partial(_norm_relu_kernel, C=cip),
        out_shape=jax.ShapeDtypeStruct((n, h, w, cip), jnp.float32),
        grid=(n,),
        in_specs=[pl.BlockSpec((1, h, w, cip), lambda i: (i, 0, 0, 0)),
                  pl.BlockSpec((1, cip), lambda i: (0, 0))],
        out_specs=pl.BlockSpec((1, h, w, cip), lambda i: (i, 0, 0, 0)),
        compiler_params=_compiler_params(),
    )(xp, b1)


def _fused_block_s1(xp, b1, w1, b2, w2, ws, *, cip, cop, equal):
    n, h, w, _ = xp.shape
    kernel = functools.partial(_block_s1_kernel, H=h, W=w, Ci=cip, Co=cop,
                               equal=equal)
    in_specs = [
        pl.BlockSpec((1, h, w, cip), lambda i: (i, 0, 0, 0)),
        pl.BlockSpec((1, cip), lambda i: (0, 0)),
        pl.BlockSpec((9, cip, cop), lambda i: (0, 0, 0)),
        pl.BlockSpec((1, cop), lambda i: (0, 0)),
        pl.BlockSpec((9, cop, cop), lambda i: (0, 0, 0)),
    ]
    args = [xp, b1, w1, b2, w2]
    if not equal:
        in_specs.append(pl.BlockSpec((cip, cop), lambda i: (0, 0)))
        args.append(ws)
    return pl.pallas_call(
        kernel,
        out_shape=jax.ShapeDtypeStruct((n, h, w, cop), jnp.float32),
        grid=(n,),
        in_specs=in_specs,
        out_specs=pl.BlockSpec((1, h, w, cop), lambda i: (i, 0, 0, 0)),
        scratch_shapes=[pltpu.VMEM((h + 2, w + 2, cip), jnp.float32),
                        pltpu.VMEM((h + 2, w + 2, cop), jnp.float32)],
        compiler_params=_compiler_params(),
    )(*args)


def _fused_block_s2(xs, w1, b2, w2, ws, *, cop):
    n, hh, wh, c4 = xs.shape
    kernel = functools.partial(_block_s2_kernel, Hh=hh, Wh=wh, C4=c4, Co=cop)
    return pl.pallas_call(
        kernel,
        out_shape=jax.ShapeDtypeStruct((n, hh, wh, cop), jnp.float32),
        grid=(n,),
        in_specs=[pl.BlockSpec((1, hh, wh, c4), lambda i: (i, 0, 0, 0)),
                  pl.BlockSpec((4, c4, cop), lambda i: (0, 0, 0)),
                  pl.BlockSpec((1, cop), lambda i: (0, 0)),
                  pl.BlockSpec((9, cop, cop), lambda i: (0, 0, 0)),
                  pl.BlockSpec((c4, cop), lambda i: (0, 0))],
        out_specs=pl.BlockSpec((1, hh, wh, cop), lambda i: (i, 0, 0, 0)),
        scratch_shapes=[pltpu.VMEM((hh + 1, wh + 1, c4), jnp.float32),
                        pltpu.VMEM((hh + 2, wh + 2, cop), jnp.float32)],
        compiler_params=_compiler_params(),
    )(xs, w1, b2, w2, ws)


# ---------------------------------------------------------------------------
# Parameter packing (done once, not per forward)
# ---------------------------------------------------------------------------
def init_basic_block_params(key, in_planes, out_planes):
    """Random parameters in PyTorch layouts (as BasicBlock.__init__ would hold)."""
    ks = jax.random.split(key, 5)

    def conv_w(k, co, ci, ksz):
        std = (2.0 / (ci * ksz * ksz)) ** 0.5
        return jax.random.normal(k, (co, ci, ksz, ksz), jnp.float32) * std

    p = {
        'b1': jax.random.normal(ks[0], (in_planes,), jnp.float32) * 0.1,
        'w1': conv_w(ks[1], out_planes, in_planes, 3),
        'b2': jax.random.normal(ks[2], (out_planes,), jnp.float32) * 0.1,
        'w2': conv_w(ks[3], out_planes, out_planes, 3),
    }
    if in_planes != out_planes:
        p['ws'] = conv_w(ks[4], out_planes, in_planes, 1)
    return p


def pack_basic_block_params(p, in_planes, out_planes, stride):
    """Pre-transpose / tap-pack / lane-pad (to 128) the weights, bf16 for the MXU."""
    equal = in_planes == out_planes
    assert stride in (1, 2)
    assert not (equal and stride != 1), "equal-channel blocks use stride 1"
    cip = _round_up(in_planes, LANE)
    cop = _round_up(out_planes, LANE)

    w1 = np.asarray(p['w1'], np.float32)                    # (Co, Ci, 3, 3)
    w2 = np.asarray(p['w2'], np.float32)                    # (Co, Co, 3, 3)

    def tap_matrix(w, ci_p, co_p):                          # -> (9, ci_p, co_p)
        co, ci = w.shape[0], w.shape[1]
        out = np.zeros((9, ci_p, co_p), np.float32)
        for di in range(3):
            for dj in range(3):
                out[di * 3 + dj, :ci, :co] = w[:, :, di, dj].T
        return out

    if stride == 1:
        w1_k = tap_matrix(w1, cip, cop)
    else:
        # 3x3/stride-2 conv == 2x2/stride-1 conv on the space-to-depth input.
        # s2d channel group g = 2*p + q (row/col parity).  Tap (ti, tj) maps to
        # original tap di = {(0,1):0, (1,0):1, (1,1):2}[(ti, p)] (else zero),
        # likewise dj; one zero block row/col of padding at the top/left.
        inv = {(0, 1): 0, (1, 0): 1, (1, 1): 2}
        w1_k = np.zeros((4, 4 * cip, cop), np.float32)
        for ti in range(2):
            for tj in range(2):
                for pp in range(2):
                    for qq in range(2):
                        if (ti, pp) in inv and (tj, qq) in inv:
                            di, dj = inv[(ti, pp)], inv[(tj, qq)]
                            g = 2 * pp + qq
                            w1_k[ti * 2 + tj, g * cip:g * cip + in_planes,
                                 :out_planes] = w1[:, :, di, dj].T

    packed = {
        'cfg': dict(in_planes=in_planes, out_planes=out_planes, stride=stride,
                    cip=cip, cop=cop, equal=equal),
        'b1': jnp.asarray(np.pad(np.asarray(p['b1'], np.float32),
                                 (0, cip - in_planes)).reshape(1, cip)),
        'b2': jnp.asarray(np.pad(np.asarray(p['b2'], np.float32),
                                 (0, cop - out_planes)).reshape(1, cop)),
        'w1': jnp.asarray(w1_k, jnp.bfloat16),
        'w2': jnp.asarray(tap_matrix(w2, cop, cop), jnp.bfloat16),
    }
    if not equal:
        ws = np.asarray(p['ws'], np.float32)[:, :, 0, 0].T  # (Ci, Co)
        if stride == 1:
            ws_k = np.zeros((cip, cop), np.float32)
        else:
            ws_k = np.zeros((4 * cip, cop), np.float32)     # only parity group (0,0)
        ws_k[:in_planes, :out_planes] = ws
        packed['ws'] = jnp.asarray(ws_k, jnp.bfloat16)
    return packed


# ---------------------------------------------------------------------------
# Forward (matches BasicBlock.forward(step='forward'), drop_rate=0)
# ---------------------------------------------------------------------------
def basic_block_forward(packed, x_nchw):
    cfg = packed['cfg']
    ci, co, stride = cfg['in_planes'], cfg['out_planes'], cfg['stride']
    cip, cop, equal = cfg['cip'], cfg['cop'], cfg['equal']

    x = jnp.transpose(x_nchw, (0, 2, 3, 1)).astype(jnp.float32)   # NCHW -> NHWC
    n, h, w, _ = x.shape
    assert w % 8 == 0, "W must be a multiple of 8"
    xp = jnp.pad(x, ((0, 0), (0, 0), (0, 0), (0, cip - ci)))      # lane-dense channels

    if stride == 1:
        out = _fused_block_s1(xp, packed['b1'], packed['w1'], packed['b2'],
                              packed['w2'], packed.get('ws'),
                              cip=cip, cop=cop, equal=equal)
    else:
        assert h % 2 == 0 and w % 2 == 0 and (w // 2) % 8 == 0
        xn = _norm_bias_relu(xp, packed['b1'], cip=cip)
        hh, wh = h // 2, w // 2
        xs = xn.reshape(n, hh, 2, wh, 2, cip).transpose(0, 1, 3, 2, 4, 5)
        xs = xs.reshape(n, hh, wh, 4 * cip)                       # space-to-depth
        out = _fused_block_s2(xs, packed['w1'], packed['b2'], packed['w2'],
                              packed['ws'], cop=cop)

    out = out[..., :co]                                           # drop lane padding
    return jnp.transpose(out, (0, 3, 1, 2))                       # NHWC -> NCHW


# ---------------------------------------------------------------------------
# Pure-JAX reference (f32, XLA convs) for a correctness spot-check
# ---------------------------------------------------------------------------
def _reference_block(p, x_nchw, in_planes, out_planes, stride):
    def insnorm(v):
        m = v.mean(axis=(2, 3), keepdims=True)
        var = jnp.square(v - m).mean(axis=(2, 3), keepdims=True)
        return (v - m) * jax.lax.rsqrt(var + EPS)

    def conv(v, w, s, pad):
        return jax.lax.conv_general_dilated(
            v, w, window_strides=(s, s), padding=[(pad, pad), (pad, pad)],
            dimension_numbers=('NCHW', 'OIHW', 'NCHW'))

    equal = in_planes == out_planes
    xn = jax.nn.relu(insnorm(x_nchw) + p['b1'].reshape(1, -1, 1, 1))
    out = conv(xn, p['w1'], stride, 1)
    out = jax.nn.relu(insnorm(out) + p['b2'].reshape(1, -1, 1, 1))
    out = conv(out, p['w2'], 1, 1)
    if equal:
        return x_nchw + out
    return conv(xn, p['ws'], stride, 0) + out


# ---------------------------------------------------------------------------
if __name__ == "__main__":
    key = jax.random.PRNGKey(0)
    configs = [
        # (in_planes, out_planes, stride)
        (16, 16, 1),   # equal-channel block (identity residual), fully fused
        (16, 32, 1),   # 1x1 conv shortcut, stride 1, fully fused
        (16, 32, 2),   # 1x1 conv shortcut, stride 2 (space-to-depth kernel)
    ]
    H = W = 16
    N = 2
    for idx, (ci, co, st) in enumerate(configs):
        kp, kx = jax.random.split(jax.random.fold_in(key, idx))
        params = init_basic_block_params(kp, ci, co)
        packed = pack_basic_block_params(params, ci, co, st)
        x = jax.random.normal(kx, (N, ci, H, W), jnp.float32)     # NCHW like PyTorch

        fwd = jax.jit(lambda xx, _p=packed: basic_block_forward(_p, xx))
        out = jax.block_until_ready(fwd(x))

        assert out.shape == (N, co, H // st, W // st)
        assert out.dtype == jnp.float32

        ref = jax.block_until_ready(_reference_block(params, x, ci, co, st))
        # bf16 MXU inputs with f32 accumulation -> loose tolerance vs f32 reference.
        np.testing.assert_allclose(np.asarray(out), np.asarray(ref),
                                   rtol=0.05, atol=0.2)
    print("KERNEL_OK")
</pallas_src>

<mosaic_0001>
module attributes {stable_mosaic.version = 11 : i64} {
  func.func @_block_s1_kernel(%arg0: i32, %arg1: memref<1x16x16x128xf32, #tpu.memory_space<vmem>>, %arg2: memref<1x128xf32, #tpu.memory_space<vmem>>, %arg3: memref<9x128x128xbf16, #tpu.memory_space<vmem>>, %arg4: memref<1x128xf32, #tpu.memory_space<vmem>>, %arg5: memref<9x128x128xbf16, #tpu.memory_space<vmem>>, %arg6: memref<1x16x16x128xf32, #tpu.memory_space<vmem>>, %arg7: memref<18x18x128xf32, #tpu.memory_space<vmem>>, %arg8: memref<18x18x128xf32, #tpu.memory_space<vmem>>) attributes {dimension_semantics = [#tpu.dimension_semantics<parallel>], iteration_bounds = array<i64: 2>, scalar_prefetch = 0 : i64, scratch_operands = 2 : i64, tpu.core_type = #tpu.core_type<tc>, window_params = [{transform_indices = @transform_0, window_bounds = array<i64: 1, 16, 16, 128>}, {pipeline_mode = #tpu.pipeline_mode<synchronous>, transform_indices = @transform_1, window_bounds = array<i64: 1, 128>}, {pipeline_mode = #tpu.pipeline_mode<synchronous>, transform_indices = @transform_2, window_bounds = array<i64: 9, 128, 128>}, {pipeline_mode = #tpu.pipeline_mode<synchronous>, transform_indices = @transform_3, window_bounds = array<i64: 1, 128>}, {pipeline_mode = #tpu.pipeline_mode<synchronous>, transform_indices = @transform_4, window_bounds = array<i64: 9, 128, 128>}, {transform_indices = @transform_5, window_bounds = array<i64: 1, 16, 16, 128>}]} {
    %c0 = arith.constant 0 : index
    %c0_0 = arith.constant 0 : index
    %c0_1 = arith.constant 0 : index
    %c0_2 = arith.constant 0 : index
    %0 = vector.load %arg1[%c0, %c0_0, %c0_1, %c0_2] : memref<1x16x16x128xf32, #tpu.memory_space<vmem>>, vector<1x16x16x128xf32>
    %1 = vector.shape_cast %0 : vector<1x16x16x128xf32> to vector<16x16x128xf32>
    %cst = arith.constant dense<0.000000e+00> : vector<128xf32>
    %2 = vector.multi_reduction <add>, %1, %cst [0, 1] : vector<16x16x128xf32> to vector<128xf32>
    %3 = vector.shape_cast %2 : vector<128xf32> to vector<1x1x128xf32>
    %cst_3 = arith.constant 2.560000e+02 : f32
    %4 = vector.broadcast %cst_3 : f32 to vector<1x1x128xf32>
    %5 = arith.divf %3, %4 : vector<1x1x128xf32>
    %6 = vector.broadcast %5 : vector<1x1x128xf32> to vector<16x16x128xf32>
    %7 = arith.subf %1, %6 : vector<16x16x128xf32>
    %8 = arith.mulf %7, %7 : vector<16x16x128xf32>
    %cst_4 = arith.constant dense<0.000000e+00> : vector<128xf32>
    %9 = vector.multi_reduction <add>, %8, %cst_4 [0, 1] : vector<16x16x128xf32> to vector<128xf32>
    %10 = vector.shape_cast %9 : vector<128xf32> to vector<1x1x128xf32>
    %cst_5 = arith.constant 2.560000e+02 : f32
    %11 = vector.broadcast %cst_5 : f32 to vector<1x1x128xf32>
    %12 = arith.divf %10, %11 : vector<1x1x128xf32>
    %13 = vector.broadcast %5 : vector<1x1x128xf32> to vector<16x16x128xf32>
    %14 = arith.subf %1, %13 : vector<16x16x128xf32>
    %cst_6 = arith.constant 9.99999974E-6 : f32
    %15 = vector.broadcast %cst_6 : f32 to vector<1x1x128xf32>
    %16 = arith.addf %12, %15 : vector<1x1x128xf32>
    %17 = math.rsqrt %16 : vector<1x1x128xf32>
    %18 = vector.broadcast %17 : vector<1x1x128xf32> to vector<16x16x128xf32>
    %19 = arith.mulf %14, %18 : vector<16x16x128xf32>
    %c0_7 = arith.constant 0 : index
    %c0_8 = arith.constant 0 : index
    %20 = vector.load %arg2[%c0_7, %c0_8] : memref<1x128xf32, #tpu.memory_space<vmem>>, vector<1x128xf32>
    %21 = vector.shape_cast %20 : vector<1x128xf32> to vector<1x1x128xf32>
    %22 = vector.broadcast %21 : vector<1x1x128xf32> to vector<16x16x128xf32>
    %23 = arith.addf %19, %22 : vector<16x16x128xf32>
    %cst_9 = arith.constant 0.000000e+00 : f32
    %24 = vector.broadcast %cst_9 : f32 to vector<16x16x128xf32>
    %25 = arith.maximumf %23, %24 : vector<16x16x128xf32>
    %26 = vector.shape_cast %1 : vector<16x16x128xf32> to vector<256x128xf32>
    %cst_10 = arith.constant 0.000000e+00 : f32
    %27 = vector.broadcast %cst_10 : f32 to vector<18x18x128xf32>
    %c0_11 = arith.constant 0 : index
    %c0_12 = arith.constant 0 : index
    %c0_13 = arith.constant 0 : index
    %28 = vector.load %arg7[%c0_11, %c0_12, %c0_13] : memref<18x18x128xf32, #tpu.memory_space<vmem>>, vector<18x18x128xf32>
    tpu.vector_store %arg7[%c0_11, %c0_12, %c0_13], %27 {strides = array<i32>} : memref<18x18x128xf32, #tpu.memory_space<vmem>>, vector<18x18x128xf32>,
    %c1 = arith.constant 1 : index
    %c1_14 = arith.constant 1 : index
    %c0_15 = arith.constant 0 : index
    %29 = vector.load %arg7[%c1, %c1_14, %c0_15] : memref<18x18x128xf32, #tpu.memory_space<vmem>>, vector<16x16x128xf32>
    tpu.vector_store %arg7[%c1, %c1_14, %c0_15], %25 {strides = array<i32>} : memref<18x18x128xf32, #tpu.memory_space<vmem>>, vector<16x16x128xf32>,
    %cst_16 = arith.constant 0.000000e+00 : f32
    %30 = vector.broadcast %cst_16 : f32 to vector<256x128xf32>
    %c0_17 = arith.constant 0 : index
    %c0_18 = arith.constant 0 : index
    %c0_19 = arith.constant 0 : index
    %31 = vector.load %arg7[%c0_17, %c0_18, %c0_19] : memref<18x18x128xf32, #tpu.memory_space<vmem>>, vector<16x16x128xf32>
    %32 = vector.shape_cast %31 : vector<16x16x128xf32> to vector<256x128xf32>
    %33 = arith.truncf %32 : vector<256x128xf32> to vector<256x128xbf16>
    %c0_20 = arith.constant 0 : index
    %c0_21 = arith.constant 0 : index
    %c0_22 = arith.constant 0 : index
    %34 = vector.load %arg3[%c0_20, %c0_21, %c0_22] : memref<9x128x128xbf16, #tpu.memory_space<vmem>>, vector<1x128x128xbf16>
    %35 = vector.shape_cast %34 : vector<1x128x128xbf16> to vector<128x128xbf16>
    %cst_23 = arith.constant dense<0.000000e+00> : vector<256x128xf32>
    %36 = tpu.matmul %33, %35, %cst_23 {dimension_numbers = #tpu.dot_dimension_numbers<[1], [0], [0], [1], [0, 0, 1, 1], [], []>} : vector<256x128xbf16>, vector<128x128xbf16>, vector<256x128xf32> -> vector<256x128xf32>
    %37 = arith.addf %30, %36 : vector<256x128xf32>
    %c0_24 = arith.constant 0 : index
    %c1_25 = arith.constant 1 : index
    %c0_26 = arith.constant 0 : index
    %38 = vector.load %arg7[%c0_24, %c1_25, %c0_26] : memref<18x18x128xf32, #tpu.memory_space<vmem>>, vector<16x16x128xf32>
    %39 = vector.shape_cast %38 : vector<16x16x128xf32> to vector<256x128xf32>
    %40 = arith.truncf %39 : vector<256x128xf32> to vector<256x128xbf16>
    %c1_27 = arith.constant 1 : index
    %c0_28 = arith.constant 0 : index
    %c0_29 = arith.constant 0 : index
    %41 = vector.load %arg3[%c1_27, %c0_28, %c0_29] : memref<9x128x128xbf16, #tpu.memory_space<vmem>>, vector<1x128x128xbf16>
    %42 = vector.shape_cast %41 : vector<1x128x128xbf16> to vector<128x128xbf16>
    %cst_30 = arith.constant dense<0.000000e+00> : vector<256x128xf32>
    %43 = tpu.matmul %40, %42, %cst_30 {dimension_numbers = #tpu.dot_dimension_numbers<[1], [0], [0], [1], [0, 0, 1, 1], [], []>} : vector<256x128xbf16>, vector<128x128xbf16>, vector<256x128xf32> -> vector<256x128xf32>
    %44 = arith.addf %37, %43 : vector<256x128xf32>
    %c0_31 = arith.constant 0 : index
    %c2 = arith.constant 2 : index
    %c0_32 = arith.constant 0 : index
    %45 = vector.load %arg7[%c0_31, %c2, %c0_32] : memref<18x18x128xf32, #tpu.memory_space<vmem>>, vector<16x16x128xf32>
    %46 = vector.shape_cast %45 : vector<16x16x128xf32> to vector<256x128xf32>
    %47 = arith.truncf %46 : vector<256x128xf32> to vector<256x128xbf16>
    %c2_33 = arith.constant 2 : index
    %c0_34 = arith.constant 0 : index
    %c0_35 = arith.constant 0 : index
    %48 = vector.load %arg3[%c2_33, %c0_34, %c0_35] : memref<9x128x128xbf16, #tpu.memory_space<vmem>>, vector<1x128x128xbf16>
    %49 = vector.shape_cast %48 : vector<1x128x128xbf16> to vector<128x128xbf16>
    %cst_36 = arith.constant dense<0.000000e+00> : vector<256x128xf32>
    %50 = tpu.matmul %47, %49, %cst_36 {dimension_numbers = #tpu.dot_dimension_numbers<[1], [0], [0], [1], [0, 0, 1, 1], [], []>} : vector<256x128xbf16>, vector<128x128xbf16>, vector<256x128xf32> -> vector<256x128xf32>
    %51 = arith.addf %44, %50 : vector<256x128xf32>
    %c1_37 = arith.constant 1 : index
    %c0_38 = arith.constant 0 : index
    %c0_39 = arith.constant 0 : index
    %52 = vector.load %arg7[%c1_37, %c0_38, %c0_39] : memref<18x18x128xf32, #tpu.memory_space<vmem>>, vector<16x16x128xf32>
    %53 = vector.shape_cast %52 : vector<16x16x128xf32> to vector<256x128xf32>
    %54 = arith.truncf %53 : vector<256x128xf32> to vector<256x128xbf16>
    %c3 = arith.constant 3 : index
    %c0_40 = arith.constant 0 : index
    %c0_41 = arith.constant 0 : index
    %55 = vector.load %arg3[%c3, %c0_40, %c0_41] : memref<9x128x128xbf16, #tpu.memory_space<vmem>>, vector<1x128x128xbf16>
    %56 = vector.shape_cast %55 : vector<1x128x128xbf16> to vector<128x128xbf16>
    %cst_42 = arith.constant dense<0.000000e+00> : vector<256x128xf32>
    %57 = tpu.matmul %54, %56, %cst_42 {dimension_numbers = #tpu.dot_dimension_numbers<[1], [0], [0], [1], [0, 0, 1, 1], [], []>} : vector<256x128xbf16>, vector<128x128xbf16>, vector<256x128xf32> -> vector<256x128xf32>
    %58 = arith.addf %51, %57 : vector<256x128xf32>
    %c1_43 = arith.constant 1 : index
    %c1_44 = arith.constant 1 : index
    %c0_45 = arith.constant 0 : index
    %59 = vector.load %arg7[%c1_43, %c1_44, %c0_45] : memref<18x18x128xf32, #tpu.memory_space<vmem>>, vector<16x16x128xf32>
    %60 = vector.shape_cast %59 : vector<16x16x128xf32> to vector<256x128xf32>
    %61 = arith.truncf %60 : vector<256x128xf32> to vector<256x128xbf16>
    %c4 = arith.constant 4 : index
    %c0_46 = arith.constant 0 : index
    %c0_47 = arith.constant 0 : index
    %62 = vector.load %arg3[%c4, %c0_46, %c0_47] : memref<9x128x128xbf16, #tpu.memory_space<vmem>>, vector<1x128x128xbf16>
    %63 = vector.shape_cast %62 : vector<1x128x128xbf16> to vector<128x128xbf16>
    %cst_48 = arith.constant dense<0.000000e+00> : vector<256x128xf32>
    %64 = tpu.matmul %61, %63, %cst_48 {dimension_numbers = #tpu.dot_dimension_numbers<[1], [0], [0], [1], [0, 0, 1, 1], [], []>} : vector<256x128xbf16>, vector<128x128xbf16>, vector<256x128xf32> -> vector<256x128xf32>
    %65 = arith.addf %58, %64 : vector<256x128xf32>
    %c1_49 = arith.constant 1 : index
    %c2_50 = arith.constant 2 : index
    %c0_51 = arith.constant 0 : index
    %66 = vector.load %arg7[%c1_49, %c2_50, %c0_51] : memref<18x18x128xf32, #tpu.memory_space<vmem>>, vector<16x16x128xf32>
    %67 = vector.shape_cast %66 : vector<16x16x128xf32> to vector<256x128xf32>
    %68 = arith.truncf %67 : vector<256x128xf32> to vector<256x128xbf16>
    %c5 = arith.constant 5 : index
    %c0_52 = arith.constant 0 : index
    %c0_53 = arith.constant 0 : index
    %69 = vector.load %arg3[%c5, %c0_52, %c0_53] : memref<9x128x128xbf16, #tpu.memory_space<vmem>>, vector<1x128x128xbf16>
    %70 = vector.shape_cast %69 : vector<1x128x128xbf16> to vector<128x128xbf16>
    %cst_54 = arith.constant dense<0.000000e+00> : vector<256x128xf32>
    %71 = tpu.matmul %68, %70, %cst_54 {dimension_numbers = #tpu.dot_dimension_numbers<[1], [0], [0], [1], [0, 0, 1, 1], [], []>} : vector<256x128xbf16>, vector<128x128xbf16>, vector<256x128xf32> -> vector<256x128xf32>
    %72 = arith.addf %65, %71 : vector<256x128xf32>
    %c2_55 = arith.constant 2 : index
    %c0_56 = arith.constant 0 : index
    %c0_57 = arith.constant 0 : index
    %73 = vector.load %arg7[%c2_55, %c0_56, %c0_57] : memref<18x18x128xf32, #tpu.memory_space<vmem>>, vector<16x16x128xf32>
    %74 = vector.shape_cast %73 : vector<16x16x128xf32> to vector<256x128xf32>
    %75 = arith.truncf %74 : vector<256x128xf32> to vector<256x128xbf16>
    %c6 = arith.constant 6 : index
    %c0_58 = arith.constant 0 : index
    %c0_59 = arith.constant 0 : index
    %76 = vector.load %arg3[%c6, %c0_58, %c0_59] : memref<9x128x128xbf16, #tpu.memory_space<vmem>>, vector<1x128x128xbf16>
    %77 = vector.shape_cast %76 : vector<1x128x128xbf16> to vector<128x128xbf16>
    %cst_60 = arith.constant dense<0.000000e+00> : vector<256x128xf32>
    %78 = tpu.matmul %75, %77, %cst_60 {dimension_numbers = #tpu.dot_dimension_numbers<[1], [0], [0], [1], [0, 0, 1, 1], [], []>} : vector<256x128xbf16>, vector<128x128xbf16>, vector<256x128xf32> -> vector<256x128xf32>
    %79 = arith.addf %72, %78 : vector<256x128xf32>
    %c2_61 = arith.constant 2 : index
    %c1_62 = arith.constant 1 : index
    %c0_63 = arith.constant 0 : index
    %80 = vector.load %arg7[%c2_61, %c1_62, %c0_63] : memref<18x18x128xf32, #tpu.memory_space<vmem>>, vector<16x16x128xf32>
    %81 = vector.shape_cast %80 : vector<16x16x128xf32> to vector<256x128xf32>
    %82 = arith.truncf %81 : vector<256x128xf32> to vector<256x128xbf16>
    %c7 = arith.constant 7 : index
    %c0_64 = arith.constant 0 : index
    %c0_65 = arith.constant 0 : index
    %83 = vector.load %arg3[%c7, %c0_64, %c0_65] : memref<9x128x128xbf16, #tpu.memory_space<vmem>>, vector<1x128x128xbf16>
    %84 = vector.shape_cast %83 : vector<1x128x128xbf16> to vector<128x128xbf16>
    %cst_66 = arith.constant dense<0.000000e+00> : vector<256x128xf32>
    %85 = tpu.matmul %82, %84, %cst_66 {dimension_numbers = #tpu.dot_dimension_numbers<[1], [0], [0], [1], [0, 0, 1, 1], [], []>} : vector<256x128xbf16>, vector<128x128xbf16>, vector<256x128xf32> -> vector<256x128xf32>
    %86 = arith.addf %79, %85 : vector<256x128xf32>
    %c2_67 = arith.constant 2 : index
    %c2_68 = arith.constant 2 : index
    %c0_69 = arith.constant 0 : index
    %87 = vector.load %arg7[%c2_67, %c2_68, %c0_69] : memref<18x18x128xf32, #tpu.memory_space<vmem>>, vector<16x16x128xf32>
    %88 = vector.shape_cast %87 : vector<16x16x128xf32> to vector<256x128xf32>
    %89 = arith.truncf %88 : vector<256x128xf32> to vector<256x128xbf16>
    %c8 = arith.constant 8 : index
    %c0_70 = arith.constant 0 : index
    %c0_71 = arith.constant 0 : index
    %90 = vector.load %arg3[%c8, %c0_70, %c0_71] : memref<9x128x128xbf16, #tpu.memory_space<vmem>>, vector<1x128x128xbf16>
    %91 = vector.shape_cast %90 : vector<1x128x128xbf16> to vector<128x128xbf16>
    %cst_72 = arith.constant dense<0.000000e+00> : vector<256x128xf32>
    %92 = tpu.matmul %89, %91, %cst_72 {dimension_numbers = #tpu.dot_dimension_numbers<[1], [0], [0], [1], [0, 0, 1, 1], [], []>} : vector<256x128xbf16>, vector<128x128xbf16>, vector<256x128xf32> -> vector<256x128xf32>
    %93 = arith.addf %86, %92 : vector<256x128xf32>
    %cst_73 = arith.constant dense<0.000000e+00> : vector<128xf32>
    %94 = vector.multi_reduction <add>, %93, %cst_73 [0] : vector<256x128xf32> to vector<128xf32>
    %95 = vector.shape_cast %94 : vector<128xf32> to vector<1x128xf32>
    %cst_74 = arith.constant 2.560000e+02 : f32
    %96 = vector.broadcast %cst_74 : f32 to vector<1x128xf32>
    %97 = arith.divf %95, %96 : vector<1x128xf32>
    %98 = vector.broadcast %97 : vector<1x128xf32> to vector<256x128xf32>
    %99 = arith.subf %93, %98 : vector<256x128xf32>
    %100 = arith.mulf %99, %99 : vector<256x128xf32>
    %cst_75 = arith.constant dense<0.000000e+00> : vector<128xf32>
    %101 = vector.multi_reduction <add>, %100, %cst_75 [0] : vector<256x128xf32> to vector<128xf32>
    %102 = vector.shape_cast %101 : vector<128xf32> to vector<1x128xf32>
    %cst_76 = arith.constant 2.560000e+02 : f32
    %103 = vector.broadcast %cst_76 : f32 to vector<1x128xf32>
    %104 = arith.divf %102, %103 : vector<1x128xf32>
    %105 = vector.broadcast %97 : vector<1x128xf32> to vector<256x128xf32>
    %106 = arith.subf %93, %105 : vector<256x128xf32>
    %cst_77 = arith.constant 9.99999974E-6 : f32
    %107 = vector.broadcast %cst_77 : f32 to vector<1x128xf32>
    %108 = arith.addf %104, %107 : vector<1x128xf32>
    %109 = math.rsqrt %108 : vector<1x128xf32>
    %110 = vector.broadcast %109 : vector<1x128xf32> to vector<256x128xf32>
    %111 = arith.mulf %106, %110 : vector<256x128xf32>
    %c0_78 = arith.constant 0 : index
    %c0_79 = arith.constant 0 : index
    %112 = vector.load %arg4[%c0_78, %c0_79] : memref<1x128xf32, #tpu.memory_space<vmem>>, vector<1x128xf32>
    %113 = vector.broadcast %112 : vector<1x128xf32> to vector<256x128xf32>
    %114 = arith.addf %111, %113 : vector<256x128xf32>
    %cst_80 = arith.constant 0.000000e+00 : f32
    %115 = vector.broadcast %cst_80 : f32 to vector<256x128xf32>
    %116 = arith.maximumf %114, %115 : vector<256x128xf32>
    %cst_81 = arith.constant 0.000000e+00 : f32
    %117 = vector.broadcast %cst_81 : f32 to vector<18x18x128xf32>
    %c0_82 = arith.constant 0 : index
    %c0_83 = arith.constant 0 : index
    %c0_84 = arith.constant 0 : index
    %118 = vector.load %arg8[%c0_82, %c0_83, %c0_84] : memref<18x18x128xf32, #tpu.memory_space<vmem>>, vector<18x18x128xf32>
    tpu.vector_store %arg8[%c0_82, %c0_83, %c0_84], %117 {strides = array<i32>} : memref<18x18x128xf32, #tpu.memory_space<vmem>>, vector<18x18x128xf32>,
    %119 = vector.shape_cast %116 : vector<256x128xf32> to vector<16x16x128xf32>
    %c1_85 = arith.constant 1 : index
    %c1_86 = arith.constant 1 : index
    %c0_87 = arith.constant 0 : index
    %120 = vector.load %arg8[%c1_85, %c1_86, %c0_87] : memref<18x18x128xf32, #tpu.memory_space<vmem>>, vector<16x16x128xf32>
    tpu.vector_store %arg8[%c1_85, %c1_86, %c0_87], %119 {strides = array<i32>} : memref<18x18x128xf32, #tpu.memory_space<vmem>>, vector<16x16x128xf32>,
    %c0_88 = arith.constant 0 : index
    %c0_89 = arith.constant 0 : index
    %c0_90 = arith.constant 0 : index
    %121 = vector.load %arg8[%c0_88, %c0_89, %c0_90] : memref<18x18x128xf32, #tpu.memory_space<vmem>>, vector<16x16x128xf32>
    %122 = vector.shape_cast %121 : vector<16x16x128xf32> to vector<256x128xf32>
    %123 = arith.truncf %122 : vector<256x128xf32> to vector<256x128xbf16>
    %c0_91 = arith.constant 0 : index
    %c0_92 = arith.constant 0 : index
    %c0_93 = arith.constant 0 : index
    %124 = vector.load %arg5[%c0_91, %c0_92, %c0_93] : memref<9x128x128xbf16, #tpu.memory_space<vmem>>, vector<1x128x128xbf16>
    %125 = vector.shape_cast %124 : vector<1x128x128xbf16> to vector<128x128xbf16>
    %cst_94 = arith.constant dense<0.000000e+00> : vector<256x128xf32>
    %126 = tpu.matmul %123, %125, %cst_94 {dimension_numbers = #tpu.dot_dimension_numbers<[1], [0], [0], [1], [0, 0, 1, 1], [], []>} : vector<256x128xbf16>, vector<128x128xbf16>, vector<256x128xf32> -> vector<256x128xf32>
    %127 = arith.addf %26, %126 : vector<256x128xf32>
    %c0_95 = arith.constant 0 : index
    %c1_96 = arith.constant 1 : index
    %c0_97 = arith.constant 0 : index
    %128 = vector.load %arg8[%c0_95, %c1_96, %c0_97] : memref<18x18x128xf32, #tpu.memory_space<vmem>>, vector<16x16x128xf32>
    %129 = vector.shape_cast %128 : vector<16x16x128xf32> to vector<256x128xf32>
    %130 = arith.truncf %129 : vector<256x128xf32> to vector<256x128xbf16>
    %c1_98 = arith.constant 1 : index
    %c0_99 = arith.constant 0 : index
    %c0_100 = arith.constant 0 : index
    %131 = vector.load %arg5[%c1_98, %c0_99, %c0_100] : memref<9x128x128xbf16, #tpu.memory_space<vmem>>, vector<1x128x128xbf16>
    %132 = vector.shape_cast %131 : vector<1x128x128xbf16> to vector<128x128xbf16>
    %cst_101 = arith.constant dense<0.000000e+00> : vector<256x128xf32>
    %133 = tpu.matmul %130, %132, %cst_101 {dimension_numbers = #tpu.dot_dimension_numbers<[1], [0], [0], [1], [0, 0, 1, 1], [], []>} : vector<256x128xbf16>, vector<128x128xbf16>, vector<256x128xf32> -> vector<256x128xf32>
    %134 = arith.addf %127, %133 : vector<256x128xf32>
    %c0_102 = arith.constant 0 : index
    %c2_103 = arith.constant 2 : index
    %c0_104 = arith.constant 0 : index
    %135 = vector.load %arg8[%c0_102, %c2_103, %c0_104] : memref<18x18x128xf32, #tpu.memory_space<vmem>>, vector<16x16x128xf32>
    %136 = vector.shape_cast %135 : vector<16x16x128xf32> to vector<256x128xf32>
    %137 = arith.truncf %136 : vector<256x128xf32> to vector<256x128xbf16>
    %c2_105 = arith.constant 2 : index
    %c0_106 = arith.constant 0 : index
    %c0_107 = arith.constant 0 : index
    %138 = vector.load %arg5[%c2_105, %c0_106, %c0_107] : memref<9x128x128xbf16, #tpu.memory_space<vmem>>, vector<1x128x128xbf16>
    %139 = vector.shape_cast %138 : vector<1x128x128xbf16> to vector<128x128xbf16>
    %cst_108 = arith.constant dense<0.000000e+00> : vector<256x128xf32>
    %140 = tpu.matmul %137, %139, %cst_108 {dimension_numbers = #tpu.dot_dimension_numbers<[1], [0], [0], [1], [0, 0, 1, 1], [], []>} : vector<256x128xbf16>, vector<128x128xbf16>, vector<256x128xf32> -> vector<256x128xf32>
    %141 = arith.addf %134, %140 : vector<256x128xf32>
    %c1_109 = arith.constant 1 : index
    %c0_110 = arith.constant 0 : index
    %c0_111 = arith.constant 0 : index
    %142 = vector.load %arg8[%c1_109, %c0_110, %c0_111] : memref<18x18x128xf32, #tpu.memory_space<vmem>>, vector<16x16x128xf32>
    %143 = vector.shape_cast %142 : vector<16x16x128xf32> to vector<256x128xf32>
    %144 = arith.truncf %143 : vector<256x128xf32> to vector<256x128xbf16>
    %c3_112 = arith.constant 3 : index
    %c0_113 = arith.constant 0 : index
    %c0_114 = arith.constant 0 : index
    %145 = vector.load %arg5[%c3_112, %c0_113, %c0_114] : memref<9x128x128xbf16, #tpu.memory_space<vmem>>, vector<1x128x128xbf16>
    %146 = vector.shape_cast %145 : vector<1x128x128xbf16> to vector<128x128xbf16>
    %cst_115 = arith.constant dense<0.000000e+00> : vector<256x128xf32>
    %147 = tpu.matmul %144, %146, %cst_115 {dimension_numbers = #tpu.dot_dimension_numbers<[1], [0], [0], [1], [0, 0, 1, 1], [], []>} : vector<256x128xbf16>, vector<128x128xbf16>, vector<256x128xf32> -> vector<256x128xf32>
    %148 = arith.addf %141, %147 : vector<256x128xf32>
    %c1_116 = arith.constant 1 : index
    %c1_117 = arith.constant 1 : index
    %c0_118 = arith.constant 0 : index
    %149 = vector.load %arg8[%c1_116, %c1_117, %c0_118] : memref<18x18x128xf32, #tpu.memory_space<vmem>>, vector<16x16x128xf32>
    %150 = vector.shape_cast %149 : vector<16x16x128xf32> to vector<256x128xf32>
    %151 = arith.truncf %150 : vector<256x128xf32> to vector<256x128xbf16>
    %c4_119 = arith.constant 4 : index
    %c0_120 = arith.constant 0 : index
    %c0_121 = arith.constant 0 : index
    %152 = vector.load %arg5[%c4_119, %c0_120, %c0_121] : memref<9x128x128xbf16, #tpu.memory_space<vmem>>, vector<1x128x128xbf16>
    %153 = vector.shape_cast %152 : vector<1x128x128xbf16> to vector<128x128xbf16>
    %cst_122 = arith.constant dense<0.000000e+00> : vector<256x128xf32>
    %154 = tpu.matmul %151, %153, %cst_122 {dimension_numbers = #tpu.dot_dimension_numbers<[1], [0], [0], [1], [0, 0, 1, 1], [], []>} : vector<256x128xbf16>, vector<128x128xbf16>, vector<256x128xf32> -> vector<256x128xf32>
    %155 = arith.addf %148, %154 : vector<256x128xf32>
    %c1_123 = arith.constant 1 : index
    %c2_124 = arith.constant 2 : index
    %c0_125 = arith.constant 0 : index
    %156 = vector.load %arg8[%c1_123, %c2_124, %c0_125] : memref<18x18x128xf32, #tpu.memory_space<vmem>>, vector<16x16x128xf32>
    %157 = vector.shape_cast %156 : vector<16x16x128xf32> to vector<256x128xf32>
    %158 = arith.truncf %157 : vector<256x128xf32> to vector<256x128xbf16>
    %c5_126 = arith.constant 5 : index
    %c0_127 = arith.constant 0 : index
    %c0_128 = arith.constant 0 : index
    %159 = vector.load %arg5[%c5_126, %c0_127, %c0_128] : memref<9x128x128xbf16, #tpu.memory_space<vmem>>, vector<1x128x128xbf16>
    %160 = vector.shape_cast %159 : vector<1x128x128xbf16> to vector<128x128xbf16>
    %cst_129 = arith.constant dense<0.000000e+00> : vector<256x128xf32>
    %161 = tpu.matmul %158, %160, %cst_129 {dimension_numbers = #tpu.dot_dimension_numbers<[1], [0], [0], [1], [0, 0, 1, 1], [], []>} : vector<256x128xbf16>, vector<128x128xbf16>, vector<256x128xf32> -> vector<256x128xf32>
    %162 = arith.addf %155, %161 : vector<256x128xf32>
    %c2_130 = arith.constant 2 : index
    %c0_131 = arith.constant 0 : index
    %c0_132 = arith.constant 0 : index
    %163 = vector.load %arg8[%c2_130, %c0_131, %c0_132] : memref<18x18x128xf32, #tpu.memory_space<vmem>>, vector<16x16x128xf32>
    %164 = vector.shape_cast %163 : vector<16x16x128xf32> to vector<256x128xf32>
    %165 = arith.truncf %164 : vector<256x128xf32> to vector<256x128xbf16>
    %c6_133 = arith.constant 6 : index
    %c0_134 = arith.constant 0 : index
    %c0_135 = arith.constant 0 : index
    %166 = vector.load %arg5[%c6_133, %c0_134, %c0_135] : memref<9x128x128xbf16, #tpu.memory_space<vmem>>, vector<1x128x128xbf16>
    %167 = vector.shape_cast %166 : vector<1x128x128xbf16> to vector<128x128xbf16>
    %cst_136 = arith.constant dense<0.000000e+00> : vector<256x128xf32>
    %168 = tpu.matmul %165, %167, %cst_136 {dimension_numbers = #tpu.dot_dimension_numbers<[1], [0], [0], [1], [0, 0, 1, 1], [], []>} : vector<256x128xbf16>, vector<128x128xbf16>, vector<256x128xf32> -> vector<256x128xf32>
    %169 = arith.addf %162, %168 : vector<256x128xf32>
    %c2_137 = arith.constant 2 : index
    %c1_138 = arith.constant 1 : index
    %c0_139 = arith.constant 0 : index
    %170 = vector.load %arg8[%c2_137, %c1_138, %c0_139] : memref<18x18x128xf32, #tpu.memory_space<vmem>>, vector<16x16x128xf32>
    %171 = vector.shape_cast %170 : vector<16x16x128xf32> to vector<256x128xf32>
    %172 = arith.truncf %171 : vector<256x128xf32> to vector<256x128xbf16>
    %c7_140 = arith.constant 7 : index
    %c0_141 = arith.constant 0 : index
    %c0_142 = arith.constant 0 : index
    %173 = vector.load %arg5[%c7_140, %c0_141, %c0_142] : memref<9x128x128xbf16, #tpu.memory_space<vmem>>, vector<1x128x128xbf16>
    %174 = vector.shape_cast %173 : vector<1x128x128xbf16> to vector<128x128xbf16>
    %cst_143 = arith.constant dense<0.000000e+00> : vector<256x128xf32>
    %175 = tpu.matmul %172, %174, %cst_143 {dimension_numbers = #tpu.dot_dimension_numbers<[1], [0], [0], [1], [0, 0, 1, 1], [], []>} : vector<256x128xbf16>, vector<128x128xbf16>, vector<256x128xf32> -> vector<256x128xf32>
    %176 = arith.addf %169, %175 : vector<256x128xf32>
    %c2_144 = arith.constant 2 : index
    %c2_145 = arith.constant 2 : index
    %c0_146 = arith.constant 0 : index
    %177 = vector.load %arg8[%c2_144, %c2_145, %c0_146] : memref<18x18x128xf32, #tpu.memory_space<vmem>>, vector<16x16x128xf32>
    %178 = vector.shape_cast %177 : vector<16x16x128xf32> to vector<256x128xf32>
    %179 = arith.truncf %178 : vector<256x128xf32> to vector<256x128xbf16>
    %c8_147 = arith.constant 8 : index
    %c0_148 = arith.constant 0 : index
    %c0_149 = arith.constant 0 : index
    %180 = vector.load %arg5[%c8_147, %c0_148, %c0_149] : memref<9x128x128xbf16, #tpu.memory_space<vmem>>, vector<1x128x128xbf16>
    %181 = vector.shape_cast %180 : vector<1x128x128xbf16> to vector<128x128xbf16>
    %cst_150 = arith.constant dense<0.000000e+00> : vector<256x128xf32>
    %182 = tpu.matmul %179, %181, %cst_150 {dimension_numbers = #tpu.dot_dimension_numbers<[1], [0], [0], [1], [0, 0, 1, 1], [], []>} : vector<256x128xbf16>, vector<128x128xbf16>, vector<256x128xf32> -> vector<256x128xf32>
    %183 = arith.addf %176, %182 : vector<256x128xf32>
    %184 = vector.shape_cast %183 : vector<256x128xf32> to vector<16x16x128xf32>
    %c0_151 = arith.constant 0 : index
    %c0_152 = arith.constant 0 : index
    %c0_153 = arith.constant 0 : index
    %c0_154 = arith.constant 0 : index
    %185 = vector.load %arg6[%c0_151, %c0_152, %c0_153, %c0_154] : memref<1x16x16x128xf32, #tpu.memory_space<vmem>>, vector<1x16x16x128xf32>
    %186 = vector.shape_cast %185 : vector<1x16x16x128xf32> to vector<16x16x128xf32>
    %187 = vector.shape_cast %184 : vector<16x16x128xf32> to vector<1x16x16x128xf32>
    tpu.vector_store %arg6[%c0_151, %c0_152, %c0_153, %c0_154], %187 {strides = array<i32>} : memref<1x16x16x128xf32, #tpu.memory_space<vmem>>, vector<1x16x16x128xf32>,
    return
  }
  func.func @transform_0(%arg0: i32) -> (i32, i32, i32, i32) {
    %c0_i32 = arith.constant 0 : i32
    %c0_i32_0 = arith.constant 0 : i32
    %c0_i32_1 = arith.constant 0 : i32
    %c0_i32_2 = arith.constant 0 : i32
    return %arg0, %c0_i32, %c0_i32_0, %c0_i32_1 : i32, i32, i32, i32
  }
  func.func @transform_1(%arg0: i32) -> (i32, i32) {
    %c0_i32 = arith.constant 0 : i32
    %c0_i32_0 = arith.constant 0 : i32
    %c0_i32_1 = arith.constant 0 : i32
    return %c0_i32, %c0_i32_0 : i32, i32
  }
  func.func @transform_2(%arg0: i32) -> (i32, i32, i32) {
    %c0_i32 = arith.constant 0 : i32
    %c0_i32_0 = arith.constant 0 : i32
    %c0_i32_1 = arith.constant 0 : i32
    %c0_i32_2 = arith.constant 0 : i32
    return %c0_i32, %c0_i32_0, %c0_i32_1 : i32, i32, i32
  }
  func.func @transform_3(%arg0: i32) -> (i32, i32) {
    %c0_i32 = arith.constant 0 : i32
    %c0_i32_0 = arith.constant 0 : i32
    %c0_i32_1 = arith.constant 0 : i32
    return %c0_i32, %c0_i32_0 : i32, i32
  }
  func.func @transform_4(%arg0: i32) -> (i32, i32, i32) {
    %c0_i32 = arith.constant 0 : i32
    %c0_i32_0 = arith.constant 0 : i32
    %c0_i32_1 = arith.constant 0 : i32
    %c0_i32_2 = arith.constant 0 : i32
    return %c0_i32, %c0_i32_0, %c0_i32_1 : i32, i32, i32
  }
  func.func @transform_5(%arg0: i32) -> (i32, i32, i32, i32) {
    %c0_i32 = arith.constant 0 : i32
    %c0_i32_0 = arith.constant 0 : i32
    %c0_i32_1 = arith.constant 0 : i32
    %c0_i32_2 = arith.constant 0 : i32
    return %arg0, %c0_i32, %c0_i32_0, %c0_i32_1 : i32, i32, i32, i32
  }
}

</mosaic_0001>

<bundles_post_ra>
// kernel: _lambda_.1
= control target key start
LH: loop header
LB: loop body
LE: loop exit
PB: predicated region body
PF: predicated region fallthrough
CT: control target
= control target key end

     0   :  { %s8940_s18 = smov 0   ;;  %s10936_s0 = inlined_call_operand.vmem [shape: f32[2,16,16,128], index: 0, kind: input, shape index: {}]   ;;  %s10937_s1 = inlined_call_operand.vmem [shape: f32[1,128], index: 1, kind: input, shape index: {}]   ;;  %s10938_s2 = inlined_call_operand.vmem [shape: bf16[9,128,128], index: 2, kind: input, shape index: {}]   ;;  %s10939_s3 = inlined_call_operand.vmem [shape: f32[1,128], index: 3, kind: input, shape index: {}]   ;;  %s10940_s4 = inlined_call_operand.vmem [shape: bf16[9,128,128], index: 4, kind: input, shape index: {}]   ;;  %s10941_s5 = inlined_call_operand.vmem [shape: f32[2,16,16,128], index: 5, kind: output, shape index: {}]  }
   0x1 LB: > { %s6454_s19 = sadd.s32 4294967295, %s8907_s18   ;;  %p6458_p0 = scmp.ge.s32.totalorder %s8907_s18, 1  ;;  %s8907_s18 = sphi %s8940_s18, %s15_s18  }
   0x2   : > { %p187_p1 = scmp.lt.s32.totalorder %s8907_s18, 3 }
   0x4   : > { %p188_p2 = pnand %p6458_p0, %p187_p1 }
   0x5   : > { %v8951_v0 = vld [vmem:[%s10938_s2 + $0x40] sm:$0xff] (!%p188_p2)   ;;  %v8956_v1 = vld [vmem:[%s10938_s2 + $0x48] sm:$0xff] (!%p188_p2)   ;;  %v8909_v2 = vmov (!%p188_p2), 0.0   ;;  %p215_p3 = scmp.lt.s32.totalorder (!%p188_p2), %s6454_s19, 1  ;;  %v8720_v3 = vld [vmem:[%s10938_s2 + $0x50] sm:$0xff] (!%p188_p2)  }
   0x6   : > { %191 = sbr.rel (%p188_p2) target bundleno = 1910 (0x776), region = 40  ;;  %504 = vst [vmem:[#allocation2] sm:$0xff] (!%p188_p2), %v8909_v2  ;;  %505 = vst [vmem:[#allocation2 + $0x8] sm:$0xff] (!%p188_p2), %v8909_v2  ;;  %7301 = vmatprep.subr.bf16.mxu0 (!%p188_p2), %v8951_v0  ;;  %v8721_v4 = vld [vmem:[%s10938_s2 + $0x58] sm:$0xff] (!%p188_p2)   ;;  %v8722_v12 = vld [vmem:[%s10938_s2 + $0x60] sm:$0xff] (!%p188_p2)  }
   0x7   : > { %506 = vst [vmem:[#allocation2 + $0x10] sm:$0x3] (!%p188_p2), %v8909_v2  ;;  %507 = vst [vmem:[#allocation2 + $0x18] sm:$0xff] (!%p188_p2), %v8909_v2  ;;  %7302 = vmatpush3.bf16.msra.mxu0 (!%p188_p2), %v8951_v0  ;;  %v8723_v17 = vld [vmem:[%s10938_s2 + $0x68] sm:$0xff] (!%p188_p2)   ;;  %v8724_v21 = vld [vmem:[%s10938_s2 + $0x70] sm:$0xff] (!%p188_p2)  }
   0x8   : > { %508 = vst [vmem:[#allocation2 + $0x20] sm:$0xff] (!%p188_p2), %v8909_v2  ;;  %509 = vst [vmem:[#allocation2 + $0x28] sm:$0x3] (!%p188_p2), %v8909_v2  ;;  %7303 = vmatprep.subr.bf16.mxu0 (!%p188_p2), %v8956_v1  ;;  %v8725_v26 = vld [vmem:[%s10938_s2 + $0x78] sm:$0xff] (!%p188_p2)   ;;  %v9147_v31 = vld [vmem:[%s10938_s2] sm:$0xff] (!%p188_p2)  }
   0x9   : > { %510 = vst [vmem:[#allocation2 + $0x30] sm:$0xff] (!%p188_p2), %v8909_v2  ;;  %511 = vst [vmem:[#allocation2 + $0x38] sm:$0xff] (!%p188_p2), %v8909_v2 }
   0xa   : > { %512 = vst [vmem:[#allocation2 + $0x40] sm:$0x3] (!%p188_p2), %v8909_v2  ;;  %513 = vst [vmem:[#allocation2 + $0x48] sm:$0xff] (!%p188_p2), %v8909_v2 }
   0xb   : > { %514 = vst [vmem:[#allocation2 + $0x50] sm:$0xff] (!%p188_p2), %v8909_v2  ;;  %515 = vst [vmem:[#allocation2 + $0x58] sm:$0x3] (!%p188_p2), %v8909_v2  ;;  %7304 = vmatpush3.bf16.msra.mxu0 (!%p188_p2), %v8956_v1 }
   0xc   : > { %516 = vst [vmem:[#allocation2 + $0x60] sm:$0xff] (!%p188_p2), %v8909_v2  ;;  %517 = vst [vmem:[#allocation2 + $0x68] sm:$0xff] (!%p188_p2), %v8909_v2  ;;  %7305 = vmatprep.subr.bf16.mxu0 (!%p188_p2), %v8720_v3 }
   0xd   : > { %518 = vst [vmem:[#allocation2 + $0x70] sm:$0x3] %v8909_v2  ;;  %519 = vst [vmem:[#allocation2 + $0x78] sm:$0xff] %v8909_v2  ;;  %s10943_s19 = smov (!%p215_p3, %s6454_s19), 1  ;;  %v655_v5 = vld [vmem:[#allocation2 + $0x1] sm:$0xff] }
   0xe   : > { %520 = vst [vmem:[#allocation2 + $0x80] sm:$0xff] %v8909_v2  ;;  %521 = vst [vmem:[#allocation2 + $0x88] sm:$0x3] %v8909_v2  ;;  %s6867_s26 = sshll.u32 %s10943_s19, 8  ;;  %v656_v6 = vld [vmem:[#allocation2 + $0x9] sm:$0xff] }
   0xf   : > { %522 = vst [vmem:[#allocation2 + $0x90] sm:$0xff] %v8909_v2  ;;  %523 = vst [vmem:[#allocation2 + $0x98] sm:$0xff] %v8909_v2  ;;  %s9084_s29 = scalar_lea.vmem %s10936_s0, %s6867_s26  ;;  %v687_v7 = vpack.c.bf16 %v656_v6, %v655_v5  ;;  %7306 = vmatpush3.bf16.msra.mxu0 %v8720_v3  ;;  %s10867_s22 = scalar_lea.vmem %s10941_s5, %s6867_s26 }
  0x10   : > { %524 = vst [vmem:[#allocation2 + $0xa0] sm:$0x3] %v8909_v2  ;;  %525 = vst [vmem:[#allocation2 + $0xa8] sm:$0xff] %v8909_v2  ;;  %v9091_v8 = vld [vmem:[%s9084_s29] sm:$0xff]  ;;  %v9094_v9 = vld [vmem:[%s9084_s29 + $0x8] sm:$0xff]  ;;  %7307 = vmatprep.subr.bf16.mxu0 %v8721_v4 }
  0x11   : > { %526 = vst [vmem:[#allocation2 + $0xb0] sm:$0xff] %v8909_v2  ;;  %527 = vst [vmem:[#allocation2 + $0xb8] sm:$0x3] %v8909_v2  ;;  %v9097_v10 = vld [vmem:[%s9084_s29 + $0x10] sm:$0xff]  ;;  %7317 = vmatprep.mubr.bf16.mxu0 %v687_v7  ;;  %v258_v11 = vadd.f32 %v9094_v9, %v9091_v8  ;;  %v9105_v13 = vld [vmem:[%s9084_s29 + $0x18] sm:$0xff] }
  0x12   : > { %528 = vst [vmem:[#allocation2 + $0xc0] sm:$0xff] %v8909_v2  ;;  %529 = vst [vmem:[#allocation2 + $0xc8] sm:$0xff] %v8909_v2  ;;  %v9109_v15 = vld [vmem:[%s9084_s29 + $0x20] sm:$0xff]  ;;  %v9116_v18 = vld [vmem:[%s9084_s29 + $0x28] sm:$0xff] }
  0x13   : > { %530 = vst [vmem:[#allocation2 + $0xd0] sm:$0x3] %v8909_v2  ;;  %531 = vst [vmem:[#allocation2 + $0xd8] sm:$0xff] %v8909_v2  ;;  %v259_v14 = vadd.f32 %v258_v11, %v9097_v10  ;;  %7308 = vmatpush3.bf16.msra.mxu0 %v8721_v4  ;;  %v9120_v20 = vld [vmem:[%s9084_s29 + $0x30] sm:$0xff]  ;;  %v9126_v22 = vld [vmem:[%s9084_s29 + $0x38] sm:$0xff] }
  0x14   : > { %532 = vst [vmem:[#allocation2 + $0xe0] sm:$0xff] %v8909_v2  ;;  %533 = vst [vmem:[#allocation2 + $0xe8] sm:$0x3] %v8909_v2  ;;  %7309 = vmatprep.subr.bf16.mxu0 %v8722_v12  ;;  %v9130_v24 = vld [vmem:[%s9084_s29 + $0x40] sm:$0xff]  ;;  %v9137_v27 = vld [vmem:[%s9084_s29 + $0x48] sm:$0xff] }
  0x15   : > { %534 = vst [vmem:[#allocation2 + $0xf0] sm:$0xff] %v8909_v2  ;;  %535 = vst [vmem:[#allocation2 + $0xf8] sm:$0xff] %v8909_v2  ;;  %v260_v16 = vadd.f32 %v259_v14, %v9105_v13  ;;  %v9141_v29 = vld [vmem:[%s9084_s29 + $0x50] sm:$0xff]  ;;  %v9150_v32 = vld [vmem:[%s9084_s29 + $0x58] sm:$0xff] }
  0x16   : > { %536 = vst [vmem:[#allocation2 + $0x100] sm:$0x3] %v8909_v2  ;;  %537 = vst [vmem:[#allocation2 + $0x108] sm:$0xff] %v8909_v2  ;;  %v9154_v34 = vld [vmem:[%s9084_s29 + $0x60] sm:$0xff]  ;;  %v9158_v36 = vld [vmem:[%s9084_s29 + $0x68] sm:$0xff] }
  0x17   : > { %538 = vst [vmem:[#allocation2 + $0x110] sm:$0xff] %v8909_v2  ;;  %539 = vst [vmem:[#allocation2 + $0x118] sm:$0x3] %v8909_v2  ;;  %v261_v19 = vadd.f32 %v260_v16, %v9109_v15  ;;  %7310 = vmatpush3.bf16.msra.mxu0 %v8722_v12  ;;  %v9163_v38 = vld [vmem:[%s9084_s29 + $0x70] sm:$0xff]  ;;  %v9167_v40 = vld [vmem:[%s9084_s29 + $0x78] sm:$0xff] }
  0x18   : > { %540 = vst [vmem:[#allocation2 + $0x120] sm:$0xff] %v8909_v2  ;;  %541 = vst [vmem:[#allocation2 + $0x128] sm:$0xff] %v8909_v2  ;;  %7311 = vmatprep.subr.bf16.mxu0 %v8723_v17  ;;  %v9171_v42 = vld [vmem:[%s9084_s29 + $0x80] sm:$0xff]  ;;  %v9175_v44 = vld [vmem:[%s9084_s29 + $0x88] sm:$0xff] }
  0x19   : > { %542 = vst [vmem:[#allocation2 + $0x130] sm:$0x3] %v8909_v2  ;;  %543 = vst [vmem:[#allocation2 + $0x138] sm:$0xff] %v8909_v2  ;;  %v262_v23 = vadd.f32 %v261_v19, %v9116_v18  ;;  %v9179_v46 = vld [vmem:[%s9084_s29 + $0x90] sm:$0xff]  ;;  %v9183_v48 = vld [vmem:[%s9084_s29 + $0x98] sm:$0xff] }
  0x1a   : > { %544 = vst [vmem:[#allocation2 + $0x140] sm:$0xff] %v8909_v2  ;;  %545 = vst [vmem:[#allocation2 + $0x148] sm:$0x3] %v8909_v2  ;;  %v9187_v50 = vld [vmem:[%s9084_s29 + $0xa0] sm:$0xff]  ;;  %v9191_v52 = vld [vmem:[%s9084_s29 + $0xa8] sm:$0xff] }
  0x1b   : > { %546 = vst [vmem:[#allocation2 + $0x150] sm:$0xff] %v8909_v2  ;;  %547 = vst [vmem:[#allocation2 + $0x158] sm:$0xff] %v8909_v2  ;;  %v263_v25 = vadd.f32 %v262_v23, %v9120_v20  ;;  %7312 = vmatpush3.bf16.msra.mxu0 %v8723_v17  ;;  %v9195_v54 = vld [vmem:[%s9084_s29 + $0xb0] sm:$0xff]  ;;  %v9199_v56 = vld [vmem:[%s9084_s29 + $0xb8] sm:$0xff] }
  0x1c   : > { %548 = vst [vmem:[#allocation2 + $0x160] sm:$0x3] %v8909_v2  ;;  %549 = vst [vmem:[#allocation2 + $0x168] sm:$0xff] %v8909_v2  ;;  %7313 = vmatprep.subr.bf16.mxu0 %v8724_v21  ;;  %v9203_v58 = vld [vmem:[%s9084_s29 + $0xc0] sm:$0xff]  ;;  %v9207_v60 = vld [vmem:[%s9084_s29 + $0xc8] sm:$0xff] }
  0x1d   : > { %550 = vst [vmem:[#allocation2 + $0x170] sm:$0xff] %v8909_v2  ;;  %551 = vst [vmem:[#allocation2 + $0x178] sm:$0x3] %v8909_v2  ;;  %v264_v28 = vadd.f32 %v263_v25, %v9126_v22  ;;  %v9211_v62 = vld [vmem:[%s9084_s29 + $0xd0] sm:$0xff]  ;;  %v9215_v0 = vld [vmem:[%s9084_s29 + $0xd8] sm:$0xff] }
  0x1e   : > { %552 = vst [vmem:[#allocation2 + $0x180] sm:$0xff] %v8909_v2  ;;  %553 = vst [vmem:[#allocation2 + $0x188] sm:$0xff] %v8909_v2  ;;  %v9223_v4 = vld [vmem:[%s9084_s29 + $0xe8] sm:$0xff]  ;;  %v9227_v6 = vld [vmem:[%s9084_s29 + $0xf0] sm:$0xff] }
  0x1f   : > { %554 = vst [vmem:[#allocation2 + $0x190] sm:$0x3] %v8909_v2  ;;  %555 = vst [vmem:[#allocation2 + $0x198] sm:$0xff] %v8909_v2  ;;  %v265_v30 = vadd.f32 %v264_v28, %v9130_v24  ;;  %7314 = vmatpush3.bf16.msra.mxu0 %v8724_v21  ;;  %v9231_v11 = vld [vmem:[%s9084_s29 + $0xf8] sm:$0xff] }
  0x20   : > { %556 = vst [vmem:[#allocation2 + $0x1a0] sm:$0xff] %v8909_v2  ;;  %557 = vst [vmem:[#allocation2 + $0x1a8] sm:$0x3] %v8909_v2  ;;  %7315 = vmatprep.subr.bf16.mxu0 %v8725_v26 }
  0x21   : > { %3526 = vst [vmem:[#allocation3] sm:$0xff] %v8909_v2  ;;  %3527 = vst [vmem:[#allocation3 + $0x8] sm:$0xff] %v8909_v2  ;;  %v266_v33 = vadd.f32 %v265_v30, %v9137_v27 }
  0x22   : > { %3528 = vst [vmem:[#allocation3 + $0x10] sm:$0x3] %v8909_v2  ;;  %3529 = vst [vmem:[#allocation3 + $0x18] sm:$0xff] %v8909_v2 }
  0x23   : > { %3530 = vst [vmem:[#allocation3 + $0x20] sm:$0xff] %v8909_v2  ;;  %3531 = vst [vmem:[#allocation3 + $0x28] sm:$0x3] %v8909_v2  ;;  %v267_v35 = vadd.f32 %v266_v33, %v9141_v29  ;;  %7316 = vmatpush3.bf16.msra.mxu0 %v8725_v26 }
  0x24   : > { %3532 = vst [vmem:[#allocation3 + $0x30] sm:$0xff] %v8909_v2  ;;  %3533 = vst [vmem:[#allocation3 + $0x38] sm:$0xff] %v8909_v2  ;;  %7349 = vmatprep.subr.bf16.mxu0 %v9147_v31 }
  0x25   : > { %3534 = vst [vmem:[#allocation3 + $0x40] sm:$0x3] %v8909_v2  ;;  %3535 = vst [vmem:[#allocation3 + $0x48] sm:$0xff] %v8909_v2  ;;  %v268_v37 = vadd.f32 %v267_v35, %v9150_v32 }
  0x26   : > { %3536 = vst [vmem:[#allocation3 + $0x50] sm:$0xff] %v8909_v2  ;;  %3537 = vst [vmem:[#allocation3 + $0x58] sm:$0x3] %v8909_v2 }
  0x27   : > { %3538 = vst [vmem:[#allocation3 + $0x60] sm:$0xff] %v8909_v2  ;;  %3539 = vst [vmem:[#allocation3 + $0x68] sm:$0xff] %v8909_v2  ;;  %v269_v39 = vadd.f32 %v268_v37, %v9154_v34 }
  0x28   : > { %3540 = vst [vmem:[#allocation3 + $0x70] sm:$0x3] %v8909_v2  ;;  %3541 = vst [vmem:[#allocation3 + $0x78] sm:$0xff] %v8909_v2 }
  0x29   : > { %3542 = vst [vmem:[#allocation3 + $0x80] sm:$0xff] %v8909_v2  ;;  %3543 = vst [vmem:[#allocation3 + $0x88] sm:$0x3] %v8909_v2  ;;  %v270_v41 = vadd.f32 %v269_v39, %v9158_v36 }
  0x2a   : > { %3544 = vst [vmem:[#allocation3 + $0x90] sm:$0xff] %v8909_v2  ;;  %3545 = vst [vmem:[#allocation3 + $0x98] sm:$0xff] %v8909_v2 }
  0x2b   : > { %3546 = vst [vmem:[#allocation3 + $0xa0] sm:$0x3] %v8909_v2  ;;  %3547 = vst [vmem:[#allocation3 + $0xa8] sm:$0xff] %v8909_v2  ;;  %v271_v43 = vadd.f32 %v270_v41, %v9163_v38 }
  0x2c   : > { %3548 = vst [vmem:[#allocation3 + $0xb0] sm:$0xff] %v8909_v2  ;;  %3549 = vst [vmem:[#allocation3 + $0xb8] sm:$0x3] %v8909_v2 }
  0x2d   : > { %3550 = vst [vmem:[#allocation3 + $0xc0] sm:$0xff] %v8909_v2  ;;  %3551 = vst [vmem:[#allocation3 + $0xc8] sm:$0xff] %v8909_v2  ;;  %v272_v45 = vadd.f32 %v271_v43, %v9167_v40 }
  0x2e   : > { %3552 = vst [vmem:[#allocation3 + $0xd0] sm:$0x3] %v8909_v2  ;;  %3553 = vst [vmem:[#allocation3 + $0xd8] sm:$0xff] %v8909_v2 }
  0x2f   : > { %3554 = vst [vmem:[#allocation3 + $0xe0] sm:$0xff] %v8909_v2  ;;  %3555 = vst [vmem:[#allocation3 + $0xe8] sm:$0x3] %v8909_v2  ;;  %v273_v47 = vadd.f32 %v272_v45, %v9171_v42 }
  0x30   : > { %3556 = vst [vmem:[#allocation3 + $0xf0] sm:$0xff] %v8909_v2  ;;  %3557 = vst [vmem:[#allocation3 + $0xf8] sm:$0xff] %v8909_v2 }
  0x31   : > { %3558 = vst [vmem:[#allocation3 + $0x100] sm:$0x3] %v8909_v2  ;;  %3559 = vst [vmem:[#allocation3 + $0x108] sm:$0xff] %v8909_v2  ;;  %v274_v49 = vadd.f32 %v273_v47, %v9175_v44 }
  0x32   : > { %3560 = vst [vmem:[#allocation3 + $0x110] sm:$0xff] %v8909_v2  ;;  %3561 = vst [vmem:[#allocation3 + $0x118] sm:$0x3] %v8909_v2 }
  0x33   : > { %3562 = vst [vmem:[#allocation3 + $0x120] sm:$0xff] %v8909_v2  ;;  %3563 = vst [vmem:[#allocation3 + $0x128] sm:$0xff] %v8909_v2  ;;  %v275_v51 = vadd.f32 %v274_v49, %v9179_v46 }
  0x34   : > { %3564 = vst [vmem:[#allocation3 + $0x130] sm:$0x3] %v8909_v2  ;;  %3565 = vst [vmem:[#allocation3 + $0x138] sm:$0xff] %v8909_v2 }
  0x35   : > { %3566 = vst [vmem:[#allocation3 + $0x140] sm:$0xff] %v8909_v2  ;;  %3567 = vst [vmem:[#allocation3 + $0x148] sm:$0x3] %v8909_v2  ;;  %v276_v53 = vadd.f32 %v275_v51, %v9183_v48 }
  0x36   : > { %3568 = vst [vmem:[#allocation3 + $0x150] sm:$0xff] %v8909_v2  ;;  %3569 = vst [vmem:[#allocation3 + $0x158] sm:$0xff] %v8909_v2 }
  0x37   : > { %3570 = vst [vmem:[#allocation3 + $0x160] sm:$0x3] %v8909_v2  ;;  %3571 = vst [vmem:[#allocation3 + $0x168] sm:$0xff] %v8909_v2  ;;  %v277_v55 = vadd.f32 %v276_v53, %v9187_v50 }
  0x38   : > { %3572 = vst [vmem:[#allocation3 + $0x170] sm:$0xff] %v8909_v2  ;;  %3573 = vst [vmem:[#allocation3 + $0x178] sm:$0x3] %v8909_v2 }
  0x39   : > { %3574 = vst [vmem:[#allocation3 + $0x180] sm:$0xff] %v8909_v2  ;;  %3575 = vst [vmem:[#allocation3 + $0x188] sm:$0xff] %v8909_v2  ;;  %v278_v57 = vadd.f32 %v277_v55, %v9191_v52 }
  0x3a   : > { %3576 = vst [vmem:[#allocation3 + $0x190] sm:$0x3] %v8909_v2  ;;  %3577 = vst [vmem:[#allocation3 + $0x198] sm:$0xff] %v8909_v2 }
  0x3b   : > { %3578 = vst [vmem:[#allocation3 + $0x1a0] sm:$0xff] %v8909_v2  ;;  %3579 = vst [vmem:[#allocation3 + $0x1a8] sm:$0x3] %v8909_v2  ;;  %v279_v59 = vadd.f32 %v278_v57, %v9195_v54  ;;  %v9219_v2 = vld [vmem:[%s9084_s29 + $0xe0] sm:$0xff] }
  0x3d   : > { %v280_v61 = vadd.f32 %v279_v59, %v9199_v56 }
  0x3f   : > { %v281_v63 = vadd.f32 %v280_v61, %v9203_v58 }
  0x41   : > { %v282_v1 = vadd.f32 %v281_v63, %v9207_v60 }
  0x43   : > { %v283_v3 = vadd.f32 %v282_v1, %v9211_v62 }
  0x45   : > { %v284_v5 = vadd.f32 %v283_v3, %v9215_v0 }
  0x47   : > { %v285_v7 = vadd.f32 %v284_v5, %v9219_v2 }
  0x49   : > { %v286_v12 = vadd.f32 %v285_v7, %v9223_v4 }
  0x4b   : > { %v287_v14 = vadd.f32 %v286_v12, %v9227_v6 }
  0x4d   : > { %v288_v16 = vadd.f32 %v287_v14, %v9231_v11 }
  0x4f   : > { %v289_v17 = vrot.slane %v288_v16, 4 }
  0x51   : > { %v290_v19 = vadd.f32 %v289_v17, %v288_v16 }
  0x53   : > { %v291_v21 = vrot.slane %v290_v19, 2 }
  0x55   : > { %v292_v23 = vadd.f32 %v291_v21, %v290_v19 }
  0x57   : > { %v293_v25 = vrot.slane %v292_v23, 1 }
  0x59   : > { %v294_v26 = vadd.f32 %v293_v25, %v292_v23 }
  0x5b   : > { %v9236_v28 = vmul.f32 0.00390625, %v294_v26 }
  0x5d   : > { %v9240_v30 = vsub.f32 %v9091_v8, %v9236_v28  ;;  %v9244_v33 = vsub.f32 %v9094_v9, %v9236_v28  ;;  %v9248_v35 = vsub.f32 %v9097_v10, %v9236_v28  ;;  %v9252_v37 = vsub.f32 %v9105_v13, %v9236_v28 }
  0x5e   : > { %v9260_v8 = vsub.f32 %v9109_v15, %v9236_v28  ;;  %v9266_v10 = vsub.f32 %v9116_v18, %v9236_v28  ;;  %v9272_v45 = vsub.f32 %v9120_v20, %v9236_v28  ;;  %v9278_v49 = vsub.f32 %v9126_v22, %v9236_v28 }
  0x5f   : > { %v329_v39 = vmul.f32 %v9240_v30, %v9240_v30  ;;  %v330_v41 = vmul.f32 %v9244_v33, %v9244_v33  ;;  %v331_v9 = vmul.f32 %v9248_v35, %v9248_v35  ;;  %v332_v13 = vmul.f32 %v9252_v37, %v9252_v37 }
  0x60   : > { %v333_v47 = vmul.f32 %v9260_v8, %v9260_v8  ;;  %v334_v18 = vmul.f32 %v9266_v10, %v9266_v10  ;;  %v9284_v53 = vsub.f32 %v9130_v24, %v9236_v28  ;;  %v335_v20 = vmul.f32 %v9272_v45, %v9272_v45 }
  0x61   : > { %v361_v43 = vadd.f32 %v330_v41, %v329_v39  ;;  %v9290_v57 = vsub.f32 %v9137_v27, %v9236_v28  ;;  %v336_v22 = vmul.f32 %v9278_v49, %v9278_v49  ;;  %v9296_v61 = vsub.f32 %v9141_v29, %v9236_v28 }
  0x62   : > { %v337_v24 = vmul.f32 %v9284_v53, %v9284_v53  ;;  %v9302_v1 = vsub.f32 %v9150_v32, %v9236_v28  ;;  %v9308_v5 = vsub.f32 %v9154_v34, %v9236_v28  ;;  %v9314_v12 = vsub.f32 %v9158_v36, %v9236_v28 }
  0x63   : > { %v362_v15 = vadd.f32 %v361_v43, %v331_v9  ;;  %v338_v27 = vmul.f32 %v9290_v57, %v9290_v57  ;;  %v339_v29 = vmul.f32 %v9296_v61, %v9296_v61  ;;  %v9320_v16 = vsub.f32 %v9163_v38, %v9236_v28 }
  0x64   : > { %v340_v32 = vmul.f32 %v9302_v1, %v9302_v1  ;;  %v341_v34 = vmul.f32 %v9308_v5, %v9308_v5  ;;  %v9326_v19 = vsub.f32 %v9167_v40, %v9236_v28  ;;  %v342_v36 = vmul.f32 %v9314_v12, %v9314_v12 }
  0x65   : > { %v363_v51 = vadd.f32 %v362_v15, %v332_v13  ;;  %v9332_v23 = vsub.f32 %v9171_v42, %v9236_v28  ;;  %v343_v38 = vmul.f32 %v9320_v16, %v9320_v16  ;;  %v9338_v26 = vsub.f32 %v9175_v44, %v9236_v28 }
  0x66   : > { %v344_v40 = vmul.f32 %v9326_v19, %v9326_v19  ;;  %v9344_v41 = vsub.f32 %v9179_v46, %v9236_v28  ;;  %v9350_v13 = vsub.f32 %v9183_v48, %v9236_v28 }
  0x67   : > { %v364_v55 = vadd.f32 %v363_v51, %v333_v47  ;;  %v345_v42 = vmul.f32 %v9332_v23, %v9332_v23  ;;  %v346_v44 = vmul.f32 %v9338_v26, %v9338_v26  ;;  %v9356_v47 = vsub.f32 %v9187_v50, %v9236_v28 }
  0x68   : > { %v347_v46 = vmul.f32 %v9344_v41, %v9344_v41  ;;  %v348_v48 = vmul.f32 %v9350_v13, %v9350_v13 }
  0x69   : > { %v365_v59 = vadd.f32 %v364_v55, %v334_v18  ;;  %v9362_v18 = vsub.f32 %v9191_v52, %v9236_v28  ;;  %v349_v50 = vmul.f32 %v9356_v47, %v9356_v47 }
  0x6b   : > { %v366_v63 = vadd.f32 %v365_v59, %v335_v20  ;;  %v9368_v20 = vsub.f32 %v9195_v54, %v9236_v28  ;;  %v350_v52 = vmul.f32 %v9362_v18, %v9362_v18 }
  0x6d   : > { %v367_v3 = vadd.f32 %v366_v63, %v336_v22  ;;  %v9374_v22 = vsub.f32 %v9199_v56, %v9236_v28  ;;  %v351_v54 = vmul.f32 %v9368_v20, %v9368_v20 }
  0x6f   : > { %v368_v7 = vadd.f32 %v367_v3, %v337_v24  ;;  %v9380_v24 = vsub.f32 %v9203_v58, %v9236_v28  ;;  %v352_v56 = vmul.f32 %v9374_v22, %v9374_v22 }
  0x71   : > { %v369_v14 = vadd.f32 %v368_v7, %v338_v27  ;;  %v9386_v27 = vsub.f32 %v9207_v60, %v9236_v28  ;;  %v353_v58 = vmul.f32 %v9380_v24, %v9380_v24 }
  0x73   : > { %v370_v17 = vadd.f32 %v369_v14, %v339_v29  ;;  %v9392_v29 = vsub.f32 %v9211_v62, %v9236_v28  ;;  %v354_v60 = vmul.f32 %v9386_v27, %v9386_v27 }
  0x75   : > { %v371_v21 = vadd.f32 %v370_v17, %v340_v32  ;;  %v9398_v32 = vsub.f32 %v9215_v0, %v9236_v28  ;;  %v355_v62 = vmul.f32 %v9392_v29, %v9392_v29 }
  0x77   : > { %v372_v25 = vadd.f32 %v371_v21, %v341_v34  ;;  %v9404_v34 = vsub.f32 %v9219_v2, %v9236_v28  ;;  %v356_v0 = vmul.f32 %v9398_v32, %v9398_v32 }
  0x79   : > { %v373_v39 = vadd.f32 %v372_v25, %v342_v36  ;;  %v9410_v36 = vsub.f32 %v9223_v4, %v9236_v28  ;;  %v357_v2 = vmul.f32 %v9404_v34, %v9404_v34 }
  0x7b   : > { %v374_v9 = vadd.f32 %v373_v39, %v343_v38  ;;  %v9416_v38 = vsub.f32 %v9227_v6, %v9236_v28  ;;  %v358_v4 = vmul.f32 %v9410_v36, %v9410_v36 }
  0x7d   : > { %v375_v43 = vadd.f32 %v374_v9, %v344_v40  ;;  %v9422_v40 = vsub.f32 %v9231_v11, %v9236_v28 }
  0x7f   : > { %v376_v15 = vadd.f32 %v375_v43, %v345_v42  ;;  %v359_v42 = vmul.f32 %v9416_v38, %v9416_v38  ;;  %v360_v6 = vmul.f32 %v9422_v40, %v9422_v40 }
  0x81   : > { %v377_v51 = vadd.f32 %v376_v15, %v346_v44 }
  0x83   : > { %v378_v55 = vadd.f32 %v377_v51, %v347_v46 }
  0x85   : > { %v379_v59 = vadd.f32 %v378_v55, %v348_v48 }
  0x87   : > { %v380_v63 = vadd.f32 %v379_v59, %v349_v50 }
  0x89   : > { %v381_v3 = vadd.f32 %v380_v63, %v350_v52 }
  0x8b   : > { %v382_v7 = vadd.f32 %v381_v3, %v351_v54  ;;  %v9435_v54 = vld [vmem:[%s10937_s1] ss:$0 sm:$0xff] }
  0x8d   : > { %v383_v14 = vadd.f32 %v382_v7, %v352_v56 }
  0x8f   : > { %v384_v17 = vadd.f32 %v383_v14, %v353_v58 }
  0x91   : > { %v385_v21 = vadd.f32 %v384_v17, %v354_v60 }
  0x93   : > { %v386_v25 = vadd.f32 %v385_v21, %v355_v62 }
  0x95   : > { %v387_v39 = vadd.f32 %v386_v25, %v356_v0 }
  0x97   : > { %v388_v9 = vadd.f32 %v387_v39, %v357_v2 }
  0x99   : > { %v389_v44 = vadd.f32 %v388_v9, %v358_v4 }
  0x9b   : > { %v390_v43 = vadd.f32 %v389_v44, %v359_v42  ;;  %v8727_v44 = vld [vmem:[%s10938_s2 + $0x8] sm:$0xff]  }
  0x9d   : > { %v391_v46 = vadd.f32 %v390_v43, %v360_v6 }
  0x9f   : > { %v392_v15 = vrot.slane %v391_v46, 4 }
  0xa1   : > { %v393_v48 = vadd.f32 %v392_v15, %v391_v46 }
  0xa3   : > { %v394_v51 = vrot.slane %v393_v48, 2 }
  0xa5   : > { %v395_v50 = vadd.f32 %v394_v51, %v393_v48 }
  0xa7   : > { %v396_v11 = vrot.slane %v395_v50, 1 }
  0xa9   : > { %v397_v28 = vadd.f32 %v396_v11, %v395_v50 }
  0xab   : > { %v398_v55 = vmul.f32 0.00390625, %v397_v28 }
  0xad   : > { %v399_v52 = vadd.f32 1e-05, %v398_v55 }
  0xaf   : > { %8862 = vrsqrt.f32 %v399_v52 }
  0xb9   : > { %v9430_v59 = vpop.eup %8862 }
  0xba   : > { %v401_v63 = vmul.f32 %v9430_v59, %v9240_v30  ;;  %v402_v56 = vmul.f32 %v9430_v59, %v9244_v33  ;;  %v403_v3 = vmul.f32 %v9430_v59, %v9248_v35  ;;  %v404_v58 = vmul.f32 %v9430_v59, %v9252_v37 }
  0xbb   : > { %v405_v7 = vmul.f32 %v9430_v59, %v9260_v8  ;;  %v406_v60 = vmul.f32 %v9430_v59, %v9266_v10  ;;  %v407_v14 = vmul.f32 %v9430_v59, %v9272_v45  ;;  %v408_v30 = vmul.f32 %v9430_v59, %v9278_v49 }
  0xbc   : > { %v440_v33 = vadd.f32 %v9435_v54, %v401_v63  ;;  %v441_v62 = vadd.f32 %v9435_v54, %v402_v56  ;;  %v442_v35 = vadd.f32 %v9435_v54, %v403_v3  ;;  %v443_v37 = vadd.f32 %v9435_v54, %v404_v58 }
  0xbd   : > { %v444_v17 = vadd.f32 %v9435_v54, %v405_v7  ;;  %v445_v8 = vadd.f32 %v9435_v54, %v406_v60  ;;  %v446_v10 = vadd.f32 %v9435_v54, %v407_v14  ;;  %v447_v0 = vadd.f32 %v9435_v54, %v408_v30 }
  0xbe   : > { %v472_v45 = vmax.f32 %v440_v33, 0.0  ;;  %v473_v21 = vmax.f32 %v441_v62, 0.0  ;;  %v474_v2 = vmax.f32 %v442_v35, 0.0  ;;  %v475_v49 = vmax.f32 %v443_v37, 0.0  ;;  %v8729_v62 = vld [vmem:[%s10938_s2 + $0x18] sm:$0xff]  }
  0xbf   : > { %v476_v25 = vmax.f32 %v444_v17, 0.0  ;;  %v477_v4 = vmax.f32 %v445_v8, 0.0  ;;  %v478_v39 = vmax.f32 %v446_v10, 0.0  ;;  %v479_v42 = vmax.f32 %v447_v0, 0.0 }
  0xc0   : > { %559 = vst [vmem:[#allocation2 + $0x19] sm:$0xff] %v472_v45  ;;  %560 = vst [vmem:[#allocation2 + $0x21] sm:$0xff] %v473_v21  ;;  %v688_v9 = vpack.c.bf16 %v473_v21, %v472_v45  ;;  %v689_v6 = vpack.c.bf16 %v475_v49, %v474_v2  ;;  %v409_v43 = vmul.f32 %v9430_v59, %v9284_v53 }
  0xc1   : > { %561 = vst [vmem:[#allocation2 + $0x31] sm:$0xff] %v474_v2  ;;  %562 = vst [vmem:[#allocation2 + $0x39] sm:$0xff] %v475_v49  ;;  %v410_v46 = vmul.f32 %v9430_v59, %v9290_v57  ;;  %v411_v15 = vmul.f32 %v9430_v59, %v9296_v61  ;;  %v412_v48 = vmul.f32 %v9430_v59, %v9302_v1  ;;  %v8730_v2 = vld [vmem:[%s10938_s2 + $0x20] sm:$0xff]  }
  0xc2   : > { %563 = vst [vmem:[#allocation2 + $0x49] sm:$0xff] %v476_v25  ;;  %564 = vst [vmem:[#allocation2 + $0x51] sm:$0xff] %v477_v4  ;;  %7318 = vmatmul.mubr.bf16.vlgmr.msra.gmra.mrb[0].mxu0 %v688_v9  ;;  %v9473_v51 = vadd.f32 %v9435_v54, %v409_v43  ;;  %v413_v53 = vmul.f32 %v9430_v59, %v9308_v5  ;;  %v414_v57 = vmul.f32 %v9430_v59, %v9314_v12  ;;  %v8728_v5 = vld [vmem:[%s10938_s2 + $0x10] sm:$0xff]  }
  0xc3   : > { %565 = vst [vmem:[#allocation2 + $0x61] sm:$0xff] %v478_v39  ;;  %566 = vst [vmem:[#allocation2 + $0x69] sm:$0xff] %v479_v42  ;;  %v9476_v50 = vadd.f32 %v9435_v54, %v410_v46  ;;  %7350 = vmatpush3.bf16.msra.mxu0 %v9147_v31  ;;  %7321 = vmatprep.mubr.bf16.mxu0 %v689_v6  ;;  %v9484_v61 = vadd.f32 %v9435_v54, %v411_v15 }
  0xc4   : > { %v9487_v1 = vadd.f32 %v9435_v54, %v412_v48  ;;  %v415_v11 = vmul.f32 %v9430_v59, %v9320_v16  ;;  %7351 = vmatprep.subr.bf16.mxu0 %v8727_v44  ;;  %v480_v28 = vmax.f32 %v9473_v51, 0.0  ;;  %v9497_v31 = vadd.f32 %v9435_v54, %v413_v53  ;;  %v8731_v51 = vld [vmem:[%s10938_s2 + $0x28] sm:$0xff]  }
  0xc5   : > { %v481_v12 = vmax.f32 %v9476_v50, 0.0  ;;  %v9500_v55 = vadd.f32 %v9435_v54, %v414_v57  ;;  %v482_v52 = vmax.f32 %v9484_v61, 0.0  ;;  %v416_v16 = vmul.f32 %v9430_v59, %v9326_v19 }
  0xc6   : > { %v483_v63 = vmax.f32 %v9487_v1, 0.0  ;;  %v9507_v56 = vadd.f32 %v9435_v54, %v415_v11  ;;  %v690_v3 = vpack.c.bf16 %v477_v4, %v476_v25  ;;  %567 = vst [vmem:[#allocation2 + $0x79] sm:$0xff] %v480_v28  ;;  %v484_v58 = vmax.f32 %v9497_v31, 0.0  ;;  %v8734_v31 = vld [vmem:[%s10938_s2 + $0x80] sm:$0xff]  }
  0xc7   : > { %568 = vst [vmem:[#allocation2 + $0x81] sm:$0xff] %v481_v12  ;;  %v485_v7 = vmax.f32 %v9500_v55, 0.0  ;;  %v417_v60 = vmul.f32 %v9430_v59, %v9332_v23  ;;  %7352 = vmatpush3.bf16.msra.mxu0 %v8727_v44  ;;  %v9513_v14 = vpack.c.bf16 %v479_v42, %v478_v39  ;;  %569 = vst [vmem:[#allocation2 + $0x91] sm:$0xff] %v482_v52 }
  0xc8   : > { %570 = vst [vmem:[#allocation2 + $0x99] sm:$0xff] %v483_v63  ;;  %v9516_v19 = vadd.f32 %v9435_v54, %v416_v16  ;;  %v486_v30 = vmax.f32 %v9507_v56, 0.0  ;;  %v418_v33 = vmul.f32 %v9430_v59, %v9338_v26  ;;  %7353 = vmatprep.subr.bf16.mxu0 %v8728_v5  ;;  %571 = vst [vmem:[#allocation2 + $0xa9] sm:$0xff] %v484_v58 }
  0xc9   : > { %572 = vst [vmem:[#allocation2 + $0xb1] sm:$0xff] %v485_v7  ;;  %v9529_v23 = vadd.f32 %v9435_v54, %v417_v60  ;;  %v419_v35 = vmul.f32 %v9430_v59, %v9344_v41  ;;  %v420_v26 = vmul.f32 %v9430_v59, %v9350_v13  ;;  %v421_v8 = vmul.f32 %v9430_v59, %v9356_v47  ;;  %v8733_v60 = vld [vmem:[%s10938_s2 + $0x38] sm:$0xff]  }
  0xca   : > { %v487_v37 = vmax.f32 %v9516_v19, 0.0  ;;  %573 = vst [vmem:[#allocation2 + $0xc1] sm:$0xff] %v486_v30  ;;  %v9539_v17 = vadd.f32 %v9435_v54, %v418_v33  ;;  %v422_v10 = vmul.f32 %v9430_v59, %v9362_v18  ;;  %7322 = vmatmul.mubr.bf16.gmra.mrb[4].mxu0 %v690_v3  ;;  %v423_v45 = vmul.f32 %v9430_v59, %v9368_v20  ;;  %v8866_v33 = vld [vmem:[#allocation2] sm:$0xff] }
  0xcb   : > { %v488_v41 = vmax.f32 %v9529_v23, 0.0  ;;  %v9547_v0 = vadd.f32 %v9435_v54, %v419_v35  ;;  %v9550_v13 = vadd.f32 %v9435_v54, %v420_v26  ;;  %7325 = vmatprep.mubr.bf16.mxu0 %v9513_v14  ;;  %7354 = vmatpush3.bf16.msra.mxu0 %v8728_v5  ;;  %v9559_v18 = vadd.f32 %v9435_v54, %v421_v8  ;;  %v593_v23 = vld [vmem:[#allocation2 + $0x18] sm:$0xff]  ;;  %v594_v35 = vld [vmem:[#allocation2 + $0x20] sm:$0xff]  ;;  %v595_v26 = vld [vmem:[#allocation2 + $0x30] sm:$0xff] }
  0xcc   : > { %574 = vst [vmem:[#allocation2 + $0xc9] sm:$0xff] %v487_v37  ;;  %v489_v47 = vmax.f32 %v9539_v17, 0.0  ;;  %v9562_v21 = vadd.f32 %v9435_v54, %v422_v10  ;;  %7355 = vmatprep.subr.bf16.mxu0 %v8729_v62  ;;  %v424_v25 = vmul.f32 %v9430_v59, %v9374_v22  ;;  %v9574_v4 = vadd.f32 %v9435_v54, %v423_v45  ;;  %v8735_v10 = vld [vmem:[%s10938_s2 + $0x88] sm:$0xff]  }
  0xcd   : > { %575 = vst [vmem:[#allocation2 + $0xd9] sm:$0xff] %v488_v41  ;;  %v490_v20 = vmax.f32 %v9547_v0, 0.0  ;;  %v491_v49 = vmax.f32 %v9550_v13, 0.0  ;;  %v492_v39 = vmax.f32 %v9559_v18, 0.0  ;;  %v425_v9 = vmul.f32 %v9430_v59, %v9380_v24  ;;  %v598_v0 = vld [vmem:[#allocation2 + $0x50] sm:$0xff]  ;;  %v599_v13 = vld [vmem:[#allocation2 + $0x60] sm:$0xff] }
  0xce   : > { %576 = vst [vmem:[#allocation2 + $0xe1] sm:$0xff] %v489_v47  ;;  %v493_v42 = vmax.f32 %v9562_v21, 0.0  ;;  %v9582_v6 = vpack.c.bf16 %v481_v12, %v480_v28  ;;  %v463_v44 = vadd.f32 %v9435_v54, %v424_v25  ;;  %v494_v22 = vmax.f32 %v9574_v4, 0.0  ;;  %v600_v45 = vld [vmem:[#allocation2 + $0x68] sm:$0xff]  ;;  %v603_v25 = vld [vmem:[#allocation2 + $0x90] sm:$0xff] }
  0xcf   : > { %577 = vst [vmem:[#allocation2 + $0xf1] sm:$0xff] %v490_v20  ;;  %578 = vst [vmem:[#allocation2 + $0xf9] sm:$0xff] %v491_v49  ;;  %v426_v43 = vmul.f32 %v9430_v59, %v9386_v27  ;;  %v9588_v46 = vpack.c.bf16 %v483_v63, %v482_v52  ;;  %7356 = vmatpush3.bf16.msra.mxu0 %v8729_v62  ;;  %v464_v15 = vadd.f32 %v9435_v54, %v425_v9  ;;  %v604_v4 = vld [vmem:[#allocation2 + $0x98] sm:$0xff] }
  0xd0   : > { %579 = vst [vmem:[#allocation2 + $0x109] sm:$0xff] %v492_v39  ;;  %580 = vst [vmem:[#allocation2 + $0x111] sm:$0xff] %v493_v42  ;;  %v427_v24 = vmul.f32 %v9430_v59, %v9392_v29  ;;  %v428_v48 = vmul.f32 %v9430_v59, %v9398_v32  ;;  %7357 = vmatprep.subr.bf16.mxu0 %v8730_v2  ;;  %v495_v50 = vmax.f32 %v463_v44, 0.0  ;;  %v8739_v44 = vld [vmem:[%s10938_s2 + $0xa8] sm:$0xff]  }
  0xd1   : > { %581 = vst [vmem:[#allocation2 + $0x121] sm:$0xff] %v494_v22  ;;  %v465_v27 = vadd.f32 %v9435_v54, %v426_v43  ;;  %v429_v53 = vmul.f32 %v9430_v59, %v9404_v34  ;;  %v430_v57 = vmul.f32 %v9430_v59, %v9410_v36  ;;  %v496_v61 = vmax.f32 %v464_v15, 0.0  ;;  %v8732_v36 = vld [vmem:[%s10938_s2 + $0x30] sm:$0xff]   ;;  %v607_v15 = vld [vmem:[#allocation2 + $0xc0] sm:$0xff] }
  0xd2   : > { %v466_v29 = vadd.f32 %v9435_v54, %v427_v24  ;;  %v467_v32 = vadd.f32 %v9435_v54, %v428_v48  ;;  %7326 = vmatmul.mubr.bf16.gmra.mrb[8].mxu0 %v9582_v6  ;;  %582 = vst [vmem:[#allocation2 + $0x129] sm:$0xff] %v495_v50  ;;  %v9618_v16 = vpack.c.bf16 %v485_v7, %v484_v58  ;;  %v606_v43 = vld [vmem:[#allocation2 + $0xb0] sm:$0xff] }
  0xd3   : > { %v497_v1 = vmax.f32 %v465_v27, 0.0  ;;  %v468_v11 = vadd.f32 %v9435_v54, %v429_v53  ;;  %v469_v5 = vadd.f32 %v9435_v54, %v430_v57  ;;  %7329 = vmatprep.mubr.bf16.mxu0 %v9588_v46  ;;  %7358 = vmatpush3.bf16.msra.mxu0 %v8730_v2  ;;  %583 = vst [vmem:[#allocation2 + $0x139] sm:$0xff] %v496_v61  ;;  %v8737_v2 = vld [vmem:[%s10938_s2 + $0x98] sm:$0xff]   ;;  %v608_v24 = vld [vmem:[#allocation2 + $0xc8] sm:$0xff]  ;;  %v8740_v48 = vld [vmem:[%s10938_s2 + $0xb0] sm:$0xff]  }
  0xd4   : > { %v498_v34 = vmax.f32 %v466_v29, 0.0  ;;  %v499_v28 = vmax.f32 %v467_v32, 0.0  ;;  %7359 = vmatprep.subr.bf16.mxu0 %v8731_v51  ;;  %v9624_v3 = vpack.c.bf16 %v487_v37, %v486_v30  ;;  %v9638_v55 = vpack.c.bf16 %v489_v47, %v488_v41  ;;  %v596_v37 = vld [vmem:[#allocation2 + $0x38] sm:$0xff]  ;;  %v597_v41 = vld [vmem:[#allocation2 + $0x48] sm:$0xff]  ;;  %v8736_v47 = vld [vmem:[%s10938_s2 + $0x90] sm:$0xff]  }
  0xd5   : > { %584 = vst [vmem:[#allocation2 + $0x141] sm:$0xff] %v497_v1  ;;  %v9612_v12 = vpack.c.bf16 %v497_v1, %v496_v61  ;;  %v500_v52 = vmax.f32 %v468_v11, 0.0  ;;  %v501_v63 = vmax.f32 %v469_v5, 0.0  ;;  %v9640_v56 = vpack.c.bf16 %v491_v49, %v490_v20  ;;  %v601_v20 = vld [vmem:[#allocation2 + $0x78] sm:$0xff]  ;;  %v602_v49 = vld [vmem:[#allocation2 + $0x80] sm:$0xff] }
  0xd6   : > { %585 = vst [vmem:[#allocation2 + $0x151] sm:$0xff] %v498_v34  ;;  %586 = vst [vmem:[#allocation2 + $0x159] sm:$0xff] %v499_v28  ;;  %v9644_v58 = vpack.c.bf16 %v493_v42, %v492_v39  ;;  %v9646_v7 = vpack.c.bf16 %v495_v50, %v494_v22  ;;  %v9650_v19 = vpack.c.bf16 %v499_v28, %v498_v34  ;;  %v8738_v39 = vld [vmem:[%s10938_s2 + $0xa0] sm:$0xff]   ;;  %v605_v22 = vld [vmem:[#allocation2 + $0xa8] sm:$0xff] }
  0xd7   : > { %587 = vst [vmem:[#allocation2 + $0x169] sm:$0xff] %v500_v52  ;;  %588 = vst [vmem:[#allocation2 + $0x171] sm:$0xff] %v501_v63  ;;  %7360 = vmatpush3.bf16.msra.mxu0 %v8731_v51  ;;  %v9654_v30 = vpack.c.bf16 %v501_v63, %v500_v52  ;;  %v9656_v62 = vpack.c.bf16 %v8866_v33, %v8866_v33  ;;  %v9660_v17 = vpack.c.bf16 %v594_v35, %v593_v23  ;;  %v8741_v27 = vld [vmem:[%s10938_s2 + $0xb8] sm:$0xff]   ;;  %v610_v57 = vld [vmem:[#allocation2 + $0xe0] sm:$0xff] }
  0xd8   : > { %7361 = vmatprep.subr.bf16.mxu0 %v8732_v36  ;;  %v9662_v8 = vpack.c.bf16 %v596_v37, %v595_v26  ;;  %v9672_v18 = vpack.c.bf16 %v598_v0, %v597_v41  ;;  %v9674_v21 = vpack.c.bf16 %v600_v45, %v599_v13  ;;  %v9684_v42 = vpack.c.bf16 %v602_v49, %v601_v20  ;;  %v609_v53 = vld [vmem:[#allocation2 + $0xd8] sm:$0xff]  ;;  %v611_v61 = vld [vmem:[#allocation2 + $0xf0] sm:$0xff]  ;;  %v8742_v32 = vld [vmem:[%s10938_s2 + $0xc0] sm:$0xff]  }
  0xd9   : > { %v9686_v9 = vpack.c.bf16 %v604_v4, %v603_v25  ;;  %v9696_v51 = vpack.c.bf16 %v606_v43, %v605_v22  ;;  %v9698_v50 = vpack.c.bf16 %v608_v24, %v607_v15  ;;  %v612_v29 = vld [vmem:[#allocation2 + $0xf8] sm:$0xff]  ;;  %v9708_v1 = vpack.c.bf16 %v610_v57, %v609_v53  ;;  %v613_v5 = vld [vmem:[#allocation2 + $0x108] sm:$0xff]  ;;  %v614_v34 = vld [vmem:[#allocation2 + $0x110] sm:$0xff] }
  0xda   : > { %7330 = vmatmul.mubr.bf16.gmra.mrb[12].mxu0 %v9618_v16  ;;  %v9710_v11 = vpack.c.bf16 %v612_v29, %v611_v61  ;;  %v615_v28 = vld [vmem:[#allocation2 + $0x120] sm:$0xff]  ;;  %v9714_v52 = vpack.c.bf16 %v614_v34, %v613_v5  ;;  %v617_v33 = vld [vmem:[#allocation2 + $0x138] sm:$0xff]  ;;  %v1139_v45 = vld [vmem:[#allocation2 + $0xa] sm:$0xff] }
  0xdb   : > { %7333 = vmatprep.mubr.bf16.mxu0 %v9624_v3  ;;  %7362 = vmatpush3.bf16.msra.mxu0 %v8732_v36  ;;  %v616_v36 = vld [vmem:[#allocation2 + $0x128] sm:$0xff]  ;;  %v1140_v20 = vld [vmem:[#allocation2 + $0x1a] sm:$0xff]  ;;  %v1142_v25 = vld [vmem:[#allocation2 + $0x32] sm:$0xff] }
  0xdc   : > { %7363 = vmatprep.subr.bf16.mxu0 %v8733_v60  ;;  %v9716_v63 = vpack.c.bf16 %v616_v36, %v615_v28  ;;  %v618_v23 = vld [vmem:[#allocation2 + $0x140] sm:$0xff]  ;;  %v8743_v22 = vld [vmem:[%s10938_s2 + $0xc8] sm:$0xff]   ;;  %v1145_v15 = vld [vmem:[#allocation2 + $0x52] sm:$0xff] }
  0xdd   : > { %v619_v35 = vld [vmem:[#allocation2 + $0x150] sm:$0xff]  ;;  %v620_v26 = vld [vmem:[#allocation2 + $0x158] sm:$0xff]  ;;  %v9730_v41 = vpack.c.bf16 %v618_v23, %v617_v33  ;;  %v1141_v49 = vld [vmem:[#allocation2 + $0x22] sm:$0xff] }
  0xde   : > { %v9734_v13 = vpack.c.bf16 %v620_v26, %v619_v35  ;;  %v1143_v4 = vld [vmem:[#allocation2 + $0x3a] sm:$0xff]  ;;  %v1144_v43 = vld [vmem:[#allocation2 + $0x4a] sm:$0xff]  ;;  %v1146_v24 = vld [vmem:[#allocation2 + $0x62] sm:$0xff] }
  0xdf   : > { %7364 = vmatpush3.bf16.msra.mxu0 %v8733_v60  ;;  %v431_v60 = vmul.f32 %v9430_v59, %v9416_v38  ;;  %v9757_v53 = vpack.c.bf16 %v1145_v15, %v1144_v43  ;;  %v8745_v61 = vld [vmem:[%s10938_s2 + $0xd8] sm:$0xff]   ;;  %v8746_v28 = vld [vmem:[%s10938_s2 + $0xe0] sm:$0xff]   ;;  %v1152_v33 = vld [vmem:[#allocation2 + $0xaa] sm:$0xff] }
  0xe0   : > { %7397 = vmatprep.subr.bf16.mxu0 %v8734_v31  ;;  %v1148_v29 = vld [vmem:[#allocation2 + $0x7a] sm:$0xff]  ;;  %v1150_v5 = vld [vmem:[#allocation2 + $0x92] sm:$0xff]  ;;  %v1154_v35 = vld [vmem:[#allocation2 + $0xc2] sm:$0xff] }
  0xe1   : > { %v9725_v37 = vadd.f32 %v9435_v54, %v431_v60  ;;  %v1151_v34 = vld [vmem:[#allocation2 + $0x9a] sm:$0xff]  ;;  %v1153_v23 = vld [vmem:[#allocation2 + $0xb2] sm:$0xff]  ;;  %v1155_v26 = vld [vmem:[#allocation2 + $0xca] sm:$0xff] }
  0xe2   : > { %7334 = vmatmul.mubr.bf16.gmra.mrb[16].mxu0 %v9638_v55  ;;  %v9771_v60 = vpack.c.bf16 %v1151_v34, %v1150_v5  ;;  %v1160_v15 = vld [vmem:[#allocation2 + $0x10a] sm:$0xff]  ;;  %v1165_v5 = vld [vmem:[#allocation2 + $0x142] sm:$0xff]  ;;  %v1166_v34 = vld [vmem:[#allocation2 + $0x152] sm:$0xff] }
  0xe3   : > { %7337 = vmatprep.mubr.bf16.mxu0 %v9640_v56  ;;  %v502_v0 = vmax.f32 %v9725_v37, 0.0 }
  0xe5   : > { %589 = vst [vmem:[#allocation2 + $0x181] sm:$0xff] %v502_v0 }
  0xea   : > { %7338 = vmatmul.mubr.bf16.gmra.mrb[20].mxu0 %v9644_v58 }
  0xeb   : > { %7341 = vmatprep.mubr.bf16.mxu0 %v9646_v7 }
  0xf2   : > { %7342 = vmatmul.mubr.bf16.gmra.mrb[24].mxu0 %v9612_v12 }
  0xf3   : > { %7345 = vmatprep.mubr.bf16.mxu0 %v9650_v19 }
  0xfa   : > { %7346 = vmatmul.mubr.bf16.gmra.mrb[28].mxu0 %v9654_v30 }
  0xfb   : > { %7365 = vmatprep.mubr.bf16.mxu0 %v9656_v62 }
 0x102   : > { %7366 = vmatmul.mubr.bf16.vlgmr.msra.gmra.mrb[0].mxu0 %v9660_v17 }
 0x103   : > { %7398 = vmatpush3.bf16.msra.mxu0 %v8734_v31  ;;  %7369 = vmatprep.mubr.bf16.mxu0 %v9662_v8  ;;  %v432_v31 = vmul.f32 %v9430_v59, %v9422_v40  ;;  %v621_v40 = vld [vmem:[#allocation2 + $0x168] sm:$0xff]  ;;  %v622_v59 = vld [vmem:[#allocation2 + $0x170] sm:$0xff] }
 0x104   : > { %7399 = vmatprep.subr.bf16.mxu0 %v8735_v10 }
 0x107   : > { %7400 = vmatpush3.bf16.msra.mxu0 %v8735_v10  ;;  %v9728_v10 = vadd.f32 %v9435_v54, %v432_v31  ;;  %v1138_v54 = vld [vmem:[#allocation2 + $0x2] sm:$0xff] }
 0x108   : > { %7401 = vmatprep.subr.bf16.mxu0 %v8736_v47  ;;  %v8747_v31 = vld [vmem:[%s10938_s2 + $0xe8] sm:$0xff]  }
 0x109   : > { %v503_v38 = vmax.f32 %v9728_v10, 0.0 }
 0x10a   : > { %7370 = vmatmul.mubr.bf16.gmra.mrb[4].mxu0 %v9672_v18 }
 0x10b   : > { %7373 = vmatprep.mubr.bf16.mxu0 %v9674_v21  ;;  %7402 = vmatpush3.bf16.msra.mxu0 %v8736_v47  ;;  %590 = vst [vmem:[#allocation2 + $0x189] sm:$0xff] %v503_v38  ;;  %v9742_v47 = vpack.c.bf16 %v622_v59, %v621_v40  ;;  %v8748_v40 = vld [vmem:[%s10938_s2 + $0xf0] sm:$0xff]   ;;  %v9781_v59 = vpack.c.bf16 %v1153_v23, %v1152_v33 }
 0x10c   : > { %7403 = vmatprep.subr.bf16.mxu0 %v8737_v2  ;;  %v1168_v23 = vld [vmem:[#allocation2 + $0x16a] sm:$0xff] }
 0x10f   : > { %7404 = vmatpush3.bf16.msra.mxu0 %v8737_v2  ;;  %v1170_v2 = vpack.c.bf16 %v1139_v45, %v1138_v54  ;;  %v9783_v54 = vpack.c.bf16 %v1155_v26, %v1154_v35  ;;  %v8749_v45 = vld [vmem:[%s10938_s2 + $0xf8] sm:$0xff]  }
 0x110   : > { %7405 = vmatprep.subr.bf16.mxu0 %v8738_v39  ;;  %v1169_v35 = vld [vmem:[#allocation2 + $0x172] sm:$0xff] }
 0x111   : > { %v9811_v26 = vpack.c.bf16 %v1169_v35, %v1168_v23  ;;  %v2375_v23 = vld [vmem:[#allocation2 + $0xc0] sm:$0xff]  ;;  %v2376_v35 = vld [vmem:[#allocation2 + $0xc8] sm:$0xff] }
 0x112   : > { %7374 = vmatmul.mubr.bf16.gmra.mrb[8].mxu0 %v9684_v42  ;;  %v2086_v37 = vld [vmem:[#allocation2 + $0x182] sm:$0xff]  ;;  %v2087_v10 = vld [vmem:[#allocation2 + $0x18a] sm:$0xff] }
 0x113   : > { %7377 = vmatprep.mubr.bf16.mxu0 %v9686_v9  ;;  %7406 = vmatpush3.bf16.msra.mxu0 %v8738_v39  ;;  %v9745_v39 = vpack.c.bf16 %v1141_v49, %v1140_v20  ;;  %v1157_v20 = vld [vmem:[#allocation2 + $0xe2] sm:$0xff]  ;;  %v1158_v49 = vld [vmem:[#allocation2 + $0xf2] sm:$0xff] }
 0x114   : > { %7407 = vmatprep.subr.bf16.mxu0 %v8739_v44 }
 0x117   : > { %7408 = vmatpush3.bf16.msra.mxu0 %v8739_v44  ;;  %v9747_v44 = vpack.c.bf16 %v1143_v4, %v1142_v25  ;;  %v1159_v25 = vld [vmem:[#allocation2 + $0xfa] sm:$0xff] }
 0x118   : > { %7409 = vmatprep.subr.bf16.mxu0 %v8740_v48  ;;  %v8750_v4 = vld [vmem:[%s10938_s2 + $0x100] sm:$0xff]   ;;  %v9795_v43 = vpack.c.bf16 %v1159_v25, %v1158_v49  ;;  %v1754_v25 = vld [vmem:[#allocation2 + $0x49] sm:$0xff] }
 0x11a   : > { %7378 = vmatmul.mubr.bf16.gmra.mrb[12].mxu0 %v9696_v51 }
 0x11b   : > { %7381 = vmatprep.mubr.bf16.mxu0 %v9698_v50  ;;  %7410 = vmatpush3.bf16.msra.mxu0 %v8740_v48  ;;  %v1147_v48 = vld [vmem:[#allocation2 + $0x6a] sm:$0xff] }
 0x11c   : > { %7411 = vmatprep.subr.bf16.mxu0 %v8741_v27  ;;  %v9759_v57 = vpack.c.bf16 %v1147_v48, %v1146_v24  ;;  %v1161_v24 = vld [vmem:[#allocation2 + $0x112] sm:$0xff]  ;;  %v1162_v48 = vld [vmem:[#allocation2 + $0x122] sm:$0xff] }
 0x11f   : > { %7412 = vmatpush3.bf16.msra.mxu0 %v8741_v27  ;;  %v8744_v27 = vld [vmem:[%s10938_s2 + $0xd0] sm:$0xff]  }
 0x120   : > { %7445 = vmatprep.subr.bf16.mxu0 %v8742_v32 }
 0x122   : > { %7382 = vmatmul.mubr.bf16.gmra.mrb[16].mxu0 %v9708_v1 }
 0x123   : > { %7385 = vmatprep.mubr.bf16.mxu0 %v9710_v11 }
 0x12a   : > { %7386 = vmatmul.mubr.bf16.gmra.mrb[20].mxu0 %v9714_v52 }
 0x12b   : > { %7389 = vmatprep.mubr.bf16.mxu0 %v9716_v63 }
 0x132   : > { %7390 = vmatmul.mubr.bf16.gmra.mrb[24].mxu0 %v9730_v41 }
 0x133   : > { %7393 = vmatprep.mubr.bf16.mxu0 %v9734_v13 }
 0x13a   : > { %7394 = vmatmul.mubr.bf16.gmra.mrb[28].mxu0 %v9742_v47 }
 0x13b   : > { %7413 = vmatprep.mubr.bf16.mxu0 %v1170_v2  ;;  %v1156_v2 = vld [vmem:[#allocation2 + $0xda] sm:$0xff] }
 0x142   : > { %7414 = vmatmul.mubr.bf16.vlgmr.msra.gmra.mrb[0].mxu0 %v9745_v39 }
 0x143   : > { %7446 = vmatpush3.bf16.msra.mxu0 %v8742_v32  ;;  %7417 = vmatprep.mubr.bf16.mxu0 %v9747_v44  ;;  %v1149_v32 = vld [vmem:[#allocation2 + $0x82] sm:$0xff] }
 0x144   : > { %7447 = vmatprep.subr.bf16.mxu0 %v8743_v22  ;;  %v9769_v36 = vpack.c.bf16 %v1149_v32, %v1148_v29  ;;  %v1164_v32 = vld [vmem:[#allocation2 + $0x13a] sm:$0xff] }
 0x147   : > { %7448 = vmatpush3.bf16.msra.mxu0 %v8743_v22  ;;  %v9793_v22 = vpack.c.bf16 %v1157_v20, %v1156_v2  ;;  %v1751_v2 = vld [vmem:[#allocation2 + $0x21] sm:$0xff] }
 0x148   : > { %7449 = vmatprep.subr.bf16.mxu0 %v8744_v27 }
 0x14a   : > { %7418 = vmatmul.mubr.bf16.gmra.mrb[4].mxu0 %v9757_v53 }
 0x14b   : > { %7421 = vmatprep.mubr.bf16.mxu0 %v9759_v57  ;;  %7450 = vmatpush3.bf16.msra.mxu0 %v8744_v27  ;;  %v1163_v27 = vld [vmem:[#allocation2 + $0x12a] sm:$0xff] }
 0x14c   : > { %7451 = vmatprep.subr.bf16.mxu0 %v8745_v61  ;;  %v9801_v29 = vpack.c.bf16 %v1163_v27, %v1162_v48  ;;  %v8763_v48 = vld [vmem:[%s10938_s2 + $0x168] sm:$0xff]   ;;  %v2370_v27 = vld [vmem:[#allocation2 + $0x80] sm:$0xff] }
 0x14f   : > { %7452 = vmatpush3.bf16.msra.mxu0 %v8745_v61  ;;  %v9799_v61 = vpack.c.bf16 %v1161_v24, %v1160_v15  ;;  %v8761_v15 = vld [vmem:[%s10938_s2 + $0x158] sm:$0xff]   ;;  %v8762_v24 = vld [vmem:[%s10938_s2 + $0x160] sm:$0xff]  }
 0x150   : > { %7453 = vmatprep.subr.bf16.mxu0 %v8746_v28 }
 0x152   : > { %7422 = vmatmul.mubr.bf16.gmra.mrb[8].mxu0 %v9769_v36 }
 0x153   : > { %7425 = vmatprep.mubr.bf16.mxu0 %v9771_v60  ;;  %7454 = vmatpush3.bf16.msra.mxu0 %v8746_v28  ;;  %v1167_v28 = vld [vmem:[#allocation2 + $0x15a] sm:$0xff] }
 0x154   : > { %7455 = vmatprep.subr.bf16.mxu0 %v8747_v31  ;;  %v9807_v33 = vpack.c.bf16 %v1167_v28, %v1166_v34  ;;  %v8777_v28 = vld [vmem:[%s10938_s2 + $0x1d8] sm:$0xff]  }
 0x157   : > { %7456 = vmatpush3.bf16.msra.mxu0 %v8747_v31  ;;  %v9805_v31 = vpack.c.bf16 %v1165_v5, %v1164_v32  ;;  %v8776_v32 = vld [vmem:[%s10938_s2 + $0x1d0] sm:$0xff]  }
 0x158   : > { %7457 = vmatprep.subr.bf16.mxu0 %v8748_v40 }
 0x15a   : > { %7426 = vmatmul.mubr.bf16.gmra.mrb[12].mxu0 %v9781_v59 }
 0x15b   : > { %7429 = vmatprep.mubr.bf16.mxu0 %v9783_v54  ;;  %7458 = vmatpush3.bf16.msra.mxu0 %v8748_v40  ;;  %v8751_v40 = vld [vmem:[%s10938_s2 + $0x108] sm:$0xff]  }
 0x15c   : > { %7459 = vmatprep.subr.bf16.mxu0 %v8749_v45 }
 0x15f   : > { %7460 = vmatpush3.bf16.msra.mxu0 %v8749_v45  ;;  %v8752_v45 = vld [vmem:[%s10938_s2 + $0x110] sm:$0xff]  }
 0x160   : > { %7493 = vmatprep.subr.bf16.mxu0 %v8750_v4 }
 0x162   : > { %7430 = vmatmul.mubr.bf16.gmra.mrb[16].mxu0 %v9793_v22 }
 0x163   : > { %7433 = vmatprep.mubr.bf16.mxu0 %v9795_v43 }
 0x16a   : > { %7434 = vmatmul.mubr.bf16.gmra.mrb[20].mxu0 %v9799_v61 }
 0x16b   : > { %7437 = vmatprep.mubr.bf16.mxu0 %v9801_v29 }
 0x172   : > { %7438 = vmatmul.mubr.bf16.gmra.mrb[24].mxu0 %v9805_v31 }
 0x173   : > { %7441 = vmatprep.mubr.bf16.mxu0 %v9807_v33 }
 0x17a   : > { %7442 = vmatmul.mubr.bf16.gmra.mrb[28].mxu0 %v9811_v26 }
 0x17b   : > { %7461 = vmatprep.mubr.bf16.mxu0 %v9660_v17  ;;  %v8753_v17 = vld [vmem:[%s10938_s2 + $0x118] sm:$0xff]  }
 0x182   : > { %7462 = vmatmul.mubr.bf16.vlgmr.msra.gmra.mrb[0].mxu0 %v9662_v8  ;;  %v8754_v8 = vld [vmem:[%s10938_s2 + $0x120] sm:$0xff]  }
 0x183   : > { %7494 = vmatpush3.bf16.msra.mxu0 %v8750_v4  ;;  %7465 = vmatprep.mubr.bf16.mxu0 %v9672_v18  ;;  %v8755_v18 = vld [vmem:[%s10938_s2 + $0x128] sm:$0xff]  }
 0x184   : > { %7495 = vmatprep.subr.bf16.mxu0 %v8751_v40 }
 0x187   : > { %7496 = vmatpush3.bf16.msra.mxu0 %v8751_v40 }
 0x188   : > { %7497 = vmatprep.subr.bf16.mxu0 %v8752_v45 }
 0x18a   : > { %7466 = vmatmul.mubr.bf16.gmra.mrb[4].mxu0 %v9674_v21  ;;  %v8756_v21 = vld [vmem:[%s10938_s2 + $0x130] sm:$0xff]  }
 0x18b   : > { %7469 = vmatprep.mubr.bf16.mxu0 %v9684_v42  ;;  %7498 = vmatpush3.bf16.msra.mxu0 %v8752_v45  ;;  %v8757_v42 = vld [vmem:[%s10938_s2 + $0x138] sm:$0xff]   ;;  %v2401_v45 = vpack.c.bf16 %v2376_v35, %v2375_v23 }
 0x18c   : > { %7499 = vmatprep.subr.bf16.mxu0 %v8753_v17 }
 0x18f   : > { %7500 = vmatpush3.bf16.msra.mxu0 %v8753_v17  ;;  %v8779_v17 = vld [vmem:[%s10938_s2 + $0x1e8] sm:$0xff]  }
 0x190   : > { %7501 = vmatprep.subr.bf16.mxu0 %v8754_v8 }
 0x192   : > { %7470 = vmatmul.mubr.bf16.gmra.mrb[8].mxu0 %v9686_v9  ;;  %v8758_v9 = vld [vmem:[%s10938_s2 + $0x140] sm:$0xff]  }
 0x193   : > { %7473 = vmatprep.mubr.bf16.mxu0 %v9696_v51  ;;  %7502 = vmatpush3.bf16.msra.mxu0 %v8754_v8  ;;  %v1474_v51 = vld [vmem:[#allocation2 + $0x180] sm:$0xff]  ;;  %v2377_v8 = vld [vmem:[#allocation2 + $0xd8] sm:$0xff] }
 0x194   : > { %7503 = vmatprep.subr.bf16.mxu0 %v8755_v18 }
 0x197   : > { %7504 = vmatpush3.bf16.msra.mxu0 %v8755_v18  ;;  %v2378_v18 = vld [vmem:[#allocation2 + $0xe0] sm:$0xff] }
 0x198   : > { %7505 = vmatprep.subr.bf16.mxu0 %v8756_v21 }
 0x19a   : > { %7474 = vmatmul.mubr.bf16.gmra.mrb[12].mxu0 %v9698_v50  ;;  %v1475_v50 = vld [vmem:[#allocation2 + $0x188] sm:$0xff] }
 0x19b   : > { %7477 = vmatprep.mubr.bf16.mxu0 %v9708_v1  ;;  %7506 = vmatpush3.bf16.msra.mxu0 %v8756_v21  ;;  %v1750_v1 = vld [vmem:[#allocation2 + $0x19] sm:$0xff]  ;;  %v9853_v20 = vpack.c.bf16 %v1475_v50, %v1474_v51  ;;  %v2379_v21 = vld [vmem:[#allocation2 + $0xf0] sm:$0xff]  ;;  %v2402_v51 = vpack.c.bf16 %v2378_v18, %v2377_v8 }
 0x19c   : > { %7507 = vmatprep.subr.bf16.mxu0 %v8757_v42  ;;  %v1782_v49 = vpack.c.bf16 %v1751_v2, %v1750_v1  ;;  %v8781_v1 = vld [vmem:[%s10938_s2 + $0x1f8] sm:$0xff]   ;;  %v2381_v2 = vld [vmem:[#allocation2 + $0x108] sm:$0xff] }
 0x19f   : > { %7508 = vmatpush3.bf16.msra.mxu0 %v8757_v42  ;;  %v2380_v42 = vld [vmem:[#allocation2 + $0xf8] sm:$0xff] }
 0x1a0   : > { %7541 = vmatprep.subr.bf16.mxu0 %v8758_v9  ;;  %v2403_v50 = vpack.c.bf16 %v2380_v42, %v2379_v21  ;;  %v2695_v21 = vld [vmem:[#allocation2 + $0x169] sm:$0xff]  ;;  %v2696_v42 = vld [vmem:[#allocation2 + $0x171] sm:$0xff] }
 0x1a2   : > { %7478 = vmatmul.mubr.bf16.gmra.mrb[16].mxu0 %v9710_v11  ;;  %v1752_v11 = vld [vmem:[#allocation2 + $0x31] sm:$0xff] }
 0x1a3   : > { %7481 = vmatprep.mubr.bf16.mxu0 %v9714_v52  ;;  %v1753_v52 = vld [vmem:[#allocation2 + $0x39] sm:$0xff] }
 0x1a4   : > { %v9856_v4 = vpack.c.bf16 %v1753_v52, %v1752_v11  ;;  %v2383_v11 = vld [vmem:[#allocation2 + $0x120] sm:$0xff]  ;;  %v2384_v52 = vld [vmem:[#allocation2 + $0x128] sm:$0xff] }
 0x1aa   : > { %7482 = vmatmul.mubr.bf16.gmra.mrb[20].mxu0 %v9716_v63  ;;  %v1755_v63 = vld [vmem:[#allocation2 + $0x51] sm:$0xff] }
 0x1ab   : > { %7485 = vmatprep.mubr.bf16.mxu0 %v9730_v41  ;;  %v9858_v41 = vpack.c.bf16 %v1755_v63, %v1754_v25  ;;  %v8782_v25 = vld [vmem:[%s10938_s2 + $0x200] sm:$0xff]  }
 0x1b2   : > { %7486 = vmatmul.mubr.bf16.gmra.mrb[24].mxu0 %v9734_v13  ;;  %v8759_v13 = vld [vmem:[%s10938_s2 + $0x148] sm:$0xff]  }
 0x1b3   : > { %7489 = vmatprep.mubr.bf16.mxu0 %v9742_v47  ;;  %v8760_v47 = vld [vmem:[%s10938_s2 + $0x150] sm:$0xff]  }
 0x1ba   : > { %7490 = vmatmul.mubr.bf16.gmra.mrb[28].mxu0 %v9853_v20 }
 0x1bb   : > { %7509 = vmatprep.mubr.bf16.mxu0 %v1782_v49  ;;  %v2382_v49 = vld [vmem:[#allocation2 + $0x110] sm:$0xff] }
 0x1bc   : > { %v2404_v63 = vpack.c.bf16 %v2382_v49, %v2381_v2  ;;  %v2976_v2 = vld [vmem:[#allocation2 + $0x3a] sm:$0xff] }
 0x1c2   : > { %7510 = vmatmul.mubr.bf16.vlgmr.msra.gmra.mrb[0].mxu0 %v9856_v4 }
 0x1c3   : > { %7542 = vmatpush3.bf16.msra.mxu0 %v8758_v9  ;;  %7513 = vmatprep.mubr.bf16.mxu0 %v9858_v41  ;;  %v8780_v9 = vld [vmem:[%s10938_s2 + $0x1f0] sm:$0xff]  }
 0x1c4   : > { %7543 = vmatprep.subr.bf16.mxu0 %v8759_v13 }
 0x1c7   : > { %7544 = vmatpush3.bf16.msra.mxu0 %v8759_v13  ;;  %v2405_v13 = vpack.c.bf16 %v2384_v52, %v2383_v11  ;;  %v2977_v52 = vld [vmem:[#allocation2 + $0x4a] sm:$0xff] }
 0x1c8   : > { %7545 = vmatprep.subr.bf16.mxu0 %v8760_v47 }
 0x1ca   : > { %7514 = vmatmul.mubr.bf16.gmra.mrb[4].mxu0 %v9513_v14  ;;  %v8764_v14 = vld [vmem:[%s10938_s2 + $0x170] sm:$0xff]  }
 0x1cb   : > { %7517 = vmatprep.mubr.bf16.mxu0 %v9582_v6  ;;  %7546 = vmatpush3.bf16.msra.mxu0 %v8760_v47  ;;  %v8765_v6 = vld [vmem:[%s10938_s2 + $0x178] sm:$0xff]  }
 0x1cc   : > { %7547 = vmatprep.subr.bf16.mxu0 %v8761_v15  ;;  %v2385_v47 = vld [vmem:[#allocation2 + $0x138] sm:$0xff] }
 0x1cf   : > { %7548 = vmatpush3.bf16.msra.mxu0 %v8761_v15  ;;  %v2386_v15 = vld [vmem:[#allocation2 + $0x140] sm:$0xff] }
 0x1d0   : > { %7549 = vmatprep.subr.bf16.mxu0 %v8762_v24 }
 0x1d2   : > { %7518 = vmatmul.mubr.bf16.gmra.mrb[8].mxu0 %v9588_v46  ;;  %v8766_v46 = vld [vmem:[%s10938_s2 + $0x180] sm:$0xff]  }
 0x1d3   : > { %7521 = vmatprep.mubr.bf16.mxu0 %v9618_v16  ;;  %7550 = vmatpush3.bf16.msra.mxu0 %v8762_v24  ;;  %v9902_v16 = vpack.c.bf16 %v503_v38, %v502_v0  ;;  %v2363_v0 = vld [vmem:[#allocation2 + $0x30] sm:$0xff]  ;;  %v2364_v38 = vld [vmem:[#allocation2 + $0x38] sm:$0xff] }
 0x1d4   : > { %7551 = vmatprep.subr.bf16.mxu0 %v8763_v48  ;;  %v2387_v24 = vld [vmem:[#allocation2 + $0x150] sm:$0xff] }
 0x1d7   : > { %7552 = vmatpush3.bf16.msra.mxu0 %v8763_v48  ;;  %v2388_v48 = vld [vmem:[#allocation2 + $0x158] sm:$0xff] }
 0x1d8   : > { %7553 = vmatprep.subr.bf16.mxu0 %v8764_v14 }
 0x1da   : > { %7522 = vmatmul.mubr.bf16.gmra.mrb[12].mxu0 %v9624_v3  ;;  %v8767_v3 = vld [vmem:[%s10938_s2 + $0x188] sm:$0xff]  }
 0x1db   : > { %7525 = vmatprep.mubr.bf16.mxu0 %v9638_v55  ;;  %7554 = vmatpush3.bf16.msra.mxu0 %v8764_v14  ;;  %v8769_v55 = vld [vmem:[%s10938_s2 + $0x198] sm:$0xff]   ;;  %v2406_v14 = vpack.c.bf16 %v2386_v15, %v2385_v47 }
 0x1dc   : > { %7555 = vmatprep.subr.bf16.mxu0 %v8765_v6 }
 0x1df   : > { %7556 = vmatpush3.bf16.msra.mxu0 %v8765_v6  ;;  %v2407_v6 = vpack.c.bf16 %v2388_v48, %v2387_v24  ;;  %v2981_v24 = vld [vmem:[#allocation2 + $0x7a] sm:$0xff]  ;;  %v2982_v48 = vld [vmem:[#allocation2 + $0x82] sm:$0xff] }
 0x1e0   : > { %7589 = vmatprep.subr.bf16.mxu0 %v8766_v46 }
 0x1e2   : > { %7526 = vmatmul.mubr.bf16.gmra.mrb[16].mxu0 %v9640_v56  ;;  %v8770_v56 = vld [vmem:[%s10938_s2 + $0x1a0] sm:$0xff]  }
 0x1e3   : > { %7529 = vmatprep.mubr.bf16.mxu0 %v9644_v58  ;;  %v8771_v58 = vld [vmem:[%s10938_s2 + $0x1a8] sm:$0xff]  }
 0x1ea   : > { %7530 = vmatmul.mubr.bf16.gmra.mrb[20].mxu0 %v9646_v7  ;;  %v8772_v7 = vld [vmem:[%s10938_s2 + $0x1b0] sm:$0xff]  }
 0x1eb   : > { %7533 = vmatprep.mubr.bf16.mxu0 %v9612_v12  ;;  %v8768_v12 = vld [vmem:[%s10938_s2 + $0x190] sm:$0xff]  }
 0x1f2   : > { %7534 = vmatmul.mubr.bf16.gmra.mrb[24].mxu0 %v9650_v19  ;;  %v8773_v19 = vld [vmem:[%s10938_s2 + $0x1b8] sm:$0xff]  }
 0x1f3   : > { %7537 = vmatprep.mubr.bf16.mxu0 %v9654_v30  ;;  %v8774_v30 = vld [vmem:[%s10938_s2 + $0x1c0] sm:$0xff]  }
 0x1fa   : > { %7538 = vmatmul.mubr.bf16.gmra.mrb[28].mxu0 %v9902_v16 }
 0x1fb   : > { %7557 = vmatprep.mubr.bf16.mxu0 %v9745_v39  ;;  %v9944_v39 = vpack.c.bf16 %v2087_v10, %v2086_v37  ;;  %v2677_v37 = vld [vmem:[#allocation2 + $0x91] sm:$0xff] }
 0x202   : > { %7558 = vmatmul.mubr.bf16.vlgmr.msra.gmra.mrb[0].mxu0 %v9747_v44  ;;  %v2395_v44 = vpack.c.bf16 %v2364_v38, %v2363_v0  ;;  %v8785_v0 = vld [vmem:[%s10938_s2 + $0x218] sm:$0xff]  }
 0x203   : > { %7590 = vmatpush3.bf16.msra.mxu0 %v8766_v46  ;;  %7561 = vmatprep.mubr.bf16.mxu0 %v9757_v53  ;;  %v2365_v53 = vld [vmem:[#allocation2 + $0x48] sm:$0xff]  ;;  %v2680_v38 = vld [vmem:[#allocation2 + $0xb1] sm:$0xff] }
 0x204   : > { %7591 = vmatprep.subr.bf16.mxu0 %v8767_v3  ;;  %v2389_v46 = vld [vmem:[#allocation2 + $0x168] sm:$0xff] }
 0x207   : > { %7592 = vmatpush3.bf16.msra.mxu0 %v8767_v3  ;;  %v2390_v3 = vld [vmem:[#allocation2 + $0x170] sm:$0xff] }
 0x208   : > { %7593 = vmatprep.subr.bf16.mxu0 %v8768_v12 }
 0x20a   : > { %7562 = vmatmul.mubr.bf16.gmra.mrb[4].mxu0 %v9759_v57  ;;  %v2366_v57 = vld [vmem:[#allocation2 + $0x50] sm:$0xff] }
 0x20b   : > { %7565 = vmatprep.mubr.bf16.mxu0 %v9769_v36  ;;  %7594 = vmatpush3.bf16.msra.mxu0 %v8768_v12  ;;  %v2367_v36 = vld [vmem:[#allocation2 + $0x60] sm:$0xff]  ;;  %v2408_v12 = vpack.c.bf16 %v2390_v3, %v2389_v46  ;;  %v2985_v3 = vld [vmem:[#allocation2 + $0xaa] sm:$0xff] }
 0x20c   : > { %7595 = vmatprep.subr.bf16.mxu0 %v8769_v55 }
 0x20f   : > { %7596 = vmatpush3.bf16.msra.mxu0 %v8769_v55  ;;  %v2673_v55 = vld [vmem:[#allocation2 + $0x61] sm:$0xff] }
 0x210   : > { %7597 = vmatprep.subr.bf16.mxu0 %v8770_v56 }
 0x212   : > { %7566 = vmatmul.mubr.bf16.gmra.mrb[8].mxu0 %v9771_v60  ;;  %v2368_v60 = vld [vmem:[#allocation2 + $0x68] sm:$0xff] }
 0x213   : > { %7569 = vmatprep.mubr.bf16.mxu0 %v9781_v59  ;;  %7598 = vmatpush3.bf16.msra.mxu0 %v8770_v56  ;;  %v2396_v59 = vpack.c.bf16 %v2366_v57, %v2365_v53  ;;  %v2674_v56 = vld [vmem:[#allocation2 + $0x69] sm:$0xff]  ;;  %v8786_v57 = vld [vmem:[%s10938_s2 + $0x220] sm:$0xff]  }
 0x214   : > { %7599 = vmatprep.subr.bf16.mxu0 %v8771_v58  ;;  %v2682_v53 = vld [vmem:[#allocation2 + $0xc9] sm:$0xff] }
 0x217   : > { %7600 = vmatpush3.bf16.msra.mxu0 %v8771_v58  ;;  %v2703_v58 = vpack.c.bf16 %v2674_v56, %v2673_v55  ;;  %v2987_v55 = vld [vmem:[#allocation2 + $0xc2] sm:$0xff]  ;;  %v2988_v56 = vld [vmem:[#allocation2 + $0xca] sm:$0xff] }
 0x218   : > { %7601 = vmatprep.subr.bf16.mxu0 %v8772_v7 }
 0x21a   : > { %7570 = vmatmul.mubr.bf16.gmra.mrb[12].mxu0 %v9783_v54  ;;  %v2397_v54 = vpack.c.bf16 %v2368_v60, %v2367_v36 }
 0x21b   : > { %7573 = vmatprep.mubr.bf16.mxu0 %v9793_v22  ;;  %7602 = vmatpush3.bf16.msra.mxu0 %v8772_v7  ;;  %v8775_v22 = vld [vmem:[%s10938_s2 + $0x1c8] sm:$0xff]  }
 0x21c   : > { %7603 = vmatprep.subr.bf16.mxu0 %v8773_v19  ;;  %v8783_v7 = vld [vmem:[%s10938_s2 + $0x208] sm:$0xff]  }
 0x21f   : > { %7604 = vmatpush3.bf16.msra.mxu0 %v8773_v19  ;;  %v2675_v19 = vld [vmem:[#allocation2 + $0x79] sm:$0xff] }
 0x220   : > { %7637 = vmatprep.subr.bf16.mxu0 %v8774_v30 }
 0x222   : > { %7574 = vmatmul.mubr.bf16.gmra.mrb[16].mxu0 %v9795_v43  ;;  %v2369_v43 = vld [vmem:[#allocation2 + $0x78] sm:$0xff] }
 0x223   : > { %7577 = vmatprep.mubr.bf16.mxu0 %v9799_v61  ;;  %v2371_v61 = vld [vmem:[#allocation2 + $0x90] sm:$0xff]  ;;  %v2398_v5 = vpack.c.bf16 %v2370_v27, %v2369_v43  ;;  %v2686_v27 = vld [vmem:[#allocation2 + $0xf9] sm:$0xff] }
 0x224   : > { %v2685_v43 = vld [vmem:[#allocation2 + $0xf1] sm:$0xff] }
 0x22a   : > { %7578 = vmatmul.mubr.bf16.gmra.mrb[20].mxu0 %v9801_v29  ;;  %v2372_v29 = vld [vmem:[#allocation2 + $0x98] sm:$0xff] }
 0x22b   : > { %7581 = vmatprep.mubr.bf16.mxu0 %v9805_v31  ;;  %v2399_v34 = vpack.c.bf16 %v2372_v29, %v2371_v61  ;;  %v2373_v31 = vld [vmem:[#allocation2 + $0xa8] sm:$0xff]  ;;  %v8788_v61 = vld [vmem:[%s10938_s2 + $0x230] sm:$0xff]  }
 0x232   : > { %7582 = vmatmul.mubr.bf16.gmra.mrb[24].mxu0 %v9807_v33  ;;  %v2374_v33 = vld [vmem:[#allocation2 + $0xb0] sm:$0xff] }
 0x233   : > { %7585 = vmatprep.mubr.bf16.mxu0 %v9811_v26  ;;  %v8778_v26 = vld [vmem:[%s10938_s2 + $0x1e0] sm:$0xff]   ;;  %v2400_v40 = vpack.c.bf16 %v2374_v33, %v2373_v31  ;;  %v2690_v33 = vld [vmem:[#allocation2 + $0x129] sm:$0xff] }
 0x234   : > { %v2689_v31 = vld [vmem:[#allocation2 + $0x121] sm:$0xff] }
 0x235   : > { %v2711_v35 = vpack.c.bf16 %v2690_v33, %v2689_v31 }
 0x23a   : > { %7586 = vmatmul.mubr.bf16.gmra.mrb[28].mxu0 %v9944_v39 }
 0x23b   : > { %7605 = vmatprep.mubr.bf16.mxu0 %v2395_v44  ;;  %v2681_v44 = vld [vmem:[#allocation2 + $0xc1] sm:$0xff] }
 0x23c   : > { %v2707_v60 = vpack.c.bf16 %v2682_v53, %v2681_v44 }
 0x242   : > { %7606 = vmatmul.mubr.bf16.vlgmr.msra.gmra.mrb[0].mxu0 %v2396_v59  ;;  %v8787_v59 = vld [vmem:[%s10938_s2 + $0x228] sm:$0xff]  }
 0x243   : > { %7638 = vmatpush3.bf16.msra.mxu0 %v8774_v30  ;;  %7609 = vmatprep.mubr.bf16.mxu0 %v2397_v54  ;;  %v2676_v30 = vld [vmem:[#allocation2 + $0x81] sm:$0xff]  ;;  %v2683_v54 = vld [vmem:[#allocation2 + $0xd9] sm:$0xff] }
 0x244   : > { %7639 = vmatprep.subr.bf16.mxu0 %v8775_v22 }
 0x247   : > { %7640 = vmatpush3.bf16.msra.mxu0 %v8775_v22  ;;  %v2684_v22 = vld [vmem:[#allocation2 + $0xe1] sm:$0xff] }
 0x248   : > { %7641 = vmatprep.subr.bf16.mxu0 %v8776_v32  ;;  %v2708_v29 = vpack.c.bf16 %v2684_v22, %v2683_v54 }
 0x24a   : > { %7610 = vmatmul.mubr.bf16.gmra.mrb[4].mxu0 %v2398_v5  ;;  %v8789_v5 = vld [vmem:[%s10938_s2 + $0x238] sm:$0xff]  }
 0x24b   : > { %7613 = vmatprep.mubr.bf16.mxu0 %v2399_v34  ;;  %7642 = vmatpush3.bf16.msra.mxu0 %v8776_v32  ;;  %v2709_v32 = vpack.c.bf16 %v2686_v27, %v2685_v43  ;;  %v2687_v34 = vld [vmem:[#allocation2 + $0x109] sm:$0xff]  ;;  %v3002_v27 = vld [vmem:[#allocation2 + $0x172] sm:$0xff] }
 0x24c   : > { %7643 = vmatprep.subr.bf16.mxu0 %v8777_v28  ;;  %v3001_v43 = vld [vmem:[#allocation2 + $0x16a] sm:$0xff] }
 0x24f   : > { %7644 = vmatpush3.bf16.msra.mxu0 %v8777_v28  ;;  %v2688_v28 = vld [vmem:[#allocation2 + $0x111] sm:$0xff] }
 0x250   : > { %7645 = vmatprep.subr.bf16.mxu0 %v8778_v26  ;;  %v2710_v23 = vpack.c.bf16 %v2688_v28, %v2687_v34 }
 0x252   : > { %7614 = vmatmul.mubr.bf16.gmra.mrb[8].mxu0 %v2400_v40  ;;  %v2692_v40 = vld [vmem:[#allocation2 + $0x141] sm:$0xff] }
 0x253   : > { %7617 = vmatprep.mubr.bf16.mxu0 %v2401_v45  ;;  %7646 = vmatpush3.bf16.msra.mxu0 %v8778_v26  ;;  %v2691_v26 = vld [vmem:[#allocation2 + $0x139] sm:$0xff]  ;;  %v2693_v45 = vld [vmem:[#allocation2 + $0x151] sm:$0xff] }
 0x254   : > { %7647 = vmatprep.subr.bf16.mxu0 %v8779_v17  ;;  %v2712_v8 = vpack.c.bf16 %v2692_v40, %v2691_v26 }
 0x257   : > { %7648 = vmatpush3.bf16.msra.mxu0 %v8779_v17  ;;  %v2694_v17 = vld [vmem:[#allocation2 + $0x159] sm:$0xff] }
 0x258   : > { %7649 = vmatprep.subr.bf16.mxu0 %v8780_v9  ;;  %v2713_v18 = vpack.c.bf16 %v2694_v17, %v2693_v45 }
 0x25a   : > { %7618 = vmatmul.mubr.bf16.gmra.mrb[12].mxu0 %v2402_v51  ;;  %v2699_v51 = vld [vmem:[#allocation2 + $0x199] sm:$0xff] }
 0x25b   : > { %7621 = vmatprep.mubr.bf16.mxu0 %v2403_v50  ;;  %7650 = vmatpush3.bf16.msra.mxu0 %v8780_v9  ;;  %v2714_v9 = vpack.c.bf16 %v2696_v42, %v2695_v21  ;;  %v2700_v50 = vld [vmem:[#allocation2 + $0x1a1] sm:$0xff] }
 0x25c   : > { %7651 = vmatprep.subr.bf16.mxu0 %v8781_v1  ;;  %v2716_v49 = vpack.c.bf16 %v2700_v50, %v2699_v51 }
 0x25f   : > { %7652 = vmatpush3.bf16.msra.mxu0 %v8781_v1  ;;  %v2975_v1 = vld [vmem:[#allocation2 + $0x32] sm:$0xff] }
 0x260   : > { %7685 = vmatprep.subr.bf16.mxu0 %v8782_v25  ;;  %v3007_v11 = vpack.c.bf16 %v2976_v2, %v2975_v1 }
 0x262   : > { %7622 = vmatmul.mubr.bf16.gmra.mrb[16].mxu0 %v2404_v63  ;;  %v2979_v63 = vld [vmem:[#allocation2 + $0x62] sm:$0xff] }
 0x263   : > { %7625 = vmatprep.mubr.bf16.mxu0 %v2405_v13  ;;  %v2980_v13 = vld [vmem:[#allocation2 + $0x6a] sm:$0xff] }
 0x264   : > { %v3009_v15 = vpack.c.bf16 %v2980_v13, %v2979_v63 }
 0x26a   : > { %7626 = vmatmul.mubr.bf16.gmra.mrb[20].mxu0 %v2406_v14  ;;  %v2983_v14 = vld [vmem:[#allocation2 + $0x92] sm:$0xff] }
 0x26b   : > { %7629 = vmatprep.mubr.bf16.mxu0 %v2407_v6  ;;  %v3010_v6 = vpack.c.bf16 %v2982_v48, %v2981_v24 }
 0x272   : > { %7630 = vmatmul.mubr.bf16.gmra.mrb[24].mxu0 %v2408_v12  ;;  %v2986_v12 = vld [vmem:[#allocation2 + $0xb2] sm:$0xff] }
 0x273   : > { %7633 = vmatprep.mubr.bf16.mxu0 %v9853_v20  ;;  %v2678_v20 = vld [vmem:[#allocation2 + $0x99] sm:$0xff] }
 0x274   : > { %v2705_v10 = vpack.c.bf16 %v2678_v20, %v2677_v37  ;;  %v2991_v37 = vld [vmem:[#allocation2 + $0xf2] sm:$0xff]  ;;  %v2992_v20 = vld [vmem:[#allocation2 + $0xfa] sm:$0xff] }
 0x27a   : > { %7634 = vmatmul.mubr.bf16.gmra.mrb[28].mxu0 %v9656_v62  ;;  %v8784_v62 = vld [vmem:[%s10938_s2 + $0x210] sm:$0xff]  }
 0x27b   : > { %7653 = vmatprep.mubr.bf16.mxu0 %v9856_v4  ;;  %v2704_v4 = vpack.c.bf16 %v2676_v30, %v2675_v19  ;;  %v2989_v19 = vld [vmem:[#allocation2 + $0xda] sm:$0xff]  ;;  %v2990_v30 = vld [vmem:[#allocation2 + $0xe2] sm:$0xff] }
 0x282   : > { %7654 = vmatmul.mubr.bf16.vlgmr.msra.gmra.mrb[0].mxu0 %v9858_v41  ;;  %v2679_v41 = vld [vmem:[#allocation2 + $0xa9] sm:$0xff] }
 0x283   : > { %7686 = vmatpush3.bf16.msra.mxu0 %v8782_v25  ;;  %7657 = vmatprep.mubr.bf16.mxu0 %v2703_v58  ;;  %v2706_v36 = vpack.c.bf16 %v2680_v38, %v2679_v41  ;;  %v2978_v25 = vld [vmem:[#allocation2 + $0x52] sm:$0xff]  ;;  %v3012_v58 = vpack.c.bf16 %v2986_v12, %v2985_v3  ;;  %v2995_v41 = vld [vmem:[#allocation2 + $0x122] sm:$0xff]  ;;  %v2996_v38 = vld [vmem:[#allocation2 + $0x12a] sm:$0xff] }
 0x284   : > { %7687 = vmatprep.subr.bf16.mxu0 %v8783_v7  ;;  %v3008_v47 = vpack.c.bf16 %v2978_v25, %v2977_v52  ;;  %v3017_v53 = vpack.c.bf16 %v2996_v38, %v2995_v41 }
 0x287   : > { %7688 = vmatpush3.bf16.msra.mxu0 %v8783_v7  ;;  %v3013_v7 = vpack.c.bf16 %v2988_v56, %v2987_v55 }
 0x288   : > { %7689 = vmatprep.subr.bf16.mxu0 %v8784_v62 }
 0x28a   : > { %7658 = vmatmul.mubr.bf16.gmra.mrb[4].mxu0 %v2704_v4  ;;  %v3015_v4 = vpack.c.bf16 %v2992_v20, %v2991_v37 }
 0x28b   : > { %7661 = vmatprep.mubr.bf16.mxu0 %v2705_v10  ;;  %7690 = vmatpush3.bf16.msra.mxu0 %v8784_v62  ;;  %v3014_v62 = vpack.c.bf16 %v2990_v30, %v2989_v19  ;;  %v2993_v10 = vld [vmem:[#allocation2 + $0x10a] sm:$0xff] }
 0x28c   : > { %7691 = vmatprep.subr.bf16.mxu0 %v8785_v0 }
 0x28f   : > { %7692 = vmatpush3.bf16.msra.mxu0 %v8785_v0  ;;  %v2994_v0 = vld [vmem:[#allocation2 + $0x112] sm:$0xff] }
 0x290   : > { %7693 = vmatprep.subr.bf16.mxu0 %v8786_v57  ;;  %v3016_v44 = vpack.c.bf16 %v2994_v0, %v2993_v10 }
 0x292   : > { %7662 = vmatmul.mubr.bf16.gmra.mrb[8].mxu0 %v2706_v36  ;;  %v2998_v36 = vld [vmem:[#allocation2 + $0x142] sm:$0xff] }
 0x293   : > { %7665 = vmatprep.mubr.bf16.mxu0 %v2707_v60  ;;  %7694 = vmatpush3.bf16.msra.mxu0 %v8786_v57  ;;  %v2997_v57 = vld [vmem:[#allocation2 + $0x13a] sm:$0xff]  ;;  %v2999_v60 = vld [vmem:[#allocation2 + $0x152] sm:$0xff] }
 0x294   : > { %7695 = vmatprep.subr.bf16.mxu0 %v8787_v59  ;;  %v3018_v54 = vpack.c.bf16 %v2998_v36, %v2997_v57 }
 0x297   : > { %7696 = vmatpush3.bf16.msra.mxu0 %v8787_v59  ;;  %v3000_v59 = vld [vmem:[#allocation2 + $0x15a] sm:$0xff] }
 0x298   : > { %7697 = vmatprep.subr.bf16.mxu0 %v8788_v61  ;;  %v3019_v22 = vpack.c.bf16 %v3000_v59, %v2999_v60 }
 0x29a   : > { %7666 = vmatmul.mubr.bf16.gmra.mrb[12].mxu0 %v2708_v29  ;;  %v3005_v29 = vld [vmem:[#allocation2 + $0x19a] sm:$0xff] }
 0x29b   : > { %7669 = vmatprep.mubr.bf16.mxu0 %v2709_v32  ;;  %7698 = vmatpush3.bf16.msra.mxu0 %v8788_v61  ;;  %v3020_v61 = vpack.c.bf16 %v3002_v27, %v3001_v43  ;;  %v3006_v32 = vld [vmem:[#allocation2 + $0x1a2] sm:$0xff] }
 0x29c   : > { %7699 = vmatprep.subr.bf16.mxu0 %v8789_v5  ;;  %v8790_v27 = vld [vmem:[%s10940_s4] sm:$0xff]  }
 0x29d   : > { %7733 = vmatprep.subr.bf16.mxu1 %v8790_v27 }
 0x29e   : > { %7734 = vmatpush3.bf16.msra.mxu1 %v8790_v27 }
 0x29f   : > { %7700 = vmatpush3.bf16.msra.mxu0 %v8789_v5  ;;  %v3022_v5 = vpack.c.bf16 %v3006_v32, %v3005_v29 }
 0x2a2   : > { %7670 = vmatmul.mubr.bf16.gmra.mrb[16].mxu0 %v2710_v23 }
 0x2a3   : > { %7673 = vmatprep.mubr.bf16.mxu0 %v2711_v35 }
 0x2aa   : > { %7674 = vmatmul.mubr.bf16.gmra.mrb[20].mxu0 %v2712_v8 }
 0x2ab   : > { %7677 = vmatprep.mubr.bf16.mxu0 %v2713_v18 }
 0x2b2   : > { %7678 = vmatmul.mubr.bf16.gmra.mrb[24].mxu0 %v2714_v9 }
 0x2b3   : > { %7681 = vmatprep.mubr.bf16.mxu0 %v9902_v16  ;;  %v2984_v16 = vld [vmem:[#allocation2 + $0x9a] sm:$0xff] }
 0x2b4   : > { %v3011_v46 = vpack.c.bf16 %v2984_v16, %v2983_v14 }
 0x2ba   : > { %7682 = vmatmul.mubr.bf16.gmra.mrb[28].mxu0 %v2716_v49 }
 0x2bb   : > { %7701 = vmatprep.mubr.bf16.mxu0 %v3007_v11 }
 0x2c2   : > { %7702 = vmatmul.mubr.bf16.vlgmr.msra.gmra.mrb[0].mxu0 %v3008_v47 }
 0x2c3   : > { %7705 = vmatprep.mubr.bf16.mxu0 %v3009_v15 }
 0x2ca   : > { %7706 = vmatmul.mubr.bf16.gmra.mrb[4].mxu0 %v3010_v6 }
 0x2cb   : > { %7709 = vmatprep.mubr.bf16.mxu0 %v3011_v46 }
 0x2d2   : > { %7710 = vmatmul.mubr.bf16.gmra.mrb[8].mxu0 %v3012_v58 }
 0x2d3   : > { %7713 = vmatprep.mubr.bf16.mxu0 %v3013_v7 }
 0x2da   : > { %7714 = vmatmul.mubr.bf16.gmra.mrb[12].mxu0 %v3014_v62 }
 0x2db   : > { %7717 = vmatprep.mubr.bf16.mxu0 %v3015_v4 }
 0x2e2   : > { %7718 = vmatmul.mubr.bf16.gmra.mrb[16].mxu0 %v3016_v44 }
 0x2e3   : > { %7721 = vmatprep.mubr.bf16.mxu0 %v3017_v53 }
 0x2ea   : > { %7722 = vmatmul.mubr.bf16.gmra.mrb[20].mxu0 %v3018_v54 }
 0x2eb   : > { %7725 = vmatprep.mubr.bf16.mxu0 %v3019_v22 }
 0x2f2   : > { %7726 = vmatmul.mubr.bf16.gmra.mrb[24].mxu0 %v3020_v61 }
 0x2f3   : > { %7729 = vmatprep.mubr.bf16.mxu0 %v9944_v39 }
 0x2fa   : > { %7730 = vmatmul.mubr.bf16.gmra.mrb[28].mxu0 %v3022_v5  ;;  %v8791_v5 = vld [vmem:[%s10940_s4 + $0x8] sm:$0xff]  }
 0x2fb   : > { %7735 = vmatprep.subr.bf16.mxu1 %v8791_v5 }
 0x2fc   : > { %7736 = vmatpush3.bf16.msra.mxu1 %v8791_v5 }
 0x395   : > { %v9998_v34 = vpop.f32.mrb[0].mxu0 }
 0x396   : > { %v10000_v28 = vpop.f32.mrb[1].mxu0 }
 0x397   : > { %v10002_v31 = vpop.f32.mrb[2].mxu0 }
 0x398   : > { %v10004_v33 = vpop.f32.mrb[3].mxu0 }
 0x399   : > { %v3281_v23 = vadd.f32 %v10004_v33, %v10000_v28 }
 0x39b   : > { %v3282_v35 = vadd.f32 %v9998_v34, %v3281_v23 }
 0x39d   : > { %v10009_v26 = vpop.f32.mrb[4].mxu0  ;;  %v3283_v39 = vadd.f32 %v10002_v31, %v3282_v35 }
 0x39e   : > { %v10012_v40 = vpop.f32.mrb[5].mxu0 }
 0x39f   : > { %v3284_v45 = vadd.f32 %v3283_v39, %v10012_v40  ;;  %v10015_v17 = vpop.f32.mrb[6].mxu0  ;;  %v8792_v39 = vld [vmem:[%s10940_s4 + $0x10] sm:$0xff]  }
 0x3a0   : > { %v10017_v8 = vpop.f32.mrb[7].mxu0  ;;  %7737 = vmatprep.subr.bf16.mxu1 %v8792_v39 }
 0x3a1   : > { %v3285_v18 = vadd.f32 %v3284_v45, %v10017_v8  ;;  %7738 = vmatpush3.bf16.msra.mxu1 %v8792_v39 }
 0x3a3   : > { %v3286_v21 = vadd.f32 %v10009_v26, %v3285_v18 }
 0x3a5   : > { %v10021_v42 = vpop.f32.mrb[8].mxu0  ;;  %v3287_v9 = vadd.f32 %v10015_v17, %v3286_v21  ;;  %v8793_v21 = vld [vmem:[%s10940_s4 + $0x18] sm:$0xff]  }
 0x3a6   : > { %v10024_v51 = vpop.f32.mrb[9].mxu0  ;;  %7739 = vmatprep.subr.bf16.mxu1 %v8793_v21 }
 0x3a7   : > { %v3288_v50 = vadd.f32 %v3287_v9, %v10024_v51  ;;  %v10027_v1 = vpop.f32.mrb[10].mxu0  ;;  %7740 = vmatpush3.bf16.msra.mxu1 %v8793_v21 }
 0x3a8   : > { %v10029_v2 = vpop.f32.mrb[11].mxu0 }
 0x3a9   : > { %v3289_v49 = vadd.f32 %v3288_v50, %v10029_v2 }
 0x3ab   : > { %v3290_v11 = vadd.f32 %v10021_v42, %v3289_v49  ;;  %v8794_v49 = vld [vmem:[%s10940_s4 + $0x20] sm:$0xff]  }
 0x3ac   : > { %7741 = vmatprep.subr.bf16.mxu1 %v8794_v49 }
 0x3ad   : > { %v10033_v52 = vpop.f32.mrb[12].mxu0  ;;  %v3291_v25 = vadd.f32 %v10027_v1, %v3290_v11  ;;  %7742 = vmatpush3.bf16.msra.mxu1 %v8794_v49 }
 0x3ae   : > { %v10036_v63 = vpop.f32.mrb[13].mxu0 }
 0x3af   : > { %v3292_v13 = vadd.f32 %v3291_v25, %v10036_v63  ;;  %v10039_v47 = vpop.f32.mrb[14].mxu0 }
 0x3b0   : > { %v10041_v15 = vpop.f32.mrb[15].mxu0 }
 0x3b1   : > { %v3293_v24 = vadd.f32 %v3292_v13, %v10041_v15  ;;  %v8795_v13 = vld [vmem:[%s10940_s4 + $0x28] sm:$0xff]  }
 0x3b2   : > { %7743 = vmatprep.subr.bf16.mxu1 %v8795_v13 }
 0x3b3   : > { %v3294_v48 = vadd.f32 %v10033_v52, %v3293_v24  ;;  %7744 = vmatpush3.bf16.msra.mxu1 %v8795_v13 }
 0x3b5   : > { %v10045_v14 = vpop.f32.mrb[16].mxu0  ;;  %v3295_v16 = vadd.f32 %v10039_v47, %v3294_v48 }
 0x3b6   : > { %v10048_v6 = vpop.f32.mrb[17].mxu0 }
 0x3b7   : > { %v3296_v46 = vadd.f32 %v3295_v16, %v10048_v6  ;;  %v10051_v3 = vpop.f32.mrb[18].mxu0 }
 0x3b8   : > { %v10053_v12 = vpop.f32.mrb[19].mxu0 }
 0x3b9   : > { %v3297_v55 = vadd.f32 %v3296_v46, %v10053_v12 }
 0x3bb   : > { %v3298_v56 = vadd.f32 %v10045_v14, %v3297_v55 }
 0x3bd   : > { %v10057_v58 = vpop.f32.mrb[20].mxu0  ;;  %v3299_v7 = vadd.f32 %v10051_v3, %v3298_v56 }
 0x3be   : > { %v10060_v19 = vpop.f32.mrb[21].mxu0 }
 0x3bf   : > { %v3300_v30 = vadd.f32 %v3299_v7, %v10060_v19  ;;  %v10063_v37 = vpop.f32.mrb[22].mxu0 }
 0x3c0   : > { %v10065_v20 = vpop.f32.mrb[23].mxu0 }
 0x3c1   : > { %v3301_v62 = vadd.f32 %v3300_v30, %v10065_v20 }
 0x3c3   : > { %v3302_v4 = vadd.f32 %v10057_v58, %v3301_v62 }
 0x3c5   : > { %v10069_v10 = vpop.f32.mrb[24].mxu0  ;;  %v3303_v0 = vadd.f32 %v10063_v37, %v3302_v4 }
 0x3c6   : > { %v10072_v41 = vpop.f32.mrb[25].mxu0 }
 0x3c7   : > { %v3304_v38 = vadd.f32 %v3303_v0, %v10072_v41  ;;  %v10075_v44 = vpop.f32.mrb[26].mxu0 }
 0x3c8   : > { %v10077_v53 = vpop.f32.mrb[27].mxu0 }
 0x3c9   : > { %v3305_v57 = vadd.f32 %v3304_v38, %v10077_v53 }
 0x3cb   : > { %v3306_v36 = vadd.f32 %v10069_v10, %v3305_v57 }
 0x3cd   : > { %v10081_v60 = vpop.f32.mrb[28].mxu0  ;;  %v3307_v59 = vadd.f32 %v10075_v44, %v3306_v36 }
 0x3ce   : > { %v10084_v54 = vpop.f32.mrb[29].mxu0 }
 0x3cf   : > { %v3308_v22 = vadd.f32 %v3307_v59, %v10084_v54  ;;  %v10087_v43 = vpop.f32.mrb[30].mxu0 }
 0x3d0   : > { %v10092_v61 = vpop.f32.mrb[31].mxu0 }
 0x3d1   : > { %v3309_v29 = vadd.f32 %v3308_v22, %v10092_v61 }
 0x3d3   : > { %v3310_v32 = vadd.f32 %v10081_v60, %v3309_v29 }
 0x3d5   : > { %v3311_v23 = vadd.f32 %v10087_v43, %v3310_v32 }
 0x3d7   : > { %v3312_v35 = vrot.slane %v3311_v23, 4 }
 0x3d9   : > { %v3313_v45 = vadd.f32 %v3312_v35, %v3311_v23 }
 0x3db   : > { %v3314_v18 = vrot.slane %v3313_v45, 2 }
 0x3dd   : > { %v3315_v9 = vadd.f32 %v3314_v18, %v3313_v45 }
 0x3df   : > { %v3316_v50 = vrot.slane %v3315_v9, 1 }
 0x3e1   : > { %v3317_v11 = vadd.f32 %v3316_v50, %v3315_v9 }
 0x3e3   : > { %v3318_v25 = vmul.f32 0.00390625, %v3317_v11 }
 0x3e5   : > { %v10113_v24 = vsub.f32 %v10000_v28, %v3318_v25  ;;  %v10116_v48 = vsub.f32 %v10004_v33, %v3318_v25  ;;  %v10119_v16 = vsub.f32 %v9998_v34, %v3318_v25  ;;  %v10122_v46 = vsub.f32 %v10002_v31, %v3318_v25 }
 0x3e6   : > { %v10125_v55 = vsub.f32 %v10012_v40, %v3318_v25  ;;  %v10128_v56 = vsub.f32 %v10017_v8, %v3318_v25  ;;  %v10131_v7 = vsub.f32 %v10009_v26, %v3318_v25  ;;  %v10134_v28 = vsub.f32 %v10015_v17, %v3318_v25  ;;  %v8796_v26 = vld [vmem:[%s10940_s4 + $0x30] sm:$0xff]   ;;  %v8797_v17 = vld [vmem:[%s10940_s4 + $0x38] sm:$0xff]  }
 0x3e7   : > { %v10137_v34 = vsub.f32 %v10024_v51, %v3318_v25  ;;  %v10140_v31 = vsub.f32 %v10029_v2, %v3318_v25  ;;  %v10143_v33 = vsub.f32 %v10021_v42, %v3318_v25  ;;  %v10146_v40 = vsub.f32 %v10027_v1, %v3318_v25  ;;  %7745 = vmatprep.subr.bf16.mxu1 %v8796_v26 }
 0x3e8   : > { %v10155_v8 = vsub.f32 %v10036_v63, %v3318_v25  ;;  %v10158_v51 = vsub.f32 %v10041_v15, %v3318_v25  ;;  %v10161_v42 = vsub.f32 %v10033_v52, %v3318_v25  ;;  %v10164_v1 = vsub.f32 %v10039_v47, %v3318_v25  ;;  %7746 = vmatpush3.bf16.msra.mxu1 %v8796_v26 }
 0x3e9   : > { %v10167_v2 = vsub.f32 %v10048_v6, %v3318_v25  ;;  %v10170_v30 = vsub.f32 %v10053_v12, %v3318_v25  ;;  %v10173_v62 = vsub.f32 %v10045_v14, %v3318_v25  ;;  %v10176_v63 = vsub.f32 %v10051_v3, %v3318_v25  ;;  %7747 = vmatprep.subr.bf16.mxu1 %v8797_v17 }
 0x3ea   : > { %v10179_v15 = vsub.f32 %v10060_v19, %v3318_v25  ;;  %v10182_v52 = vsub.f32 %v10065_v20, %v3318_v25  ;;  %v10185_v47 = vsub.f32 %v10057_v58, %v3318_v25  ;;  %v10188_v6 = vsub.f32 %v10063_v37, %v3318_v25  ;;  %v10205_v58 = vld [vmem:[%s10940_s4 + $0x40] sm:$0xff]  }
 0x3eb   : > { %v10191_v14 = vsub.f32 %v10072_v41, %v3318_v25  ;;  %v10194_v3 = vsub.f32 %v10077_v53, %v3318_v25  ;;  %v10197_v12 = vsub.f32 %v10069_v10, %v3318_v25  ;;  %v10200_v19 = vsub.f32 %v10075_v44, %v3318_v25  ;;  %v8867_v53 = vld [vmem:[#allocation2] sm:$0xff] }
 0x3ec   : > { %v10208_v37 = vsub.f32 %v10084_v54, %v3318_v25  ;;  %v10211_v20 = vsub.f32 %v10092_v61, %v3318_v25  ;;  %v10214_v4 = vsub.f32 %v10081_v60, %v3318_v25  ;;  %v10217_v10 = vsub.f32 %v10087_v43, %v3318_v25  ;;  %7748 = vmatpush3.bf16.msra.mxu1 %v8797_v17 }
 0x3ed   : > { %7781 = vmatprep.subr.bf16.mxu1 %v10205_v58  ;;  %v3351_v0 = vmul.f32 %v10113_v24, %v10113_v24  ;;  %v3352_v41 = vmul.f32 %v10116_v48, %v10116_v48  ;;  %v3353_v38 = vmul.f32 %v10119_v16, %v10119_v16  ;;  %v3645_v57 = vpack.c.bf16 %v8867_v53, %v8867_v53 }
 0x3ee   : > { %v3354_v36 = vmul.f32 %v10122_v46, %v10122_v46  ;;  %v3355_v59 = vmul.f32 %v10125_v55, %v10125_v55  ;;  %v3356_v22 = vmul.f32 %v10128_v56, %v10128_v56  ;;  %v3357_v27 = vmul.f32 %v10131_v7, %v10131_v7 }
 0x3ef   : > { %v3383_v44 = vadd.f32 %v3352_v41, %v3351_v0  ;;  %7749 = vmatprep.mubr.bf16.mxu1 %v3645_v57  ;;  %v3358_v29 = vmul.f32 %v10134_v28, %v10134_v28  ;;  %v3359_v5 = vmul.f32 %v10137_v34, %v10137_v34  ;;  %v3360_v35 = vmul.f32 %v10140_v31, %v10140_v31 }
 0x3f0   : > { %v3361_v45 = vmul.f32 %v10143_v33, %v10143_v33  ;;  %v3362_v21 = vmul.f32 %v10146_v40, %v10146_v40  ;;  %v3363_v50 = vmul.f32 %v10155_v8, %v10155_v8  ;;  %v3364_v11 = vmul.f32 %v10158_v51, %v10158_v51 }
 0x3f1   : > { %v3384_v60 = vadd.f32 %v3383_v44, %v3353_v38  ;;  %v3365_v13 = vmul.f32 %v10161_v42, %v10161_v42  ;;  %v3366_v17 = vmul.f32 %v10164_v1, %v10164_v1  ;;  %v3367_v41 = vmul.f32 %v10167_v2, %v10167_v2 }
 0x3f2   : > { %v3368_v44 = vmul.f32 %v10170_v30, %v10170_v30  ;;  %v3369_v57 = vmul.f32 %v10173_v62, %v10173_v62 }
 0x3f3   : > { %v3385_v54 = vadd.f32 %v3384_v60, %v3354_v36  ;;  %v3370_v60 = vmul.f32 %v10176_v63, %v10176_v63 }
 0x3f5   : > { %v3386_v43 = vadd.f32 %v3385_v54, %v3355_v59  ;;  %v3371_v54 = vmul.f32 %v10179_v15, %v10179_v15 }
 0x3f7   : > { %v3387_v61 = vadd.f32 %v3386_v43, %v3356_v22  ;;  %v3372_v43 = vmul.f32 %v10182_v52, %v10182_v52 }
 0x3f9   : > { %v3388_v32 = vadd.f32 %v3387_v61, %v3357_v27  ;;  %v3373_v61 = vmul.f32 %v10185_v47, %v10185_v47 }
 0x3fb   : > { %v3389_v23 = vadd.f32 %v3388_v32, %v3358_v29  ;;  %v3374_v32 = vmul.f32 %v10188_v6, %v10188_v6 }
 0x3fd   : > { %v3390_v39 = vadd.f32 %v3389_v23, %v3359_v5  ;;  %v3375_v23 = vmul.f32 %v10191_v14, %v10191_v14 }
 0x3ff   : > { %v3391_v18 = vadd.f32 %v3390_v39, %v3360_v35  ;;  %v3376_v39 = vmul.f32 %v10194_v3, %v10194_v3 }
 0x401   : > { %v3392_v9 = vadd.f32 %v3391_v18, %v3361_v45  ;;  %v3377_v18 = vmul.f32 %v10197_v12, %v10197_v12 }
 0x403   : > { %v3393_v49 = vadd.f32 %v3392_v9, %v3362_v21  ;;  %v3378_v9 = vmul.f32 %v10200_v19, %v10200_v19 }
 0x405   : > { %v3394_v25 = vadd.f32 %v3393_v49, %v3363_v50  ;;  %v3379_v49 = vmul.f32 %v10208_v37, %v10208_v37 }
 0x407   : > { %v3395_v26 = vadd.f32 %v3394_v25, %v3364_v11  ;;  %v3380_v25 = vmul.f32 %v10211_v20, %v10211_v20 }
 0x409   : > { %v3396_v0 = vadd.f32 %v3395_v26, %v3365_v13  ;;  %v3381_v26 = vmul.f32 %v10214_v4, %v10214_v4 }
 0x40b   : > { %v3397_v38 = vadd.f32 %v3396_v0, %v3366_v17  ;;  %v3382_v0 = vmul.f32 %v10217_v10, %v10217_v10 }
 0x40d   : > { %v3398_v53 = vadd.f32 %v3397_v38, %v3367_v41 }
 0x40f   : > { %v3399_v36 = vadd.f32 %v3398_v53, %v3368_v44 }
 0x411   : > { %v3400_v59 = vadd.f32 %v3399_v36, %v3369_v57 }
 0x413   : > { %v3401_v22 = vadd.f32 %v3400_v59, %v3370_v60 }
 0x415   : > { %v3402_v27 = vadd.f32 %v3401_v22, %v3371_v54 }
 0x417   : > { %v3403_v29 = vadd.f32 %v3402_v27, %v3372_v43  ;;  %v10287_v27 = vld [vmem:[%s10939_s3] ss:$0 sm:$0xff] }
 0x419   : > { %v3404_v5 = vadd.f32 %v3403_v29, %v3373_v61 }
 0x41b   : > { %v3405_v35 = vadd.f32 %v3404_v5, %v3374_v32 }
 0x41d   : > { %v3406_v45 = vadd.f32 %v3405_v35, %v3375_v23 }
 0x41f   : > { %v3407_v21 = vadd.f32 %v3406_v45, %v3376_v39 }
 0x421   : > { %v3408_v50 = vadd.f32 %v3407_v21, %v3377_v18 }
 0x423   : > { %v3409_v11 = vadd.f32 %v3408_v50, %v3378_v9 }
 0x425   : > { %v3410_v13 = vadd.f32 %v3409_v11, %v3379_v49 }
 0x427   : > { %v3411_v17 = vadd.f32 %v3410_v13, %v3380_v25 }
 0x429   : > { %v3412_v41 = vadd.f32 %v3411_v17, %v3381_v26 }
 0x42b   : > { %v3413_v38 = vadd.f32 %v3412_v41, %v3382_v0 }
 0x42d   : > { %v3414_v44 = vrot.slane %v3413_v38, 4 }
 0x42f   : > { %v3415_v53 = vadd.f32 %v3414_v44, %v3413_v38 }
 0x431   : > { %v3416_v57 = vrot.slane %v3415_v53, 2 }
 0x433   : > { %v3417_v36 = vadd.f32 %v3416_v57, %v3415_v53 }
 0x435   : > { %v3418_v60 = vrot.slane %v3417_v36, 1 }
 0x437   : > { %v3419_v59 = vadd.f32 %v3418_v60, %v3417_v36 }
 0x439   : > { %v3420_v54 = vmul.f32 0.00390625, %v3419_v59 }
 0x43b   : > { %v3421_v22 = vadd.f32 1e-05, %v3420_v54 }
 0x43d   : > { %8864 = vrsqrt.f32 %v3421_v22 }
 0x447   : > { %v8865_v43 = vpop.eup %8864 }
 0x448   : > { %v3452_v61 = vmul.f32 %v8865_v43, %v10211_v20  ;;  %v3423_v29 = vmul.f32 %v8865_v43, %v10113_v24  ;;  %v3424_v32 = vmul.f32 %v8865_v43, %v10116_v48  ;;  %v3425_v5 = vmul.f32 %v8865_v43, %v10119_v16 }
 0x449   : > { %v3426_v23 = vmul.f32 %v8865_v43, %v10122_v46  ;;  %v3427_v35 = vmul.f32 %v8865_v43, %v10125_v55  ;;  %v3428_v39 = vmul.f32 %v8865_v43, %v10128_v56  ;;  %v3429_v45 = vmul.f32 %v8865_v43, %v10131_v7 }
 0x44a   : > { %v10298_v18 = vadd.f32 %v10287_v27, %v3452_v61  ;;  %v3430_v21 = vmul.f32 %v8865_v43, %v10134_v28  ;;  %v3431_v20 = vmul.f32 %v8865_v43, %v10137_v34  ;;  %v3432_v24 = vmul.f32 %v8865_v43, %v10140_v31 }
 0x44b   : > { %v3433_v48 = vmul.f32 %v8865_v43, %v10143_v33  ;;  %v3434_v16 = vmul.f32 %v8865_v43, %v10146_v40  ;;  %v3435_v46 = vmul.f32 %v8865_v43, %v10155_v8  ;;  %v3436_v55 = vmul.f32 %v8865_v43, %v10158_v51 }
 0x44c   : > { %v3523_v56 = vmax.f32 %v10298_v18, 0.0  ;;  %v3437_v7 = vmul.f32 %v8865_v43, %v10161_v42  ;;  %v3438_v9 = vmul.f32 %v8865_v43, %v10164_v1  ;;  %v3439_v28 = vmul.f32 %v8865_v43, %v10167_v2  ;;  %v8801_v18 = vld [vmem:[%s10940_s4 + $0x58] sm:$0xff]  }
 0x44d   : > { %v3440_v34 = vmul.f32 %v8865_v43, %v10170_v30  ;;  %v3441_v31 = vmul.f32 %v8865_v43, %v10173_v62  ;;  %v3442_v33 = vmul.f32 %v8865_v43, %v10176_v63  ;;  %v3443_v40 = vmul.f32 %v8865_v43, %v10179_v15 }
 0x44e   : > { %3610 = vst [vmem:[#allocation3 + $0x171] sm:$0xff] %v3523_v56  ;;  %v3444_v8 = vmul.f32 %v8865_v43, %v10182_v52  ;;  %v3445_v51 = vmul.f32 %v8865_v43, %v10185_v47  ;;  %v3446_v42 = vmul.f32 %v8865_v43, %v10188_v6  ;;  %v3447_v1 = vmul.f32 %v8865_v43, %v10191_v14 }
 0x44f   : > { %v3448_v2 = vmul.f32 %v8865_v43, %v10194_v3  ;;  %v3449_v30 = vmul.f32 %v8865_v43, %v10197_v12  ;;  %v3450_v62 = vmul.f32 %v8865_v43, %v10200_v19  ;;  %v3451_v63 = vmul.f32 %v8865_v43, %v10208_v37 }
 0x450   : > { %v3453_v15 = vmul.f32 %v8865_v43, %v10214_v4  ;;  %v3454_v50 = vmul.f32 %v8865_v43, %v10217_v10  ;;  %v10328_v52 = vadd.f32 %v10287_v27, %v3423_v29  ;;  %v10331_v47 = vadd.f32 %v10287_v27, %v3424_v32 }
 0x451   : > { %v10334_v6 = vadd.f32 %v10287_v27, %v3425_v5  ;;  %v10337_v14 = vadd.f32 %v10287_v27, %v3426_v23  ;;  %v10340_v3 = vadd.f32 %v10287_v27, %v3427_v35  ;;  %v10343_v12 = vadd.f32 %v10287_v27, %v3428_v39 }
 0x452   : > { %v10346_v19 = vadd.f32 %v10287_v27, %v3429_v45  ;;  %v10349_v37 = vadd.f32 %v10287_v27, %v3430_v21  ;;  %v10352_v4 = vadd.f32 %v10287_v27, %v3431_v20  ;;  %v10355_v10 = vadd.f32 %v10287_v27, %v3432_v24 }
 0x453   : > { %v10358_v49 = vadd.f32 %v10287_v27, %v3433_v48  ;;  %v10361_v11 = vadd.f32 %v10287_v27, %v3434_v16  ;;  %v10364_v25 = vadd.f32 %v10287_v27, %v3435_v46  ;;  %v10367_v13 = vadd.f32 %v10287_v27, %v3436_v55 }
 0x454   : > { %v10370_v26 = vadd.f32 %v10287_v27, %v3437_v7  ;;  %v10373_v17 = vadd.f32 %v10287_v27, %v3438_v9  ;;  %v10376_v0 = vadd.f32 %v10287_v27, %v3439_v28  ;;  %v10379_v41 = vadd.f32 %v10287_v27, %v3440_v34 }
 0x455   : > { %v10382_v38 = vadd.f32 %v10287_v27, %v3441_v31  ;;  %v10385_v44 = vadd.f32 %v10287_v27, %v3442_v33  ;;  %v10388_v53 = vadd.f32 %v10287_v27, %v3443_v40  ;;  %v10391_v57 = vadd.f32 %v10287_v27, %v3444_v8 }
 0x456   : > { %v10394_v36 = vadd.f32 %v10287_v27, %v3445_v51  ;;  %v10397_v60 = vadd.f32 %v10287_v27, %v3446_v42  ;;  %v10400_v59 = vadd.f32 %v10287_v27, %v3447_v1  ;;  %v10403_v54 = vadd.f32 %v10287_v27, %v3448_v2 }
 0x457   : > { %v10406_v22 = vadd.f32 %v10287_v27, %v3449_v30  ;;  %v10409_v43 = vadd.f32 %v10287_v27, %v3450_v62  ;;  %v10412_v61 = vadd.f32 %v10287_v27, %v3451_v63  ;;  %v10415_v29 = vadd.f32 %v10287_v27, %v3453_v15 }
 0x458   : > { %v10418_v32 = vadd.f32 %v10287_v27, %v3454_v50  ;;  %v3494_v5 = vmax.f32 %v10328_v52, 0.0  ;;  %v3495_v23 = vmax.f32 %v10331_v47, 0.0  ;;  %v3496_v35 = vmax.f32 %v10334_v6, 0.0 }
 0x459   : > { %v3497_v39 = vmax.f32 %v10337_v14, 0.0  ;;  %v3498_v45 = vmax.f32 %v10340_v3, 0.0  ;;  %v3499_v21 = vmax.f32 %v10343_v12, 0.0  ;;  %v3500_v20 = vmax.f32 %v10346_v19, 0.0 }
 0x45a   : > { %v3501_v24 = vmax.f32 %v10349_v37, 0.0  ;;  %v3502_v48 = vmax.f32 %v10352_v4, 0.0  ;;  %v3503_v27 = vmax.f32 %v10355_v10, 0.0  ;;  %v3504_v16 = vmax.f32 %v10358_v49, 0.0  ;;  %3581 = vst [vmem:[#allocation3 + $0x19] sm:$0xff] %v3494_v5  ;;  %3582 = vst [vmem:[#allocation3 + $0x21] sm:$0xff] %v3495_v23 }
 0x45b   : > { %3583 = vst [vmem:[#allocation3 + $0x31] sm:$0xff] %v3496_v35  ;;  %v3505_v46 = vmax.f32 %v10361_v11, 0.0  ;;  %v3506_v55 = vmax.f32 %v10364_v25, 0.0  ;;  %v3507_v7 = vmax.f32 %v10367_v13, 0.0  ;;  %v3508_v9 = vmax.f32 %v10370_v26, 0.0  ;;  %3584 = vst [vmem:[#allocation3 + $0x39] sm:$0xff] %v3497_v39 }
 0x45c   : > { %3585 = vst [vmem:[#allocation3 + $0x49] sm:$0xff] %v3498_v45  ;;  %3586 = vst [vmem:[#allocation3 + $0x51] sm:$0xff] %v3499_v21  ;;  %v3509_v28 = vmax.f32 %v10373_v17, 0.0  ;;  %v3510_v34 = vmax.f32 %v10376_v0, 0.0  ;;  %v3511_v31 = vmax.f32 %v10379_v41, 0.0  ;;  %v3512_v33 = vmax.f32 %v10382_v38, 0.0 }
 0x45d   : > { %3587 = vst [vmem:[#allocation3 + $0x61] sm:$0xff] %v3500_v20  ;;  %3588 = vst [vmem:[#allocation3 + $0x69] sm:$0xff] %v3501_v24  ;;  %v3513_v40 = vmax.f32 %v10385_v44, 0.0  ;;  %v3514_v8 = vmax.f32 %v10388_v53, 0.0  ;;  %v3515_v51 = vmax.f32 %v10391_v57, 0.0  ;;  %v3516_v42 = vmax.f32 %v10394_v36, 0.0 }
 0x45e   : > { %3589 = vst [vmem:[#allocation3 + $0x79] sm:$0xff] %v3502_v48  ;;  %3590 = vst [vmem:[#allocation3 + $0x81] sm:$0xff] %v3503_v27  ;;  %v3517_v1 = vmax.f32 %v10397_v60, 0.0  ;;  %v3518_v2 = vmax.f32 %v10400_v59, 0.0  ;;  %v3519_v30 = vmax.f32 %v10403_v54, 0.0  ;;  %v3520_v62 = vmax.f32 %v10406_v22, 0.0 }
 0x45f   : > { %3591 = vst [vmem:[#allocation3 + $0x91] sm:$0xff] %v3504_v16  ;;  %3592 = vst [vmem:[#allocation3 + $0x99] sm:$0xff] %v3505_v46  ;;  %v3521_v63 = vmax.f32 %v10409_v43, 0.0  ;;  %v3522_v15 = vmax.f32 %v10412_v61, 0.0  ;;  %v3524_v50 = vmax.f32 %v10415_v29, 0.0  ;;  %v3525_v52 = vmax.f32 %v10418_v32, 0.0 }
 0x460   : > { %3593 = vst [vmem:[#allocation3 + $0xa9] sm:$0xff] %v3506_v55  ;;  %3594 = vst [vmem:[#allocation3 + $0xb1] sm:$0xff] %v3507_v7  ;;  %v10451_v47 = vpack.c.bf16 %v3495_v23, %v3494_v5  ;;  %v10453_v6 = vpack.c.bf16 %v3497_v39, %v3496_v35  ;;  %v10455_v14 = vpack.c.bf16 %v3499_v21, %v3498_v45  ;;  %v8799_v26 = vld [vmem:[%s10940_s4 + $0x48] sm:$0xff]   ;;  %v8800_v60 = vld [vmem:[%s10940_s4 + $0x50] sm:$0xff]  }
 0x461   : > { %3595 = vst [vmem:[#allocation3 + $0xc1] sm:$0xff] %v3508_v9  ;;  %3596 = vst [vmem:[#allocation3 + $0xc9] sm:$0xff] %v3509_v28  ;;  %v10457_v3 = vpack.c.bf16 %v3501_v24, %v3500_v20  ;;  %v3615_v12 = vld [vmem:[#allocation3 + $0x18] sm:$0xff]  ;;  %v3616_v19 = vld [vmem:[#allocation3 + $0x20] sm:$0xff]  ;;  %v10459_v4 = vpack.c.bf16 %v3503_v27, %v3502_v48  ;;  %v10461_v10 = vpack.c.bf16 %v3505_v46, %v3504_v16 }
 0x462   : > { %3597 = vst [vmem:[#allocation3 + $0xd9] sm:$0xff] %v3510_v34  ;;  %3598 = vst [vmem:[#allocation3 + $0xe1] sm:$0xff] %v3511_v31  ;;  %v3617_v37 = vld [vmem:[#allocation3 + $0x30] sm:$0xff]  ;;  %v10463_v49 = vpack.c.bf16 %v3507_v7, %v3506_v55  ;;  %v10465_v11 = vpack.c.bf16 %v3509_v28, %v3508_v9  ;;  %v10467_v25 = vpack.c.bf16 %v3616_v19, %v3615_v12  ;;  %v3618_v13 = vld [vmem:[#allocation3 + $0x38] sm:$0xff] }
 0x463   : > { %3599 = vst [vmem:[#allocation3 + $0xf1] sm:$0xff] %v3512_v33  ;;  %3600 = vst [vmem:[#allocation3 + $0xf9] sm:$0xff] %v3513_v40  ;;  %v10472_v17 = vpack.c.bf16 %v3511_v31, %v3510_v34  ;;  %v10474_v0 = vpack.c.bf16 %v3513_v40, %v3512_v33  ;;  %v10476_v41 = vpack.c.bf16 %v3515_v51, %v3514_v8  ;;  %v3619_v59 = vld [vmem:[#allocation3 + $0x48] sm:$0xff]  ;;  %v3620_v54 = vld [vmem:[#allocation3 + $0x50] sm:$0xff] }
 0x464   : > { %3601 = vst [vmem:[#allocation3 + $0x109] sm:$0xff] %v3514_v8  ;;  %3602 = vst [vmem:[#allocation3 + $0x111] sm:$0xff] %v3515_v51  ;;  %v10478_v38 = vpack.c.bf16 %v3618_v13, %v3617_v37  ;;  %v10480_v44 = vpack.c.bf16 %v3517_v1, %v3516_v42  ;;  %v10482_v53 = vpack.c.bf16 %v3519_v30, %v3518_v2  ;;  %7750 = vmatmul.mubr.bf16.vlgmr.msra.gmra.mrb[0].mxu1 %v10467_v25  ;;  %v3621_v22 = vld [vmem:[#allocation3 + $0x60] sm:$0xff]  ;;  %v3622_v43 = vld [vmem:[#allocation3 + $0x68] sm:$0xff] }
 0x465   : > { %3603 = vst [vmem:[#allocation3 + $0x121] sm:$0xff] %v3516_v42  ;;  %3604 = vst [vmem:[#allocation3 + $0x129] sm:$0xff] %v3517_v1  ;;  %v10485_v57 = vpack.c.bf16 %v3521_v63, %v3520_v62  ;;  %v10489_v36 = vpack.c.bf16 %v3523_v56, %v3522_v15  ;;  %7782 = vmatpush3.bf16.msra.mxu1 %v10205_v58  ;;  %v10496_v61 = vpack.c.bf16 %v3620_v54, %v3619_v59  ;;  %v8802_v56 = vld [vmem:[%s10940_s4 + $0x60] sm:$0xff]   ;;  %v3623_v29 = vld [vmem:[#allocation3 + $0x78] sm:$0xff] }
 0x466   : > { %3605 = vst [vmem:[#allocation3 + $0x139] sm:$0xff] %v3518_v2  ;;  %3606 = vst [vmem:[#allocation3 + $0x141] sm:$0xff] %v3519_v30  ;;  %7753 = vmatprep.mubr.bf16.mxu1 %v10478_v38  ;;  %7783 = vmatprep.subr.bf16.mxu1 %v8799_v26  ;;  %v10501_v58 = vpack.c.bf16 %v3622_v43, %v3621_v22  ;;  %v3624_v32 = vld [vmem:[#allocation3 + $0x80] sm:$0xff]  ;;  %v3625_v5 = vld [vmem:[#allocation3 + $0x90] sm:$0xff] }
 0x467   : > { %3607 = vst [vmem:[#allocation3 + $0x151] sm:$0xff] %v3520_v62  ;;  %3608 = vst [vmem:[#allocation3 + $0x159] sm:$0xff] %v3521_v63  ;;  %v3626_v23 = vld [vmem:[#allocation3 + $0x98] sm:$0xff]  ;;  %v10508_v35 = vpack.c.bf16 %v3624_v32, %v3623_v29  ;;  %v8804_v21 = vld [vmem:[%s10940_s4 + $0x70] sm:$0xff]  }
 0x468   : > { %3609 = vst [vmem:[#allocation3 + $0x169] sm:$0xff] %v3522_v15  ;;  %3611 = vst [vmem:[#allocation3 + $0x181] sm:$0xff] %v3524_v50  ;;  %v8803_v39 = vld [vmem:[%s10940_s4 + $0x68] sm:$0xff]   ;;  %v10513_v45 = vpack.c.bf16 %v3626_v23, %v3625_v5  ;;  %v3627_v20 = vld [vmem:[#allocation3 + $0xa8] sm:$0xff] }
 0x469   : > { %3612 = vst [vmem:[#allocation3 + $0x189] sm:$0xff] %v3525_v52  ;;  %7784 = vmatpush3.bf16.msra.mxu1 %v8799_v26  ;;  %v3628_v24 = vld [vmem:[#allocation3 + $0xb0] sm:$0xff]  ;;  %v3629_v48 = vld [vmem:[#allocation3 + $0xc0] sm:$0xff]  ;;  %v3630_v27 = vld [vmem:[#allocation3 + $0xc8] sm:$0xff] }
 0x46a   : > { %7785 = vmatprep.subr.bf16.mxu1 %v8800_v60  ;;  %v10520_v16 = vpack.c.bf16 %v3628_v24, %v3627_v20  ;;  %v8805_v46 = vld [vmem:[%s10940_s4 + $0x78] sm:$0xff]   ;;  %v10525_v55 = vpack.c.bf16 %v3630_v27, %v3629_v48  ;;  %v8806_v7 = vld [vmem:[%s10940_s4 + $0x80] sm:$0xff]   ;;  %v3631_v9 = vld [vmem:[#allocation3 + $0xd8] sm:$0xff] }
 0x46b   : > { %v3632_v28 = vld [vmem:[#allocation3 + $0xe0] sm:$0xff]  ;;  %v3633_v34 = vld [vmem:[#allocation3 + $0xf0] sm:$0xff]  ;;  %v3634_v31 = vld [vmem:[#allocation3 + $0xf8] sm:$0xff] }
 0x46c   : > { %7754 = vmatmul.mubr.bf16.gmra.mrb[4].mxu1 %v10496_v61  ;;  %v10532_v33 = vpack.c.bf16 %v3632_v28, %v3631_v9  ;;  %v10534_v40 = vpack.c.bf16 %v3634_v31, %v3633_v34  ;;  %v3635_v8 = vld [vmem:[#allocation3 + $0x108] sm:$0xff]  ;;  %v3636_v51 = vld [vmem:[#allocation3 + $0x110] sm:$0xff]  ;;  %v3637_v42 = vld [vmem:[#allocation3 + $0x120] sm:$0xff] }
 0x46d   : > { %7757 = vmatprep.mubr.bf16.mxu1 %v10501_v58  ;;  %7786 = vmatpush3.bf16.msra.mxu1 %v8800_v60  ;;  %v3638_v1 = vld [vmem:[#allocation3 + $0x128] sm:$0xff]  ;;  %v10538_v2 = vpack.c.bf16 %v3636_v51, %v3635_v8  ;;  %v3639_v62 = vld [vmem:[#allocation3 + $0x138] sm:$0xff]  ;;  %v3640_v63 = vld [vmem:[#allocation3 + $0x140] sm:$0xff] }
 0x46e   : > { %7787 = vmatprep.subr.bf16.mxu1 %v8801_v18  ;;  %v10540_v30 = vpack.c.bf16 %v3638_v1, %v3637_v42  ;;  %v3641_v15 = vld [vmem:[#allocation3 + $0x150] sm:$0xff]  ;;  %v3642_v50 = vld [vmem:[#allocation3 + $0x158] sm:$0xff]  ;;  %v10544_v52 = vpack.c.bf16 %v3640_v63, %v3639_v62  ;;  %v3918_v19 = vld [vmem:[#allocation3 + $0x1] sm:$0xff] }
 0x46f   : > { %v10546_v12 = vpack.c.bf16 %v3642_v50, %v3641_v15  ;;  %v3919_v37 = vld [vmem:[#allocation3 + $0x9] sm:$0xff]  ;;  %v8807_v54 = vld [vmem:[%s10940_s4 + $0x88] sm:$0xff]   ;;  %v8808_v22 = vld [vmem:[%s10940_s4 + $0x90] sm:$0xff]  }
 0x470   : > { %v3643_v13 = vld [vmem:[#allocation3 + $0x168] sm:$0xff]  ;;  %v3644_v26 = vld [vmem:[#allocation3 + $0x170] sm:$0xff]  ;;  %v3950_v60 = vpack.c.bf16 %v3919_v37, %v3918_v19  ;;  %v8812_v29 = vld [vmem:[%s10940_s4 + $0xb0] sm:$0xff]  }
 0x471   : > { %7788 = vmatpush3.bf16.msra.mxu1 %v8801_v18  ;;  %v10550_v59 = vpack.c.bf16 %v3644_v26, %v3643_v13  ;;  %v8809_v43 = vld [vmem:[%s10940_s4 + $0x98] sm:$0xff]   ;;  %v8810_v18 = vld [vmem:[%s10940_s4 + $0xa0] sm:$0xff]   ;;  %v4234_v28 = vld [vmem:[#allocation3 + $0x7a] sm:$0xff] }
 0x472   : > { %7789 = vmatprep.subr.bf16.mxu1 %v8802_v56  ;;  %v8813_v32 = vld [vmem:[%s10940_s4 + $0xb8] sm:$0xff]   ;;  %v8814_v5 = vld [vmem:[%s10940_s4 + $0xc0] sm:$0xff]   ;;  %v4237_v8 = vld [vmem:[#allocation3 + $0x9a] sm:$0xff] }
 0x473   : > { %v4228_v20 = vld [vmem:[#allocation3 + $0x32] sm:$0xff]  ;;  %v4233_v48 = vld [vmem:[#allocation3 + $0x6a] sm:$0xff]  ;;  %v4235_v34 = vld [vmem:[#allocation3 + $0x82] sm:$0xff] }
 0x474   : > { %7758 = vmatmul.mubr.bf16.gmra.mrb[8].mxu1 %v10508_v35  ;;  %v8818_v9 = vld [vmem:[%s10940_s4 + $0xe0] sm:$0xff]   ;;  %v10616_v51 = vpack.c.bf16 %v4235_v34, %v4234_v28  ;;  %v8819_v42 = vld [vmem:[%s10940_s4 + $0xe8] sm:$0xff]   ;;  %v8820_v62 = vld [vmem:[%s10940_s4 + $0xf0] sm:$0xff]  }
 0x475   : > { %7761 = vmatprep.mubr.bf16.mxu1 %v10513_v45  ;;  %7790 = vmatpush3.bf16.msra.mxu1 %v8802_v56  ;;  %v8811_v56 = vld [vmem:[%s10940_s4 + $0xa8] sm:$0xff]   ;;  %v4238_v63 = vld [vmem:[#allocation3 + $0xaa] sm:$0xff]  ;;  %v4240_v50 = vld [vmem:[#allocation3 + $0xc2] sm:$0xff] }
 0x476   : > { %7791 = vmatprep.subr.bf16.mxu1 %v8803_v39  ;;  %v4236_v31 = vld [vmem:[#allocation3 + $0x92] sm:$0xff]  ;;  %v4241_v19 = vld [vmem:[#allocation3 + $0xca] sm:$0xff]  ;;  %v4853_v34 = vld [vmem:[#allocation3 + $0xe1] sm:$0xff] }
 0x477   : > { %v10621_v1 = vpack.c.bf16 %v4237_v8, %v4236_v31  ;;  %v4239_v15 = vld [vmem:[#allocation3 + $0xb2] sm:$0xff]  ;;  %v8821_v13 = vld [vmem:[%s10940_s4 + $0xf8] sm:$0xff]   ;;  %v10633_v26 = vpack.c.bf16 %v4241_v19, %v4240_v50 }
 0x478   : > { %v10628_v37 = vpack.c.bf16 %v4239_v15, %v4238_v63  ;;  %v4852_v28 = vld [vmem:[#allocation3 + $0xd9] sm:$0xff]  ;;  %v4856_v15 = vld [vmem:[#allocation3 + $0x109] sm:$0xff]  ;;  %v4857_v50 = vld [vmem:[#allocation3 + $0x111] sm:$0xff] }
 0x479   : > { %7792 = vmatpush3.bf16.msra.mxu1 %v8803_v39  ;;  %v4226_v39 = vld [vmem:[#allocation3 + $0x1a] sm:$0xff]  ;;  %v10735_v8 = vpack.c.bf16 %v4853_v34, %v4852_v28 }
 0x47a   : > { %7793 = vmatprep.subr.bf16.mxu1 %v8804_v21  ;;  %v4855_v63 = vld [vmem:[#allocation3 + $0xf9] sm:$0xff] }
 0x47b   : > { %v8851_v28 = vld [vmem:[%s10940_s4 + $0x1e8] sm:$0xff]  }
 0x47c   : > { %7762 = vmatmul.mubr.bf16.gmra.mrb[12].mxu1 %v10520_v16 }
 0x47d   : > { %7765 = vmatprep.mubr.bf16.mxu1 %v10525_v55  ;;  %7794 = vmatpush3.bf16.msra.mxu1 %v8804_v21  ;;  %v4227_v21 = vld [vmem:[#allocation3 + $0x22] sm:$0xff] }
 0x47e   : > { %7795 = vmatprep.subr.bf16.mxu1 %v8805_v46  ;;  %v10592_v24 = vpack.c.bf16 %v4227_v21, %v4226_v39  ;;  %v4250_v21 = vld [vmem:[#allocation3 + $0x13a] sm:$0xff] }
 0x481   : > { %7796 = vmatpush3.bf16.msra.mxu1 %v8805_v46  ;;  %v8817_v46 = vld [vmem:[%s10940_s4 + $0xd8] sm:$0xff]  }
 0x482   : > { %7829 = vmatprep.subr.bf16.mxu1 %v8806_v7 }
 0x484   : > { %7766 = vmatmul.mubr.bf16.gmra.mrb[16].mxu1 %v10532_v33 }
 0x485   : > { %7769 = vmatprep.mubr.bf16.mxu1 %v10534_v40 }
 0x48c   : > { %7770 = vmatmul.mubr.bf16.gmra.mrb[20].mxu1 %v10538_v2 }
 0x48d   : > { %7773 = vmatprep.mubr.bf16.mxu1 %v10540_v30 }
 0x494   : > { %7774 = vmatmul.mubr.bf16.gmra.mrb[24].mxu1 %v10544_v52 }
 0x495   : > { %7777 = vmatprep.mubr.bf16.mxu1 %v10546_v12 }
 0x49c   : > { %7778 = vmatmul.mubr.bf16.gmra.mrb[28].mxu1 %v10550_v59 }
 0x49d   : > { %7797 = vmatprep.mubr.bf16.mxu1 %v3950_v60  ;;  %v8822_v60 = vld [vmem:[%s10940_s4 + $0x100] sm:$0xff]  }
 0x4a4   : > { %7798 = vmatmul.mubr.bf16.vlgmr.msra.gmra.mrb[0].mxu1 %v10451_v47 }
 0x4a5   : > { %7830 = vmatpush3.bf16.msra.mxu1 %v8806_v7  ;;  %7801 = vmatprep.mubr.bf16.mxu1 %v10453_v6 }
 0x4a6   : > { %7831 = vmatprep.subr.bf16.mxu1 %v8807_v54 }
 0x4a9   : > { %7832 = vmatpush3.bf16.msra.mxu1 %v8807_v54  ;;  %v4242_v54 = vld [vmem:[#allocation3 + $0xda] sm:$0xff] }
 0x4aa   : > { %7833 = vmatprep.subr.bf16.mxu1 %v8808_v22 }
 0x4ac   : > { %7802 = vmatmul.mubr.bf16.gmra.mrb[4].mxu1 %v10455_v14 }
 0x4ad   : > { %7805 = vmatprep.mubr.bf16.mxu1 %v10457_v3  ;;  %7834 = vmatpush3.bf16.msra.mxu1 %v8808_v22  ;;  %v4243_v22 = vld [vmem:[#allocation3 + $0xe2] sm:$0xff] }
 0x4ae   : > { %7835 = vmatprep.subr.bf16.mxu1 %v8809_v43 }
 0x4b1   : > { %7836 = vmatpush3.bf16.msra.mxu1 %v8809_v43  ;;  %v4244_v43 = vld [vmem:[#allocation3 + $0xf2] sm:$0xff] }
 0x4b2   : > { %7837 = vmatprep.subr.bf16.mxu1 %v8810_v18 }
 0x4b4   : > { %7806 = vmatmul.mubr.bf16.gmra.mrb[8].mxu1 %v10459_v4 }
 0x4b5   : > { %7809 = vmatprep.mubr.bf16.mxu1 %v10461_v10  ;;  %7838 = vmatpush3.bf16.msra.mxu1 %v8810_v18  ;;  %v4245_v18 = vld [vmem:[#allocation3 + $0xfa] sm:$0xff] }
 0x4b6   : > { %7839 = vmatprep.subr.bf16.mxu1 %v8811_v56 }
 0x4b9   : > { %7840 = vmatpush3.bf16.msra.mxu1 %v8811_v56  ;;  %v10640_v56 = vpack.c.bf16 %v4243_v22, %v4242_v54  ;;  %v4859_v54 = vld [vmem:[#allocation3 + $0x129] sm:$0xff]  ;;  %v4860_v22 = vld [vmem:[#allocation3 + $0x139] sm:$0xff] }
 0x4ba   : > { %7841 = vmatprep.subr.bf16.mxu1 %v8812_v29 }
 0x4bc   : > { %7810 = vmatmul.mubr.bf16.gmra.mrb[12].mxu1 %v10463_v49  ;;  %v4224_v49 = vld [vmem:[#allocation3 + $0x2] sm:$0xff] }
 0x4bd   : > { %7813 = vmatprep.mubr.bf16.mxu1 %v10465_v11  ;;  %7842 = vmatpush3.bf16.msra.mxu1 %v8812_v29  ;;  %v4225_v11 = vld [vmem:[#allocation3 + $0xa] sm:$0xff]  ;;  %v10642_v29 = vpack.c.bf16 %v4245_v18, %v4244_v43  ;;  %v4861_v43 = vld [vmem:[#allocation3 + $0x141] sm:$0xff] }
 0x4be   : > { %7843 = vmatprep.subr.bf16.mxu1 %v8813_v32  ;;  %v4256_v23 = vpack.c.bf16 %v4225_v11, %v4224_v49  ;;  %v4248_v49 = vld [vmem:[#allocation3 + $0x122] sm:$0xff]  ;;  %v4249_v11 = vld [vmem:[#allocation3 + $0x12a] sm:$0xff] }
 0x4bf   : > { %v10648_v39 = vpack.c.bf16 %v4249_v11, %v4248_v49  ;;  %v4863_v49 = vld [vmem:[#allocation3 + $0x159] sm:$0xff]  ;;  %v4864_v11 = vld [vmem:[#allocation3 + $0x169] sm:$0xff] }
 0x4c1   : > { %7844 = vmatpush3.bf16.msra.mxu1 %v8813_v32  ;;  %v4246_v32 = vld [vmem:[#allocation3 + $0x10a] sm:$0xff] }
 0x4c2   : > { %7877 = vmatprep.subr.bf16.mxu1 %v8814_v5 }
 0x4c4   : > { %7814 = vmatmul.mubr.bf16.gmra.mrb[16].mxu1 %v10472_v17  ;;  %v4229_v17 = vld [vmem:[#allocation3 + $0x3a] sm:$0xff] }
 0x4c5   : > { %7817 = vmatprep.mubr.bf16.mxu1 %v10474_v0  ;;  %v8815_v0 = vld [vmem:[%s10940_s4 + $0xc8] sm:$0xff]  }
 0x4cc   : > { %7818 = vmatmul.mubr.bf16.gmra.mrb[20].mxu1 %v10476_v41  ;;  %v10597_v41 = vpack.c.bf16 %v4229_v17, %v4228_v20  ;;  %v4251_v20 = vld [vmem:[#allocation3 + $0x142] sm:$0xff]  ;;  %v4252_v17 = vld [vmem:[#allocation3 + $0x152] sm:$0xff] }
 0x4cd   : > { %7821 = vmatprep.mubr.bf16.mxu1 %v10480_v44  ;;  %v8816_v44 = vld [vmem:[%s10940_s4 + $0xd0] sm:$0xff]  }
 0x4d4   : > { %7822 = vmatmul.mubr.bf16.gmra.mrb[24].mxu1 %v10482_v53  ;;  %v4230_v53 = vld [vmem:[#allocation3 + $0x4a] sm:$0xff] }
 0x4d5   : > { %7825 = vmatprep.mubr.bf16.mxu1 %v10485_v57  ;;  %v4231_v57 = vld [vmem:[#allocation3 + $0x52] sm:$0xff] }
 0x4d6   : > { %v10604_v27 = vpack.c.bf16 %v4231_v57, %v4230_v53  ;;  %v4254_v57 = vld [vmem:[#allocation3 + $0x16a] sm:$0xff] }
 0x4dc   : > { %7826 = vmatmul.mubr.bf16.gmra.mrb[28].mxu1 %v10489_v36  ;;  %v4232_v36 = vld [vmem:[#allocation3 + $0x62] sm:$0xff] }
 0x4dd   : > { %7845 = vmatprep.mubr.bf16.mxu1 %v4256_v23  ;;  %v10609_v7 = vpack.c.bf16 %v4233_v48, %v4232_v36  ;;  %v4255_v36 = vld [vmem:[#allocation3 + $0x172] sm:$0xff] }
 0x4de   : > { %v10658_v48 = vpack.c.bf16 %v4255_v36, %v4254_v57  ;;  %v4867_v57 = vld [vmem:[#allocation3 + $0x189] sm:$0xff] }
 0x4e4   : > { %7846 = vmatmul.mubr.bf16.vlgmr.msra.gmra.mrb[0].mxu1 %v10592_v24 }
 0x4e5   : > { %7878 = vmatpush3.bf16.msra.mxu1 %v8814_v5  ;;  %7849 = vmatprep.mubr.bf16.mxu1 %v10597_v41  ;;  %v4247_v5 = vld [vmem:[#allocation3 + $0x112] sm:$0xff] }
 0x4e6   : > { %7879 = vmatprep.subr.bf16.mxu1 %v8815_v0  ;;  %v10646_v23 = vpack.c.bf16 %v4247_v5, %v4246_v32  ;;  %v10750_v32 = vpack.c.bf16 %v4861_v43, %v4860_v22  ;;  %v4862_v5 = vld [vmem:[#allocation3 + $0x151] sm:$0xff]  ;;  %v5467_v43 = vld [vmem:[#allocation3 + $0x108] sm:$0xff] }
 0x4e7   : > { %v8854_v22 = vld [vmem:[%s10940_s4 + $0x200] sm:$0xff]  }
 0x4e9   : > { %7880 = vmatpush3.bf16.msra.mxu1 %v8815_v0  ;;  %v4253_v0 = vld [vmem:[#allocation3 + $0x15a] sm:$0xff] }
 0x4ea   : > { %7881 = vmatprep.subr.bf16.mxu1 %v8816_v44  ;;  %v10654_v53 = vpack.c.bf16 %v4253_v0, %v4252_v17  ;;  %v4866_v0 = vld [vmem:[#allocation3 + $0x181] sm:$0xff] }
 0x4eb   : > { %v10760_v36 = vpack.c.bf16 %v4867_v57, %v4866_v0  ;;  %v5471_v57 = vld [vmem:[#allocation3 + $0x138] sm:$0xff] }
 0x4ec   : > { %7850 = vmatmul.mubr.bf16.gmra.mrb[4].mxu1 %v10604_v27 }
 0x4ed   : > { %7853 = vmatprep.mubr.bf16.mxu1 %v10609_v7  ;;  %7882 = vmatpush3.bf16.msra.mxu1 %v8816_v44  ;;  %v10652_v44 = vpack.c.bf16 %v4251_v20, %v4250_v21  ;;  %v4865_v21 = vld [vmem:[#allocation3 + $0x171] sm:$0xff]  ;;  %v10754_v20 = vpack.c.bf16 %v4863_v49, %v4862_v5  ;;  %v5469_v49 = vld [vmem:[#allocation3 + $0x120] sm:$0xff] }
 0x4ee   : > { %7883 = vmatprep.subr.bf16.mxu1 %v8817_v46  ;;  %v10756_v17 = vpack.c.bf16 %v4865_v21, %v4864_v11  ;;  %v5468_v5 = vld [vmem:[#allocation3 + $0x110] sm:$0xff]  ;;  %v5470_v11 = vld [vmem:[#allocation3 + $0x128] sm:$0xff] }
 0x4ef   : > { %v5490_v21 = vpack.c.bf16 %v5468_v5, %v5467_v43  ;;  %v5491_v0 = vpack.c.bf16 %v5470_v11, %v5469_v49  ;;  %v6075_v43 = vld [vmem:[#allocation3 + $0xda] sm:$0xff]  ;;  %v6076_v5 = vld [vmem:[#allocation3 + $0xe2] sm:$0xff]  ;;  %v6077_v49 = vld [vmem:[#allocation3 + $0xf2] sm:$0xff] }
 0x4f0   : > { %v6078_v11 = vld [vmem:[#allocation3 + $0xfa] sm:$0xff] }
 0x4f1   : > { %7884 = vmatpush3.bf16.msra.mxu1 %v8817_v46  ;;  %v8823_v46 = vld [vmem:[%s10940_s4 + $0x108] sm:$0xff]  }
 0x4f2   : > { %7885 = vmatprep.subr.bf16.mxu1 %v8818_v9 }
 0x4f4   : > { %7854 = vmatmul.mubr.bf16.gmra.mrb[8].mxu1 %v10616_v51 }
 0x4f5   : > { %7857 = vmatprep.mubr.bf16.mxu1 %v10621_v1  ;;  %7886 = vmatpush3.bf16.msra.mxu1 %v8818_v9  ;;  %v8824_v9 = vld [vmem:[%s10940_s4 + $0x110] sm:$0xff]  }
 0x4f6   : > { %7887 = vmatprep.subr.bf16.mxu1 %v8819_v42 }
 0x4f9   : > { %7888 = vmatpush3.bf16.msra.mxu1 %v8819_v42  ;;  %v8838_v42 = vld [vmem:[%s10940_s4 + $0x180] sm:$0xff]  }
 0x4fa   : > { %7889 = vmatprep.subr.bf16.mxu1 %v8820_v62 }
 0x4fc   : > { %7858 = vmatmul.mubr.bf16.gmra.mrb[12].mxu1 %v10628_v37 }
 0x4fd   : > { %7861 = vmatprep.mubr.bf16.mxu1 %v10633_v26  ;;  %7890 = vmatpush3.bf16.msra.mxu1 %v8820_v62  ;;  %v4854_v62 = vld [vmem:[#allocation3 + $0xf1] sm:$0xff] }
 0x4fe   : > { %7891 = vmatprep.subr.bf16.mxu1 %v8821_v13  ;;  %v10742_v19 = vpack.c.bf16 %v4855_v63, %v4854_v62  ;;  %v5464_v62 = vld [vmem:[#allocation3 + $0xe0] sm:$0xff]  ;;  %v5465_v63 = vld [vmem:[#allocation3 + $0xf0] sm:$0xff] }
 0x501   : > { %7892 = vmatpush3.bf16.msra.mxu1 %v8821_v13  ;;  %v10744_v13 = vpack.c.bf16 %v4857_v50, %v4856_v15  ;;  %v5466_v15 = vld [vmem:[#allocation3 + $0xf8] sm:$0xff] }
 0x502   : > { %7925 = vmatprep.subr.bf16.mxu1 %v8822_v60 }
 0x504   : > { %7862 = vmatmul.mubr.bf16.gmra.mrb[16].mxu1 %v10640_v56 }
 0x505   : > { %7865 = vmatprep.mubr.bf16.mxu1 %v10642_v29 }
 0x50c   : > { %7866 = vmatmul.mubr.bf16.gmra.mrb[20].mxu1 %v10646_v23 }
 0x50d   : > { %7869 = vmatprep.mubr.bf16.mxu1 %v10648_v39 }
 0x514   : > { %7870 = vmatmul.mubr.bf16.gmra.mrb[24].mxu1 %v10652_v44 }
 0x515   : > { %7873 = vmatprep.mubr.bf16.mxu1 %v10654_v53 }
 0x51c   : > { %7874 = vmatmul.mubr.bf16.gmra.mrb[28].mxu1 %v10658_v48 }
 0x51d   : > { %7893 = vmatprep.mubr.bf16.mxu1 %v10467_v25  ;;  %v8825_v25 = vld [vmem:[%s10940_s4 + $0x118] sm:$0xff]  }
 0x524   : > { %7894 = vmatmul.mubr.bf16.vlgmr.msra.gmra.mrb[0].mxu1 %v10478_v38  ;;  %v8826_v38 = vld [vmem:[%s10940_s4 + $0x120] sm:$0xff]  }
 0x525   : > { %7926 = vmatpush3.bf16.msra.mxu1 %v8822_v60  ;;  %7897 = vmatprep.mubr.bf16.mxu1 %v10496_v61  ;;  %v8827_v61 = vld [vmem:[%s10940_s4 + $0x128] sm:$0xff]   ;;  %v4858_v60 = vld [vmem:[#allocation3 + $0x121] sm:$0xff] }
 0x526   : > { %7927 = vmatprep.subr.bf16.mxu1 %v8823_v46  ;;  %v10748_v18 = vpack.c.bf16 %v4859_v54, %v4858_v60  ;;  %v8853_v60 = vld [vmem:[%s10940_s4 + $0x1f8] sm:$0xff]   ;;  %v5489_v54 = vpack.c.bf16 %v5466_v15, %v5465_v63  ;;  %v6072_v15 = vld [vmem:[#allocation3 + $0xb2] sm:$0xff] }
 0x527   : > { %v6071_v63 = vld [vmem:[#allocation3 + $0xaa] sm:$0xff] }
 0x529   : > { %7928 = vmatpush3.bf16.msra.mxu1 %v8823_v46  ;;  %v8839_v46 = vld [vmem:[%s10940_s4 + $0x188] sm:$0xff]  }
 0x52a   : > { %7929 = vmatprep.subr.bf16.mxu1 %v8824_v9 }
 0x52c   : > { %7898 = vmatmul.mubr.bf16.gmra.mrb[4].mxu1 %v10501_v58  ;;  %v8828_v58 = vld [vmem:[%s10940_s4 + $0x130] sm:$0xff]  }
 0x52d   : > { %7901 = vmatprep.mubr.bf16.mxu1 %v10508_v35  ;;  %7930 = vmatpush3.bf16.msra.mxu1 %v8824_v9  ;;  %v8829_v35 = vld [vmem:[%s10940_s4 + $0x138] sm:$0xff]   ;;  %v8840_v9 = vld [vmem:[%s10940_s4 + $0x190] sm:$0xff]  }
 0x52e   : > { %7931 = vmatprep.subr.bf16.mxu1 %v8825_v25 }
 0x531   : > { %7932 = vmatpush3.bf16.msra.mxu1 %v8825_v25  ;;  %v5450_v25 = vld [vmem:[#allocation3 + $0x38] sm:$0xff] }
 0x532   : > { %7933 = vmatprep.subr.bf16.mxu1 %v8826_v38 }
 0x534   : > { %7902 = vmatmul.mubr.bf16.gmra.mrb[8].mxu1 %v10513_v45  ;;  %v8830_v45 = vld [vmem:[%s10940_s4 + $0x140] sm:$0xff]  }
 0x535   : > { %7905 = vmatprep.mubr.bf16.mxu1 %v10520_v16  ;;  %7934 = vmatpush3.bf16.msra.mxu1 %v8826_v38  ;;  %v4560_v16 = vld [vmem:[#allocation3 + $0x180] sm:$0xff] }
 0x536   : > { %7935 = vmatprep.subr.bf16.mxu1 %v8827_v61 }
 0x539   : > { %7936 = vmatpush3.bf16.msra.mxu1 %v8827_v61 }
 0x53a   : > { %7937 = vmatprep.subr.bf16.mxu1 %v8828_v58 }
 0x53c   : > { %7906 = vmatmul.mubr.bf16.gmra.mrb[12].mxu1 %v10525_v55  ;;  %v4561_v55 = vld [vmem:[#allocation3 + $0x188] sm:$0xff] }
 0x53d   : > { %7909 = vmatprep.mubr.bf16.mxu1 %v10532_v33  ;;  %7938 = vmatpush3.bf16.msra.mxu1 %v8828_v58  ;;  %v10700_v33 = vpack.c.bf16 %v4561_v55, %v4560_v16  ;;  %v5453_v58 = vld [vmem:[#allocation3 + $0x60] sm:$0xff]  ;;  %v5457_v55 = vld [vmem:[#allocation3 + $0x90] sm:$0xff] }
 0x53e   : > { %7939 = vmatprep.subr.bf16.mxu1 %v8829_v35  ;;  %v5456_v16 = vld [vmem:[#allocation3 + $0x80] sm:$0xff] }
 0x541   : > { %7940 = vmatpush3.bf16.msra.mxu1 %v8829_v35 }
 0x542   : > { %7973 = vmatprep.subr.bf16.mxu1 %v8830_v45 }
 0x544   : > { %7910 = vmatmul.mubr.bf16.gmra.mrb[16].mxu1 %v10534_v40  ;;  %v8831_v40 = vld [vmem:[%s10940_s4 + $0x148] sm:$0xff]  }
 0x545   : > { %7913 = vmatprep.mubr.bf16.mxu1 %v10538_v2  ;;  %v8832_v2 = vld [vmem:[%s10940_s4 + $0x150] sm:$0xff]  }
 0x54c   : > { %7914 = vmatmul.mubr.bf16.gmra.mrb[20].mxu1 %v10540_v30  ;;  %v4849_v30 = vld [vmem:[#allocation3 + $0xb1] sm:$0xff] }
 0x54d   : > { %7917 = vmatprep.mubr.bf16.mxu1 %v10544_v52  ;;  %v8835_v52 = vld [vmem:[%s10940_s4 + $0x168] sm:$0xff]  }
 0x554   : > { %7918 = vmatmul.mubr.bf16.gmra.mrb[24].mxu1 %v10546_v12 }
 0x555   : > { %7921 = vmatprep.mubr.bf16.mxu1 %v10550_v59  ;;  %v4851_v59 = vld [vmem:[#allocation3 + $0xc9] sm:$0xff] }
 0x55c   : > { %7922 = vmatmul.mubr.bf16.gmra.mrb[28].mxu1 %v10700_v33 }
 0x55d   : > { %7941 = vmatprep.mubr.bf16.mxu1 %v10451_v47  ;;  %v8833_v47 = vld [vmem:[%s10940_s4 + $0x158] sm:$0xff]  }
 0x564   : > { %7942 = vmatmul.mubr.bf16.vlgmr.msra.gmra.mrb[0].mxu1 %v10453_v6  ;;  %v8834_v6 = vld [vmem:[%s10940_s4 + $0x160] sm:$0xff]  }
 0x565   : > { %7974 = vmatpush3.bf16.msra.mxu1 %v8830_v45  ;;  %7945 = vmatprep.mubr.bf16.mxu1 %v10455_v14  ;;  %v4848_v14 = vld [vmem:[#allocation3 + $0xa9] sm:$0xff]  ;;  %v5455_v45 = vld [vmem:[#allocation3 + $0x78] sm:$0xff] }
 0x566   : > { %7975 = vmatprep.subr.bf16.mxu1 %v8831_v40  ;;  %v10723_v12 = vpack.c.bf16 %v4849_v30, %v4848_v14  ;;  %v8850_v14 = vld [vmem:[%s10940_s4 + $0x1e0] sm:$0xff]   ;;  %v5459_v30 = vld [vmem:[#allocation3 + $0xa8] sm:$0xff] }
 0x569   : > { %7976 = vmatpush3.bf16.msra.mxu1 %v8831_v40  ;;  %v5458_v40 = vld [vmem:[#allocation3 + $0x98] sm:$0xff] }
 0x56a   : > { %7977 = vmatprep.subr.bf16.mxu1 %v8832_v2 }
 0x56c   : > { %7946 = vmatmul.mubr.bf16.gmra.mrb[4].mxu1 %v10457_v3  ;;  %v8836_v3 = vld [vmem:[%s10940_s4 + $0x170] sm:$0xff]  }
 0x56d   : > { %7949 = vmatprep.mubr.bf16.mxu1 %v10459_v4  ;;  %7978 = vmatpush3.bf16.msra.mxu1 %v8832_v2  ;;  %v4850_v4 = vld [vmem:[#allocation3 + $0xc1] sm:$0xff]  ;;  %v5484_v2 = vpack.c.bf16 %v5456_v16, %v5455_v45  ;;  %v5763_v16 = vld [vmem:[#allocation3 + $0x91] sm:$0xff] }
 0x56e   : > { %7979 = vmatprep.subr.bf16.mxu1 %v8833_v47  ;;  %v10730_v31 = vpack.c.bf16 %v4851_v59, %v4850_v4  ;;  %v5462_v4 = vld [vmem:[#allocation3 + $0xc8] sm:$0xff] }
 0x56f   : > { %v5762_v45 = vld [vmem:[#allocation3 + $0x81] sm:$0xff] }
 0x571   : > { %7980 = vmatpush3.bf16.msra.mxu1 %v8833_v47  ;;  %v8849_v47 = vld [vmem:[%s10940_s4 + $0x1d8] sm:$0xff]  }
 0x572   : > { %7981 = vmatprep.subr.bf16.mxu1 %v8834_v6 }
 0x574   : > { %7950 = vmatmul.mubr.bf16.gmra.mrb[8].mxu1 %v10461_v10  ;;  %v8837_v10 = vld [vmem:[%s10940_s4 + $0x178] sm:$0xff]  }
 0x575   : > { %7953 = vmatprep.mubr.bf16.mxu1 %v10723_v12  ;;  %7982 = vmatpush3.bf16.msra.mxu1 %v8834_v6  ;;  %v5485_v6 = vpack.c.bf16 %v5458_v40, %v5457_v55  ;;  %v5764_v55 = vld [vmem:[#allocation3 + $0x99] sm:$0xff] }
 0x576   : > { %7983 = vmatprep.subr.bf16.mxu1 %v8835_v52 }
 0x579   : > { %7984 = vmatpush3.bf16.msra.mxu1 %v8835_v52  ;;  %v5460_v52 = vld [vmem:[#allocation3 + $0xb0] sm:$0xff] }
 0x57a   : > { %7985 = vmatprep.subr.bf16.mxu1 %v8836_v3  ;;  %v5486_v59 = vpack.c.bf16 %v5460_v52, %v5459_v30  ;;  %v8860_v30 = vld [vmem:[%s10940_s4 + $0x230] sm:$0xff]   ;;  %v8861_v52 = vld [vmem:[%s10940_s4 + $0x238] sm:$0xff]  }
 0x57c   : > { %7954 = vmatmul.mubr.bf16.gmra.mrb[12].mxu1 %v10730_v31 }
 0x57d   : > { %7957 = vmatprep.mubr.bf16.mxu1 %v10735_v8  ;;  %7986 = vmatpush3.bf16.msra.mxu1 %v8836_v3  ;;  %v5461_v3 = vld [vmem:[#allocation3 + $0xc0] sm:$0xff] }
 0x57e   : > { %7987 = vmatprep.subr.bf16.mxu1 %v8837_v10  ;;  %v5487_v34 = vpack.c.bf16 %v5462_v4, %v5461_v3  ;;  %v6061_v3 = vld [vmem:[#allocation3 + $0x32] sm:$0xff] }
 0x581   : > { %7988 = vmatpush3.bf16.msra.mxu1 %v8837_v10  ;;  %v8852_v10 = vld [vmem:[%s10940_s4 + $0x1f0] sm:$0xff]  }
 0x582   : > { %8021 = vmatprep.subr.bf16.mxu1 %v8838_v42 }
 0x584   : > { %7958 = vmatmul.mubr.bf16.gmra.mrb[16].mxu1 %v10742_v19 }
 0x585   : > { %7961 = vmatprep.mubr.bf16.mxu1 %v10744_v13 }
 0x58c   : > { %7962 = vmatmul.mubr.bf16.gmra.mrb[20].mxu1 %v10748_v18 }
 0x58d   : > { %7965 = vmatprep.mubr.bf16.mxu1 %v10750_v32 }
 0x594   : > { %7966 = vmatmul.mubr.bf16.gmra.mrb[24].mxu1 %v10754_v20 }
 0x595   : > { %7969 = vmatprep.mubr.bf16.mxu1 %v10756_v17 }
 0x59c   : > { %7970 = vmatmul.mubr.bf16.gmra.mrb[28].mxu1 %v10760_v36 }
 0x59d   : > { %7989 = vmatprep.mubr.bf16.mxu1 %v10592_v24  ;;  %v8841_v24 = vld [vmem:[%s10940_s4 + $0x198] sm:$0xff]  }
 0x5a4   : > { %7990 = vmatmul.mubr.bf16.vlgmr.msra.gmra.mrb[0].mxu1 %v10597_v41  ;;  %v8842_v41 = vld [vmem:[%s10940_s4 + $0x1a0] sm:$0xff]  }
 0x5a5   : > { %8022 = vmatpush3.bf16.msra.mxu1 %v8838_v42  ;;  %7993 = vmatprep.mubr.bf16.mxu1 %v10604_v27  ;;  %v8843_v27 = vld [vmem:[%s10940_s4 + $0x1a8] sm:$0xff]  }
 0x5a6   : > { %8023 = vmatprep.subr.bf16.mxu1 %v8839_v46  ;;  %v5463_v42 = vld [vmem:[#allocation3 + $0xd8] sm:$0xff] }
 0x5a7   : > { %v5488_v50 = vpack.c.bf16 %v5464_v62, %v5463_v42 }
 0x5a9   : > { %8024 = vmatpush3.bf16.msra.mxu1 %v8839_v46  ;;  %v5472_v46 = vld [vmem:[#allocation3 + $0x140] sm:$0xff] }
 0x5aa   : > { %8025 = vmatprep.subr.bf16.mxu1 %v8840_v9 }
 0x5ac   : > { %7994 = vmatmul.mubr.bf16.gmra.mrb[4].mxu1 %v10609_v7  ;;  %v8844_v7 = vld [vmem:[%s10940_s4 + $0x1b0] sm:$0xff]  }
 0x5ad   : > { %7997 = vmatprep.mubr.bf16.mxu1 %v10616_v51  ;;  %8026 = vmatpush3.bf16.msra.mxu1 %v8840_v9  ;;  %v8845_v51 = vld [vmem:[%s10940_s4 + $0x1b8] sm:$0xff]   ;;  %v5473_v9 = vld [vmem:[#allocation3 + $0x150] sm:$0xff] }
 0x5ae   : > { %8027 = vmatprep.subr.bf16.mxu1 %v8841_v24 }
 0x5b1   : > { %8028 = vmatpush3.bf16.msra.mxu1 %v8841_v24  ;;  %v5474_v24 = vld [vmem:[#allocation3 + $0x158] sm:$0xff] }
 0x5b2   : > { %8029 = vmatprep.subr.bf16.mxu1 %v8842_v41 }
 0x5b4   : > { %7998 = vmatmul.mubr.bf16.gmra.mrb[8].mxu1 %v10621_v1  ;;  %v8846_v1 = vld [vmem:[%s10940_s4 + $0x1c0] sm:$0xff]  }
 0x5b5   : > { %8001 = vmatprep.mubr.bf16.mxu1 %v10628_v37  ;;  %8030 = vmatpush3.bf16.msra.mxu1 %v8842_v41  ;;  %v5172_v37 = vld [vmem:[#allocation3 + $0x182] sm:$0xff]  ;;  %v5492_v41 = vpack.c.bf16 %v5472_v46, %v5471_v57  ;;  %v6079_v57 = vld [vmem:[#allocation3 + $0x10a] sm:$0xff]  ;;  %v6080_v46 = vld [vmem:[#allocation3 + $0x112] sm:$0xff] }
 0x5b6   : > { %8031 = vmatprep.subr.bf16.mxu1 %v8843_v27 }
 0x5b9   : > { %8032 = vmatpush3.bf16.msra.mxu1 %v8843_v27  ;;  %v5493_v27 = vpack.c.bf16 %v5474_v24, %v5473_v9  ;;  %v6081_v9 = vld [vmem:[#allocation3 + $0x122] sm:$0xff]  ;;  %v6082_v24 = vld [vmem:[#allocation3 + $0x12a] sm:$0xff] }
 0x5ba   : > { %8033 = vmatprep.subr.bf16.mxu1 %v8844_v7 }
 0x5bc   : > { %8002 = vmatmul.mubr.bf16.gmra.mrb[12].mxu1 %v10633_v26  ;;  %v5173_v26 = vld [vmem:[#allocation3 + $0x18a] sm:$0xff] }
 0x5bd   : > { %8005 = vmatprep.mubr.bf16.mxu1 %v10640_v56  ;;  %8034 = vmatpush3.bf16.msra.mxu1 %v8844_v7  ;;  %v5449_v56 = vld [vmem:[#allocation3 + $0x30] sm:$0xff]  ;;  %v10802_v38 = vpack.c.bf16 %v5173_v26, %v5172_v37  ;;  %v5475_v7 = vld [vmem:[#allocation3 + $0x168] sm:$0xff] }
 0x5be   : > { %8035 = vmatprep.subr.bf16.mxu1 %v8845_v51  ;;  %v5481_v61 = vpack.c.bf16 %v5450_v25, %v5449_v56  ;;  %v8868_v37 = vld [vmem:[#allocation2] sm:$0xff]  ;;  %v5756_v25 = vld [vmem:[#allocation3 + $0x39] sm:$0xff] }
 0x5bf   : > { %v5496_v26 = vpack.c.bf16 %v8868_v37, %v8868_v37  ;;  %v5755_v56 = vld [vmem:[#allocation3 + $0x31] sm:$0xff]  ;;  %v6086_v37 = vld [vmem:[#allocation3 + $0x15a] sm:$0xff] }
 0x5c1   : > { %8036 = vmatpush3.bf16.msra.mxu1 %v8845_v51  ;;  %v5476_v51 = vld [vmem:[#allocation3 + $0x170] sm:$0xff] }
 0x5c2   : > { %8069 = vmatprep.subr.bf16.mxu1 %v8846_v1 }
 0x5c4   : > { %8006 = vmatmul.mubr.bf16.gmra.mrb[16].mxu1 %v10642_v29  ;;  %v5451_v29 = vld [vmem:[#allocation3 + $0x48] sm:$0xff] }
 0x5c5   : > { %8009 = vmatprep.mubr.bf16.mxu1 %v10646_v23  ;;  %v5452_v23 = vld [vmem:[#allocation3 + $0x50] sm:$0xff] }
 0x5c6   : > { %v5482_v35 = vpack.c.bf16 %v5452_v23, %v5451_v29  ;;  %v5757_v29 = vld [vmem:[#allocation3 + $0x49] sm:$0xff]  ;;  %v5758_v23 = vld [vmem:[#allocation3 + $0x51] sm:$0xff] }
 0x5cc   : > { %8010 = vmatmul.mubr.bf16.gmra.mrb[20].mxu1 %v10648_v39  ;;  %v5454_v39 = vld [vmem:[#allocation3 + $0x68] sm:$0xff] }
 0x5cd   : > { %8013 = vmatprep.mubr.bf16.mxu1 %v10652_v44  ;;  %v8847_v44 = vld [vmem:[%s10940_s4 + $0x1c8] sm:$0xff]  }
 0x5d4   : > { %8014 = vmatmul.mubr.bf16.gmra.mrb[24].mxu1 %v10654_v53  ;;  %v5483_v53 = vpack.c.bf16 %v5454_v39, %v5453_v58  ;;  %v5759_v58 = vld [vmem:[#allocation3 + $0x61] sm:$0xff]  ;;  %v5760_v39 = vld [vmem:[#allocation3 + $0x69] sm:$0xff] }
 0x5d5   : > { %8017 = vmatprep.mubr.bf16.mxu1 %v10658_v48  ;;  %v8848_v48 = vld [vmem:[%s10940_s4 + $0x1d0] sm:$0xff]  }
 0x5dc   : > { %8018 = vmatmul.mubr.bf16.gmra.mrb[28].mxu1 %v10802_v38 }
 0x5dd   : > { %8037 = vmatprep.mubr.bf16.mxu1 %v5481_v61  ;;  %v5787_v61 = vpack.c.bf16 %v5756_v25, %v5755_v56  ;;  %v6087_v25 = vld [vmem:[#allocation3 + $0x16a] sm:$0xff] }
 0x5e4   : > { %8038 = vmatmul.mubr.bf16.vlgmr.msra.gmra.mrb[0].mxu1 %v5482_v35  ;;  %v5788_v35 = vpack.c.bf16 %v5758_v23, %v5757_v29  ;;  %v6091_v23 = vld [vmem:[#allocation3 + $0x19a] sm:$0xff] }
 0x5e5   : > { %8070 = vmatpush3.bf16.msra.mxu1 %v8846_v1  ;;  %8041 = vmatprep.mubr.bf16.mxu1 %v5483_v53  ;;  %v5494_v1 = vpack.c.bf16 %v5476_v51, %v5475_v7  ;;  %v5789_v53 = vpack.c.bf16 %v5760_v39, %v5759_v58  ;;  %v6083_v7 = vld [vmem:[#allocation3 + $0x13a] sm:$0xff]  ;;  %v6084_v51 = vld [vmem:[#allocation3 + $0x142] sm:$0xff] }
 0x5e6   : > { %8071 = vmatprep.subr.bf16.mxu1 %v8847_v44  ;;  %v6092_v58 = vld [vmem:[#allocation3 + $0x1a2] sm:$0xff] }
 0x5e7   : > { %v6108_v39 = vpack.c.bf16 %v6092_v58, %v6091_v23  ;;  %v8889_v23 = vld [vmem:[%s9084_s29 + $0xb0] sm:$0xff] }
 0x5e9   : > { %8072 = vmatpush3.bf16.msra.mxu1 %v8847_v44  ;;  %v8855_v44 = vld [vmem:[%s10940_s4 + $0x208] sm:$0xff]  }
 0x5ea   : > { %8073 = vmatprep.subr.bf16.mxu1 %v8848_v48 }
 0x5ec   : > { %8042 = vmatmul.mubr.bf16.gmra.mrb[4].mxu1 %v5484_v2  ;;  %v8857_v2 = vld [vmem:[%s10940_s4 + $0x218] sm:$0xff]  }
 0x5ed   : > { %8045 = vmatprep.mubr.bf16.mxu1 %v5485_v6  ;;  %8074 = vmatpush3.bf16.msra.mxu1 %v8848_v48  ;;  %v5761_v48 = vld [vmem:[#allocation3 + $0x79] sm:$0xff]  ;;  %v8858_v6 = vld [vmem:[%s10940_s4 + $0x220] sm:$0xff]  }
 0x5ee   : > { %8075 = vmatprep.subr.bf16.mxu1 %v8849_v47  ;;  %v5790_v40 = vpack.c.bf16 %v5762_v45, %v5761_v48 }
 0x5f1   : > { %8076 = vmatpush3.bf16.msra.mxu1 %v8849_v47  ;;  %v5791_v47 = vpack.c.bf16 %v5764_v55, %v5763_v16  ;;  %v8871_v16 = vld [vmem:[%s9084_s29 + $0x18] sm:$0xff] }
 0x5f2   : > { %8077 = vmatprep.subr.bf16.mxu1 %v8850_v14 }
 0x5f4   : > { %8046 = vmatmul.mubr.bf16.gmra.mrb[8].mxu1 %v5486_v59  ;;  %v6063_v59 = vld [vmem:[#allocation3 + $0x4a] sm:$0xff] }
 0x5f5   : > { %8049 = vmatprep.mubr.bf16.mxu1 %v5487_v34  ;;  %8078 = vmatpush3.bf16.msra.mxu1 %v8850_v14  ;;  %v8859_v14 = vld [vmem:[%s10940_s4 + $0x228] sm:$0xff]  }
 0x5f6   : > { %8079 = vmatprep.subr.bf16.mxu1 %v8851_v28 }
 0x5f9   : > { %8080 = vmatpush3.bf16.msra.mxu1 %v8851_v28  ;;  %v6065_v28 = vld [vmem:[#allocation3 + $0x62] sm:$0xff] }
 0x5fa   : > { %8081 = vmatprep.subr.bf16.mxu1 %v8852_v10 }
 0x5fc   : > { %8050 = vmatmul.mubr.bf16.gmra.mrb[12].mxu1 %v5488_v50  ;;  %v6073_v50 = vld [vmem:[#allocation3 + $0xc2] sm:$0xff] }
 0x5fd   : > { %8053 = vmatprep.mubr.bf16.mxu1 %v5489_v54  ;;  %8082 = vmatpush3.bf16.msra.mxu1 %v8852_v10  ;;  %v6069_v10 = vld [vmem:[#allocation3 + $0x92] sm:$0xff]  ;;  %v6098_v54 = vpack.c.bf16 %v6072_v15, %v6071_v63 }
 0x5fe   : > { %8083 = vmatprep.subr.bf16.mxu1 %v8853_v60  ;;  %v8880_v63 = vld [vmem:[%s9084_s29 + $0x48] sm:$0xff] }
 0x601   : > { %8084 = vmatpush3.bf16.msra.mxu1 %v8853_v60  ;;  %v6074_v60 = vld [vmem:[#allocation3 + $0xca] sm:$0xff] }
 0x602   : > { %8117 = vmatprep.subr.bf16.mxu1 %v8854_v22 }
 0x604   : > { %8054 = vmatmul.mubr.bf16.gmra.mrb[16].mxu1 %v5490_v21  ;;  %v6100_v21 = vpack.c.bf16 %v6076_v5, %v6075_v43  ;;  %v8882_v43 = vld [vmem:[%s9084_s29 + $0x60] sm:$0xff] }
 0x605   : > { %8057 = vmatprep.mubr.bf16.mxu1 %v5491_v0  ;;  %v6101_v0 = vpack.c.bf16 %v6078_v11, %v6077_v49  ;;  %v8883_v11 = vld [vmem:[%s9084_s29 + $0x78] sm:$0xff] }
 0x60c   : > { %8058 = vmatmul.mubr.bf16.gmra.mrb[20].mxu1 %v5492_v41  ;;  %v6102_v41 = vpack.c.bf16 %v6080_v46, %v6079_v57  ;;  %v8884_v57 = vld [vmem:[%s9084_s29 + $0x68] sm:$0xff] }
 0x60d   : > { %8061 = vmatprep.mubr.bf16.mxu1 %v5493_v27  ;;  %v6103_v27 = vpack.c.bf16 %v6082_v24, %v6081_v9  ;;  %v8885_v24 = vld [vmem:[%s9084_s29 + $0x90] sm:$0xff] }
 0x614   : > { %8062 = vmatmul.mubr.bf16.gmra.mrb[24].mxu1 %v5494_v1  ;;  %v6085_v1 = vld [vmem:[#allocation3 + $0x152] sm:$0xff] }
 0x615   : > { %8065 = vmatprep.mubr.bf16.mxu1 %v10700_v33  ;;  %v8856_v33 = vld [vmem:[%s10940_s4 + $0x210] sm:$0xff]   ;;  %v6105_v56 = vpack.c.bf16 %v6086_v37, %v6085_v1  ;;  %v8887_v37 = vld [vmem:[%s9084_s29 + $0x98] sm:$0xff] }
 0x61c   : > { %8066 = vmatmul.mubr.bf16.gmra.mrb[28].mxu1 %v5496_v26  ;;  %v6104_v26 = vpack.c.bf16 %v6084_v51, %v6083_v7  ;;  %v8886_v7 = vld [vmem:[%s9084_s29 + $0x80] sm:$0xff] }
 0x61d   : > { %8085 = vmatprep.mubr.bf16.mxu1 %v5787_v61  ;;  %v6088_v61 = vld [vmem:[#allocation3 + $0x172] sm:$0xff] }
 0x61e   : > { %v6106_v29 = vpack.c.bf16 %v6088_v61, %v6087_v25  ;;  %v8888_v25 = vld [vmem:[%s9084_s29 + $0x88] sm:$0xff] }
 0x624   : > { %8086 = vmatmul.mubr.bf16.vlgmr.msra.gmra.mrb[0].mxu1 %v5788_v35 }
 0x625   : > { %8118 = vmatpush3.bf16.msra.mxu1 %v8854_v22  ;;  %8089 = vmatprep.mubr.bf16.mxu1 %v5789_v53  ;;  %v6099_v22 = vpack.c.bf16 %v6074_v60, %v6073_v50  ;;  %v8881_v60 = vld [vmem:[%s9084_s29 + $0x70] sm:$0xff] }
 0x626   : > { %8119 = vmatprep.subr.bf16.mxu1 %v8855_v44 }
 0x629   : > { %8120 = vmatpush3.bf16.msra.mxu1 %v8855_v44  ;;  %v8869_v44 = vld [vmem:[%s9084_s29 + $0x10] sm:$0xff] }
 0x62a   : > { %8121 = vmatprep.subr.bf16.mxu1 %v8856_v33 }
 0x62c   : > { %8090 = vmatmul.mubr.bf16.gmra.mrb[4].mxu1 %v5790_v40 }
 0x62d   : > { %8093 = vmatprep.mubr.bf16.mxu1 %v5791_v47  ;;  %8122 = vmatpush3.bf16.msra.mxu1 %v8856_v33  ;;  %v8870_v33 = vld [vmem:[%s9084_s29] sm:$0xff] }
 0x62e   : > { %8123 = vmatprep.subr.bf16.mxu1 %v8857_v2 }
 0x631   : > { %8124 = vmatpush3.bf16.msra.mxu1 %v8857_v2  ;;  %v8872_v2 = vld [vmem:[%s9084_s29 + $0x8] sm:$0xff] }
 0x632   : > { %8125 = vmatprep.subr.bf16.mxu1 %v8858_v6 }
 0x634   : > { %8094 = vmatmul.mubr.bf16.gmra.mrb[8].mxu1 %v10723_v12  ;;  %v5785_v12 = vld [vmem:[#allocation3 + $0x199] sm:$0xff] }
 0x635   : > { %8097 = vmatprep.mubr.bf16.mxu1 %v10730_v31  ;;  %8126 = vmatpush3.bf16.msra.mxu1 %v8858_v6  ;;  %v5786_v31 = vld [vmem:[#allocation3 + $0x1a1] sm:$0xff] }
 0x636   : > { %8127 = vmatprep.subr.bf16.mxu1 %v8859_v14 }
 0x639   : > { %8128 = vmatpush3.bf16.msra.mxu1 %v8859_v14  ;;  %v8873_v14 = vld [vmem:[%s9084_s29 + $0x30] sm:$0xff] }
 0x63a   : > { %8129 = vmatprep.subr.bf16.mxu1 %v8860_v30 }
 0x63c   : > { %8098 = vmatmul.mubr.bf16.gmra.mrb[12].mxu1 %v10735_v8  ;;  %v5802_v8 = vpack.c.bf16 %v5786_v31, %v5785_v12  ;;  %v8874_v12 = vld [vmem:[%s9084_s29 + $0x20] sm:$0xff] }
 0x63d   : > { %8101 = vmatprep.mubr.bf16.mxu1 %v10742_v19  ;;  %8130 = vmatpush3.bf16.msra.mxu1 %v8860_v30  ;;  %v6062_v19 = vld [vmem:[#allocation3 + $0x3a] sm:$0xff] }
 0x63e   : > { %8131 = vmatprep.subr.bf16.mxu1 %v8861_v52  ;;  %v6093_v4 = vpack.c.bf16 %v6062_v19, %v6061_v3  ;;  %v8875_v3 = vld [vmem:[%s9084_s29 + $0x38] sm:$0xff] }
 0x641   : > { %8132 = vmatpush3.bf16.msra.mxu1 %v8861_v52 }
 0x644   : > { %8102 = vmatmul.mubr.bf16.gmra.mrb[16].mxu1 %v10744_v13  ;;  %v6064_v13 = vld [vmem:[#allocation3 + $0x52] sm:$0xff] }
 0x645   : > { %8105 = vmatprep.mubr.bf16.mxu1 %v10748_v18  ;;  %v6066_v18 = vld [vmem:[#allocation3 + $0x6a] sm:$0xff]  ;;  %v6094_v34 = vpack.c.bf16 %v6064_v13, %v6063_v59  ;;  %v8876_v59 = vld [vmem:[%s9084_s29 + $0x28] sm:$0xff] }
 0x64c   : > { %8106 = vmatmul.mubr.bf16.gmra.mrb[20].mxu1 %v10750_v32  ;;  %v6095_v32 = vpack.c.bf16 %v6066_v18, %v6065_v28  ;;  %v8877_v18 = vld [vmem:[%s9084_s29 + $0x50] sm:$0xff] }
 0x64d   : > { %8109 = vmatprep.mubr.bf16.mxu1 %v10754_v20  ;;  %v6067_v20 = vld [vmem:[#allocation3 + $0x7a] sm:$0xff] }
 0x654   : > { %8110 = vmatmul.mubr.bf16.gmra.mrb[24].mxu1 %v10756_v17  ;;  %v6068_v17 = vld [vmem:[#allocation3 + $0x82] sm:$0xff] }
 0x655   : > { %8113 = vmatprep.mubr.bf16.mxu1 %v10760_v36  ;;  %v6070_v36 = vld [vmem:[#allocation3 + $0x9a] sm:$0xff]  ;;  %v6096_v42 = vpack.c.bf16 %v6068_v17, %v6067_v20  ;;  %v8878_v20 = vld [vmem:[%s9084_s29 + $0x40] sm:$0xff] }
 0x656   : > { %v6097_v62 = vpack.c.bf16 %v6070_v36, %v6069_v10  ;;  %v8879_v36 = vld [vmem:[%s9084_s29 + $0x58] sm:$0xff] }
 0x65c   : > { %8114 = vmatmul.mubr.bf16.gmra.mrb[28].mxu1 %v5802_v8 }
 0x65d   : > { %8133 = vmatprep.mubr.bf16.mxu1 %v6093_v4 }
 0x664   : > { %8134 = vmatmul.mubr.bf16.vlgmr.msra.gmra.mrb[0].mxu1 %v6094_v34 }
 0x665   : > { %8137 = vmatprep.mubr.bf16.mxu1 %v6095_v32 }
 0x66c   : > { %8138 = vmatmul.mubr.bf16.gmra.mrb[4].mxu1 %v6096_v42 }
 0x66d   : > { %8141 = vmatprep.mubr.bf16.mxu1 %v6097_v62 }
 0x674   : > { %8142 = vmatmul.mubr.bf16.gmra.mrb[8].mxu1 %v6098_v54 }
 0x675   : > { %8145 = vmatprep.mubr.bf16.mxu1 %v6099_v22 }
 0x67c   : > { %8146 = vmatmul.mubr.bf16.gmra.mrb[12].mxu1 %v6100_v21 }
 0x67d   : > { %8149 = vmatprep.mubr.bf16.mxu1 %v6101_v0 }
 0x684   : > { %8150 = vmatmul.mubr.bf16.gmra.mrb[16].mxu1 %v6102_v41 }
 0x685   : > { %8153 = vmatprep.mubr.bf16.mxu1 %v6103_v27 }
 0x68c   : > { %8154 = vmatmul.mubr.bf16.gmra.mrb[20].mxu1 %v6104_v26 }
 0x68d   : > { %8157 = vmatprep.mubr.bf16.mxu1 %v6105_v56 }
 0x694   : > { %8158 = vmatmul.mubr.bf16.gmra.mrb[24].mxu1 %v6106_v29 }
 0x695   : > { %8161 = vmatprep.mubr.bf16.mxu1 %v10802_v38 }
 0x69c   : > { %8162 = vmatmul.mubr.bf16.gmra.mrb[28].mxu1 %v6108_v39 }
 0x737   : > { %v8135_v35 = vpop.f32.mrb[0].mxu1 }
 0x738   : > { %v8165_v53 = vadd.f32 %v8869_v44, %v8135_v35  ;;  %v6208_v38 = vpop.f32.mrb[1].mxu1  ;;  %v8890_v35 = vld [vmem:[%s9084_s29 + $0xa0] sm:$0xff] }
 0x739   : > { %v8166_v48 = vadd.f32 %v8870_v33, %v6208_v38  ;;  %v8136_v45 = vpop.f32.mrb[2].mxu1  ;;  %v8891_v38 = vld [vmem:[%s9084_s29 + $0xb8] sm:$0xff] }
 0x73a   : > { %6369 = vst [vmem:[%s10867_s22 + $0x10] sm:$0xff] %v8165_v53  ;;  %v8167_v55 = vadd.f32 %v8871_v16, %v8136_v45  ;;  %v6211_v40 = vpop.f32.mrb[3].mxu1  ;;  %v8892_v45 = vld [vmem:[%s9084_s29 + $0xa8] sm:$0xff] }
 0x73b   : > { %6367 = vst [vmem:[%s10867_s22] sm:$0xff] %v8166_v48  ;;  %v8168_v47 = vadd.f32 %v8872_v2, %v6211_v40  ;;  %v8893_v40 = vld [vmem:[%s9084_s29 + $0xd0] sm:$0xff] }
 0x73c   : > { %6370 = vst [vmem:[%s10867_s22 + $0x18] sm:$0xff] %v8167_v55 }
 0x73d   : > { %6368 = vst [vmem:[%s10867_s22 + $0x8] sm:$0xff] %v8168_v47 }
 0x73f   : > { %v8139_v6 = vpop.f32.mrb[4].mxu1 }
 0x740   : > { %v8169_v30 = vadd.f32 %v8873_v14, %v8139_v6  ;;  %v6224_v52 = vpop.f32.mrb[5].mxu1  ;;  %v8894_v6 = vld [vmem:[%s9084_s29 + $0xc0] sm:$0xff] }
 0x741   : > { %v8170_v31 = vadd.f32 %v8874_v12, %v6224_v52  ;;  %v8140_v8 = vpop.f32.mrb[6].mxu1  ;;  %v8895_v52 = vld [vmem:[%s9084_s29 + $0xd8] sm:$0xff] }
 0x742   : > { %6373 = vst [vmem:[%s10867_s22 + $0x30] sm:$0xff] %v8169_v30  ;;  %v8171_v19 = vadd.f32 %v8875_v3, %v8140_v8  ;;  %v6227_v4 = vpop.f32.mrb[7].mxu1  ;;  %v8896_v8 = vld [vmem:[%s9084_s29 + $0xc8] sm:$0xff] }
 0x743   : > { %6371 = vst [vmem:[%s10867_s22 + $0x20] sm:$0xff] %v8170_v31  ;;  %v8172_v13 = vadd.f32 %v8876_v59, %v6227_v4  ;;  %v8897_v4 = vld [vmem:[%s9084_s29 + $0xf0] sm:$0xff] }
 0x744   : > { %6374 = vst [vmem:[%s10867_s22 + $0x38] sm:$0xff] %v8171_v19 }
 0x745   : > { %6372 = vst [vmem:[%s10867_s22 + $0x28] sm:$0xff] %v8172_v13 }
 0x747   : > { %v8143_v28 = vpop.f32.mrb[8].mxu1 }
 0x748   : > { %v8173_v34 = vadd.f32 %v8877_v18, %v8143_v28  ;;  %v6240_v32 = vpop.f32.mrb[9].mxu1  ;;  %v8898_v28 = vld [vmem:[%s9084_s29 + $0xe0] sm:$0xff] }
 0x749   : > { %v8174_v17 = vadd.f32 %v8878_v20, %v6240_v32  ;;  %v8144_v10 = vpop.f32.mrb[10].mxu1  ;;  %v8899_v32 = vld [vmem:[%s9084_s29 + $0xf8] sm:$0xff] }
 0x74a   : > { %6377 = vst [vmem:[%s10867_s22 + $0x50] sm:$0xff] %v8173_v34  ;;  %v8175_v42 = vadd.f32 %v8879_v36, %v8144_v10  ;;  %v6243_v62 = vpop.f32.mrb[11].mxu1  ;;  %v8900_v10 = vld [vmem:[%s9084_s29 + $0xe8] sm:$0xff] }
 0x74b   : > { %6375 = vst [vmem:[%s10867_s22 + $0x40] sm:$0xff] %v8174_v17  ;;  %v8176_v15 = vadd.f32 %v8880_v63, %v6243_v62 }
 0x74c   : > { %6378 = vst [vmem:[%s10867_s22 + $0x58] sm:$0xff] %v8175_v42 }
 0x74d   : > { %6376 = vst [vmem:[%s10867_s22 + $0x48] sm:$0xff] %v8176_v15 }
 0x74f   : > { %v8147_v50 = vpop.f32.mrb[12].mxu1 }
 0x750   : > { %v8177_v54 = vadd.f32 %v8881_v60, %v8147_v50  ;;  %v6256_v22 = vpop.f32.mrb[13].mxu1 }
 0x751   : > { %v8178_v5 = vadd.f32 %v8882_v43, %v6256_v22  ;;  %v8148_v49 = vpop.f32.mrb[14].mxu1 }
 0x752   : > { %6381 = vst [vmem:[%s10867_s22 + $0x70] sm:$0xff] %v8177_v54  ;;  %v8179_v21 = vadd.f32 %v8883_v11, %v8148_v49  ;;  %v6259_v0 = vpop.f32.mrb[15].mxu1 }
 0x753   : > { %6379 = vst [vmem:[%s10867_s22 + $0x60] sm:$0xff] %v8178_v5  ;;  %v8180_v46 = vadd.f32 %v8884_v57, %v6259_v0 }
 0x754   : > { %6382 = vst [vmem:[%s10867_s22 + $0x78] sm:$0xff] %v8179_v21 }
 0x755   : > { %6380 = vst [vmem:[%s10867_s22 + $0x68] sm:$0xff] %v8180_v46 }
 0x757   : > { %v8151_v9 = vpop.f32.mrb[16].mxu1 }
 0x758   : > { %v8181_v41 = vadd.f32 %v8885_v24, %v8151_v9  ;;  %v6272_v27 = vpop.f32.mrb[17].mxu1 }
 0x759   : > { %v8182_v51 = vadd.f32 %v8886_v7, %v6272_v27  ;;  %v8152_v1 = vpop.f32.mrb[18].mxu1 }
 0x75a   : > { %6385 = vst [vmem:[%s10867_s22 + $0x90] sm:$0xff] %v8181_v41  ;;  %v8183_v26 = vadd.f32 %v8887_v37, %v8152_v1  ;;  %v6275_v56 = vpop.f32.mrb[19].mxu1 }
 0x75b   : > { %6383 = vst [vmem:[%s10867_s22 + $0x80] sm:$0xff] %v8182_v51  ;;  %v8184_v61 = vadd.f32 %v8888_v25, %v6275_v56 }
 0x75c   : > { %6386 = vst [vmem:[%s10867_s22 + $0x98] sm:$0xff] %v8183_v26 }
 0x75d   : > { %6384 = vst [vmem:[%s10867_s22 + $0x88] sm:$0xff] %v8184_v61 }
 0x75f   : > { %v8155_v29 = vpop.f32.mrb[20].mxu1 }
 0x760   : > { %v8185_v58 = vadd.f32 %v8889_v23, %v8155_v29  ;;  %v6288_v39 = vpop.f32.mrb[21].mxu1 }
 0x761   : > { %v8186_v44 = vadd.f32 %v8890_v35, %v6288_v39  ;;  %v8156_v53 = vpop.f32.mrb[22].mxu1 }
 0x762   : > { %6389 = vst [vmem:[%s10867_s22 + $0xb0] sm:$0xff] %v8185_v58  ;;  %v8187_v33 = vadd.f32 %v8891_v38, %v8156_v53  ;;  %v6291_v48 = vpop.f32.mrb[23].mxu1 }
 0x763   : > { %6387 = vst [vmem:[%s10867_s22 + $0xa0] sm:$0xff] %v8186_v44  ;;  %v8188_v16 = vadd.f32 %v8892_v45, %v6291_v48 }
 0x764   : > { %6390 = vst [vmem:[%s10867_s22 + $0xb8] sm:$0xff] %v8187_v33 }
 0x765   : > { %6388 = vst [vmem:[%s10867_s22 + $0xa8] sm:$0xff] %v8188_v16 }
 0x767   : > { %v8159_v55 = vpop.f32.mrb[24].mxu1 }
 0x768   : > { %v8189_v2 = vadd.f32 %v8893_v40, %v8159_v55  ;;  %v6304_v47 = vpop.f32.mrb[25].mxu1 }
 0x769   : > { %v8190_v14 = vadd.f32 %v8894_v6, %v6304_v47  ;;  %v8160_v30 = vpop.f32.mrb[26].mxu1 }
 0x76a   : > { %6393 = vst [vmem:[%s10867_s22 + $0xd0] sm:$0xff] %v8189_v2  ;;  %v8191_v12 = vadd.f32 %v8895_v52, %v8160_v30  ;;  %v6307_v31 = vpop.f32.mrb[27].mxu1 }
 0x76b   : > { %6391 = vst [vmem:[%s10867_s22 + $0xc0] sm:$0xff] %v8190_v14  ;;  %v8192_v3 = vadd.f32 %v8896_v8, %v6307_v31 }
 0x76c   : > { %6394 = vst [vmem:[%s10867_s22 + $0xd8] sm:$0xff] %v8191_v12 }
 0x76d   : > { %6392 = vst [vmem:[%s10867_s22 + $0xc8] sm:$0xff] %v8192_v3 }
 0x76f   : > { %v8163_v19 = vpop.f32.mrb[28].mxu1 }
 0x770   : > { %v8193_v59 = vadd.f32 %v8897_v4, %v8163_v19  ;;  %v6320_v13 = vpop.f32.mrb[29].mxu1 }
 0x771   : > { %v8194_v18 = vadd.f32 %v8898_v28, %v6320_v13  ;;  %v8164_v34 = vpop.f32.mrb[30].mxu1 }
 0x772   : > { %6397 = vst [vmem:[%s10867_s22 + $0xf0] sm:$0xff] %v8193_v59  ;;  %v8195_v20 = vadd.f32 %v8899_v32, %v8164_v34  ;;  %v6323_v17 = vpop.f32.mrb[31].mxu1 }
 0x773   : > { %6395 = vst [vmem:[%s10867_s22 + $0xe0] sm:$0xff] %v8194_v18  ;;  %v8196_v36 = vadd.f32 %v8900_v10, %v6323_v17 }
 0x774   : > { %6398 = vst [vmem:[%s10867_s22 + $0xf8] sm:$0xff] %v8195_v20 }
 0x775   : > { %6396 = vst [vmem:[%s10867_s22 + $0xe8] sm:$0xff] %v8196_v36 }
 0x776 PF: > { %s15_s18 = sadd.s32 1, %s8907_s18  }
 0x777   : > { %p12_p4 = scmp.ge.s32.totalorder %s15_s18, 4  }
 0x779   :  { %14 = sbr.rel (!%p12_p4) target bundleno = 1 (0x1), region = 90 }

</bundles_post_ra>
